<compile_context>
chip_gen: v6e
topology: v6e:2x2x1
jax: 0.10.0
libtpu: 0.0.40
codegen_flags: <defaults>
</compile_context>

<pallas_src>
import jax
import jax.numpy as jnp
from jax.experimental import pallas as pl
from jax.experimental.pallas import tpu as pltpu

EPS = 1e-5
HID = (256, 128, 64)
OUT_PAD = 128                       # lane-dense padded width of the final layer
SEG_OFF = (0, 256, 384, 512)        # 128-aligned lane offsets of the param segments
SEG_W = (256, 128, 64, OUT_PAD)     # valid widths of the segments
P_WIDTH = SEG_OFF[3] + OUT_PAD      # 640 lanes total


def mlp_kernel(x_ref, w1_ref, w2_ref, w3_ref, w4_ref, p_ref, out_ref):
    """Whole-batch fused forward.  p_ref rows: 0=bias, 1=gamma, 2=beta."""

    def mxu_dot(h, w):
        # Weights are pre-cast in HBM; only the activation is cast here.
        return jnp.dot(h.astype(w.dtype), w, preferred_element_type=jnp.float32)

    def linear_bn_relu(h, w_ref, off, width):
        bias = p_ref[0:1, off:off + width]
        gamma = p_ref[1:2, off:off + width]
        beta = p_ref[2:3, off:off + width]
        z = mxu_dot(h, w_ref[...]) + bias
        # Cancellation-safe fused one-pass batch stats: shift by row 0
        # (variance is shift-invariant, and zn only needs d - mean(d)).
        d = z - z[0:1, :]
        inv_b = 1.0 / z.shape[0]
        s1 = jnp.sum(d, axis=0, keepdims=True)
        s2 = jnp.sum(d * d, axis=0, keepdims=True)
        mean_d = s1 * inv_b
        var = jnp.maximum(s2 * inv_b - mean_d * mean_d, 0.0)
        # NOTE: if bundle dumps ever show VALU/XLU as the binding slot, move the
        # s1/s2 sublane reductions onto the MXU (ones[1,B] @ [z, z*z]); at this
        # size the kernel is latency-bound so we keep the simple form.
        zn = (d - mean_d) * jax.lax.rsqrt(var + EPS)      # rsqrt -> EUP slot
        return jnp.maximum(zn * gamma + beta, 0.0)        # ReLU

    h = linear_bn_relu(x_ref[...], w1_ref, SEG_OFF[0], SEG_W[0])
    h = linear_bn_relu(h, w2_ref, SEG_OFF[1], SEG_W[1])
    h = linear_bn_relu(h, w3_ref, SEG_OFF[2], SEG_W[2])
    # Final layer: lane-dense [B, 128] store; real result lives in column 0.
    out_ref[...] = mxu_dot(h, w4_ref[...]) + p_ref[0:1, SEG_OFF[3]:SEG_OFF[3] + OUT_PAD]


def mlp_regressor_forward(x, packed_params):
    """x: [B, D] f32; packed_params: (w1, w2, w3, w4_pad, P) from pack_params()."""
    w1, w2, w3, w4p, P = packed_params
    B, D = x.shape
    vmem = pl.BlockSpec(memory_space=pltpu.MemorySpace.VMEM)

    weight_elems = D * HID[0] + HID[0] * HID[1] + HID[1] * HID[2] + HID[2] * OUT_PAD
    flops = 2 * B * weight_elems
    w_bytes = sum(int(w.size) * w.dtype.itemsize for w in (w1, w2, w3, w4p))
    bytes_accessed = int(x.size) * 4 + w_bytes + int(P.size) * 4 + B * OUT_PAD * 4

    out_wide = pl.pallas_call(
        mlp_kernel,
        out_shape=jax.ShapeDtypeStruct((B, OUT_PAD), jnp.float32),
        in_specs=[vmem] * 6,
        out_specs=vmem,
        cost_estimate=pl.CostEstimate(
            flops=flops,
            transcendentals=sum(HID),        # one rsqrt per BN feature
            bytes_accessed=bytes_accessed,
        ),
        compiler_params=pltpu.CompilerParams(
            vmem_limit_bytes=8 * 1024 * 1024,   # real footprint < 2 MiB; fits all gens
        ),
    )(x, w1, w2, w3, w4p, P)
    # Padded output sliced to the module's [B, 1].  TODO(synk): for large B emit
    # a (1, B) lane-dense output in-kernel instead of this padded round-trip.
    return out_wide[:, 0:1]


def init_params(key, input_dim):
    """Raw parameters (W stored as [in, out], biases/BN as [1, out]) — 14 arrays."""
    dims = [(input_dim, HID[0]), (HID[0], HID[1]), (HID[1], HID[2]), (HID[2], 1)]
    params = []
    for i, (din, dout) in enumerate(dims):
        kw, kb, key = jax.random.split(key, 3)
        bound = 1.0 / jnp.sqrt(jnp.float32(din))
        w = jax.random.uniform(kw, (din, dout), jnp.float32, -bound, bound)
        b = jax.random.uniform(kb, (1, dout), jnp.float32, -bound, bound)
        params.extend([w, b])
        if i < 3:  # BatchNorm after the first three linears
            params.extend([jnp.ones((1, dout), jnp.float32),
                           jnp.zeros((1, dout), jnp.float32)])
    return tuple(params)


def pack_params(raw, matmul_dtype=jnp.float32):
    """Pack raw params into 5 kernel operands.

    Weights are stored in HBM in `matmul_dtype` (use bf16 on v5e/v6e/v7x for
    halved weight DMA bytes + native-MXU speed; f32 for exact reference match).
    All bias/gamma/beta (and padded b4) live in one f32 [3, 640] operand.
    """
    (w1, b1, g1, be1, w2, b2, g2, be2, w3, b3, g3, be3, w4, b4) = raw
    P = jnp.zeros((3, P_WIDTH), jnp.float32)
    for off, width, (b, g, be) in zip(
            SEG_OFF[:3], SEG_W[:3],
            ((b1, g1, be1), (b2, g2, be2), (b3, g3, be3))):
        P = P.at[0:1, off:off + width].set(b)
        P = P.at[1:2, off:off + width].set(g)
        P = P.at[2:3, off:off + width].set(be)
    P = P.at[0:1, SEG_OFF[3]:SEG_OFF[3] + OUT_PAD].set(
        jnp.broadcast_to(b4, (1, OUT_PAD)))
    w4p = jnp.zeros((HID[2], OUT_PAD), jnp.float32).at[:, 0:1].set(w4)
    w1, w2, w3, w4p = (w.astype(matmul_dtype) for w in (w1, w2, w3, w4p))
    return (w1, w2, w3, w4p, P)


def _reference(x, raw):
    """Pure-JAX reference with PyTorch training-mode BN semantics (two-pass stats)."""
    (w1, b1, g1, be1, w2, b2, g2, be2, w3, b3, g3, be3, w4, b4) = raw

    def bn_relu(h, g, be):
        mean = jnp.mean(h, axis=0, keepdims=True)
        var = jnp.mean((h - mean) ** 2, axis=0, keepdims=True)
        return jnp.maximum((h - mean) / jnp.sqrt(var + EPS) * g + be, 0.0)

    h = bn_relu(x @ w1 + b1, g1, be1)
    h = bn_relu(h @ w2 + b2, g2, be2)
    h = bn_relu(h @ w3 + b3, g3, be3)
    return h @ w4 + b4


if __name__ == "__main__":
    key = jax.random.PRNGKey(0)
    k_x, k_p = jax.random.split(key)

    # B=256 fills a full 256-row MXU M tile on v6e/v7x (v5e is full at 128);
    # input_dim stays small.
    B, D = 256, 32
    x = jax.random.normal(k_x, (B, D), jnp.float32)
    raw = init_params(k_p, D)
    ref = _reference(x, raw)

    # Primary path: f32 MXU operands (matches the f32 PyTorch module closely).
    out = jax.block_until_ready(mlp_regressor_forward(x, pack_params(raw)))
    assert out.shape == (B, 1)
    assert jnp.allclose(out, ref, atol=5e-4, rtol=5e-4)

    # bf16-weights path: weights pre-cast in HBM (halved weight DMA + VMEM),
    # f32 accumulation and f32 BN math.  Recommended on v5e as well as v6e/v7x.
    out_bf16 = jax.block_until_ready(
        mlp_regressor_forward(x, pack_params(raw, matmul_dtype=jnp.bfloat16)))
    assert out_bf16.shape == (B, 1)
    assert jnp.allclose(out_bf16, ref, atol=1e-1, rtol=1e-1)

    print("KERNEL_OK")
</pallas_src>

<mosaic_0001>
module attributes {stable_mosaic.version = 11 : i64} {
  func.func @mlp_kernel(%arg0: memref<256x32xf32, #tpu.memory_space<vmem>>, %arg1: memref<32x256xf32, #tpu.memory_space<vmem>>, %arg2: memref<256x128xf32, #tpu.memory_space<vmem>>, %arg3: memref<128x64xf32, #tpu.memory_space<vmem>>, %arg4: memref<64x128xf32, #tpu.memory_space<vmem>>, %arg5: memref<3x640xf32, #tpu.memory_space<vmem>>, %arg6: memref<256x128xf32, #tpu.memory_space<vmem>>) attributes {dimension_semantics = [], scalar_prefetch = 0 : i64, scratch_operands = 0 : i64, tpu.core_type = #tpu.core_type<tc>} {
    %c0 = arith.constant 0 : index
    %c0_0 = arith.constant 0 : index
    %0 = vector.load %arg0[%c0, %c0_0] : memref<256x32xf32, #tpu.memory_space<vmem>>, vector<256x32xf32>
    %c0_1 = arith.constant 0 : index
    %c0_2 = arith.constant 0 : index
    %1 = vector.load %arg5[%c0_1, %c0_2] : memref<3x640xf32, #tpu.memory_space<vmem>>, vector<1x256xf32>
    %c1 = arith.constant 1 : index
    %c0_3 = arith.constant 0 : index
    %2 = vector.load %arg5[%c1, %c0_3] : memref<3x640xf32, #tpu.memory_space<vmem>>, vector<1x256xf32>
    %c2 = arith.constant 2 : index
    %c0_4 = arith.constant 0 : index
    %3 = vector.load %arg5[%c2, %c0_4] : memref<3x640xf32, #tpu.memory_space<vmem>>, vector<1x256xf32>
    %c0_5 = arith.constant 0 : index
    %c0_6 = arith.constant 0 : index
    %4 = vector.load %arg1[%c0_5, %c0_6] : memref<32x256xf32, #tpu.memory_space<vmem>>, vector<32x256xf32>
    %cst = arith.constant dense<0.000000e+00> : vector<256x256xf32>
    %5 = tpu.matmul %0, %4, %cst {dimension_numbers = #tpu.dot_dimension_numbers<[1], [0], [0], [1], [0, 0, 1, 1], [], []>} : vector<256x32xf32>, vector<32x256xf32>, vector<256x256xf32> -> vector<256x256xf32>
    %6 = vector.broadcast %1 : vector<1x256xf32> to vector<256x256xf32>
    %7 = arith.addf %5, %6 : vector<256x256xf32>
    %8 = vector.extract_strided_slice %7 {offsets = [0, 0], sizes = [1, 256], strides = [1, 1]} : vector<256x256xf32> to vector<1x256xf32>
    %9 = vector.broadcast %8 : vector<1x256xf32> to vector<256x256xf32>
    %10 = arith.subf %7, %9 : vector<256x256xf32>
    %cst_7 = arith.constant dense<0.000000e+00> : vector<256xf32>
    %11 = vector.multi_reduction <add>, %10, %cst_7 [0] : vector<256x256xf32> to vector<256xf32>
    %12 = vector.shape_cast %11 : vector<256xf32> to vector<1x256xf32>
    %13 = arith.mulf %10, %10 : vector<256x256xf32>
    %cst_8 = arith.constant dense<0.000000e+00> : vector<256xf32>
    %14 = vector.multi_reduction <add>, %13, %cst_8 [0] : vector<256x256xf32> to vector<256xf32>
    %15 = vector.shape_cast %14 : vector<256xf32> to vector<1x256xf32>
    %cst_9 = arith.constant 3.906250e-03 : f32
    %16 = vector.broadcast %cst_9 : f32 to vector<1x256xf32>
    %17 = arith.mulf %12, %16 : vector<1x256xf32>
    %cst_10 = arith.constant 3.906250e-03 : f32
    %18 = vector.broadcast %cst_10 : f32 to vector<1x256xf32>
    %19 = arith.mulf %15, %18 : vector<1x256xf32>
    %20 = arith.mulf %17, %17 : vector<1x256xf32>
    %21 = arith.subf %19, %20 : vector<1x256xf32>
    %cst_11 = arith.constant 0.000000e+00 : f32
    %22 = vector.broadcast %cst_11 : f32 to vector<1x256xf32>
    %23 = arith.maximumf %21, %22 : vector<1x256xf32>
    %24 = vector.broadcast %17 : vector<1x256xf32> to vector<256x256xf32>
    %25 = arith.subf %10, %24 : vector<256x256xf32>
    %cst_12 = arith.constant 9.99999974E-6 : f32
    %26 = vector.broadcast %cst_12 : f32 to vector<1x256xf32>
    %27 = arith.addf %23, %26 : vector<1x256xf32>
    %28 = math.rsqrt %27 : vector<1x256xf32>
    %29 = vector.broadcast %28 : vector<1x256xf32> to vector<256x256xf32>
    %30 = arith.mulf %25, %29 : vector<256x256xf32>
    %31 = vector.broadcast %2 : vector<1x256xf32> to vector<256x256xf32>
    %32 = arith.mulf %30, %31 : vector<256x256xf32>
    %33 = vector.broadcast %3 : vector<1x256xf32> to vector<256x256xf32>
    %34 = arith.addf %32, %33 : vector<256x256xf32>
    %cst_13 = arith.constant 0.000000e+00 : f32
    %35 = vector.broadcast %cst_13 : f32 to vector<256x256xf32>
    %36 = arith.maximumf %34, %35 : vector<256x256xf32>
    %c0_14 = arith.constant 0 : index
    %c256 = arith.constant 256 : index
    %37 = vector.load %arg5[%c0_14, %c256] : memref<3x640xf32, #tpu.memory_space<vmem>>, vector<1x128xf32>
    %c1_15 = arith.constant 1 : index
    %c256_16 = arith.constant 256 : index
    %38 = vector.load %arg5[%c1_15, %c256_16] : memref<3x640xf32, #tpu.memory_space<vmem>>, vector<1x128xf32>
    %c2_17 = arith.constant 2 : index
    %c256_18 = arith.constant 256 : index
    %39 = vector.load %arg5[%c2_17, %c256_18] : memref<3x640xf32, #tpu.memory_space<vmem>>, vector<1x128xf32>
    %c0_19 = arith.constant 0 : index
    %c0_20 = arith.constant 0 : index
    %40 = vector.load %arg2[%c0_19, %c0_20] : memref<256x128xf32, #tpu.memory_space<vmem>>, vector<256x128xf32>
    %cst_21 = arith.constant dense<0.000000e+00> : vector<256x128xf32>
    %41 = tpu.matmul %36, %40, %cst_21 {dimension_numbers = #tpu.dot_dimension_numbers<[1], [0], [0], [1], [0, 0, 1, 1], [], []>} : vector<256x256xf32>, vector<256x128xf32>, vector<256x128xf32> -> vector<256x128xf32>
    %42 = vector.broadcast %37 : vector<1x128xf32> to vector<256x128xf32>
    %43 = arith.addf %41, %42 : vector<256x128xf32>
    %44 = vector.extract_strided_slice %43 {offsets = [0, 0], sizes = [1, 128], strides = [1, 1]} : vector<256x128xf32> to vector<1x128xf32>
    %45 = vector.broadcast %44 : vector<1x128xf32> to vector<256x128xf32>
    %46 = arith.subf %43, %45 : vector<256x128xf32>
    %cst_22 = arith.constant dense<0.000000e+00> : vector<128xf32>
    %47 = vector.multi_reduction <add>, %46, %cst_22 [0] : vector<256x128xf32> to vector<128xf32>
    %48 = vector.shape_cast %47 : vector<128xf32> to vector<1x128xf32>
    %49 = arith.mulf %46, %46 : vector<256x128xf32>
    %cst_23 = arith.constant dense<0.000000e+00> : vector<128xf32>
    %50 = vector.multi_reduction <add>, %49, %cst_23 [0] : vector<256x128xf32> to vector<128xf32>
    %51 = vector.shape_cast %50 : vector<128xf32> to vector<1x128xf32>
    %cst_24 = arith.constant 3.906250e-03 : f32
    %52 = vector.broadcast %cst_24 : f32 to vector<1x128xf32>
    %53 = arith.mulf %48, %52 : vector<1x128xf32>
    %cst_25 = arith.constant 3.906250e-03 : f32
    %54 = vector.broadcast %cst_25 : f32 to vector<1x128xf32>
    %55 = arith.mulf %51, %54 : vector<1x128xf32>
    %56 = arith.mulf %53, %53 : vector<1x128xf32>
    %57 = arith.subf %55, %56 : vector<1x128xf32>
    %cst_26 = arith.constant 0.000000e+00 : f32
    %58 = vector.broadcast %cst_26 : f32 to vector<1x128xf32>
    %59 = arith.maximumf %57, %58 : vector<1x128xf32>
    %60 = vector.broadcast %53 : vector<1x128xf32> to vector<256x128xf32>
    %61 = arith.subf %46, %60 : vector<256x128xf32>
    %cst_27 = arith.constant 9.99999974E-6 : f32
    %62 = vector.broadcast %cst_27 : f32 to vector<1x128xf32>
    %63 = arith.addf %59, %62 : vector<1x128xf32>
    %64 = math.rsqrt %63 : vector<1x128xf32>
    %65 = vector.broadcast %64 : vector<1x128xf32> to vector<256x128xf32>
    %66 = arith.mulf %61, %65 : vector<256x128xf32>
    %67 = vector.broadcast %38 : vector<1x128xf32> to vector<256x128xf32>
    %68 = arith.mulf %66, %67 : vector<256x128xf32>
    %69 = vector.broadcast %39 : vector<1x128xf32> to vector<256x128xf32>
    %70 = arith.addf %68, %69 : vector<256x128xf32>
    %cst_28 = arith.constant 0.000000e+00 : f32
    %71 = vector.broadcast %cst_28 : f32 to vector<256x128xf32>
    %72 = arith.maximumf %70, %71 : vector<256x128xf32>
    %c0_29 = arith.constant 0 : index
    %c384 = arith.constant 384 : index
    %73 = vector.load %arg5[%c0_29, %c384] : memref<3x640xf32, #tpu.memory_space<vmem>>, vector<1x64xf32>
    %c1_30 = arith.constant 1 : index
    %c384_31 = arith.constant 384 : index
    %74 = vector.load %arg5[%c1_30, %c384_31] : memref<3x640xf32, #tpu.memory_space<vmem>>, vector<1x64xf32>
    %c2_32 = arith.constant 2 : index
    %c384_33 = arith.constant 384 : index
    %75 = vector.load %arg5[%c2_32, %c384_33] : memref<3x640xf32, #tpu.memory_space<vmem>>, vector<1x64xf32>
    %c0_34 = arith.constant 0 : index
    %c0_35 = arith.constant 0 : index
    %76 = vector.load %arg3[%c0_34, %c0_35] : memref<128x64xf32, #tpu.memory_space<vmem>>, vector<128x64xf32>
    %cst_36 = arith.constant dense<0.000000e+00> : vector<256x64xf32>
    %77 = tpu.matmul %72, %76, %cst_36 {dimension_numbers = #tpu.dot_dimension_numbers<[1], [0], [0], [1], [0, 0, 1, 1], [], []>} : vector<256x128xf32>, vector<128x64xf32>, vector<256x64xf32> -> vector<256x64xf32>
    %78 = vector.broadcast %73 : vector<1x64xf32> to vector<256x64xf32>
    %79 = arith.addf %77, %78 : vector<256x64xf32>
    %80 = vector.extract_strided_slice %79 {offsets = [0, 0], sizes = [1, 64], strides = [1, 1]} : vector<256x64xf32> to vector<1x64xf32>
    %81 = vector.broadcast %80 : vector<1x64xf32> to vector<256x64xf32>
    %82 = arith.subf %79, %81 : vector<256x64xf32>
    %cst_37 = arith.constant dense<0.000000e+00> : vector<64xf32>
    %83 = vector.multi_reduction <add>, %82, %cst_37 [0] : vector<256x64xf32> to vector<64xf32>
    %84 = vector.shape_cast %83 : vector<64xf32> to vector<1x64xf32>
    %85 = arith.mulf %82, %82 : vector<256x64xf32>
    %cst_38 = arith.constant dense<0.000000e+00> : vector<64xf32>
    %86 = vector.multi_reduction <add>, %85, %cst_38 [0] : vector<256x64xf32> to vector<64xf32>
    %87 = vector.shape_cast %86 : vector<64xf32> to vector<1x64xf32>
    %cst_39 = arith.constant 3.906250e-03 : f32
    %88 = vector.broadcast %cst_39 : f32 to vector<1x64xf32>
    %89 = arith.mulf %84, %88 : vector<1x64xf32>
    %cst_40 = arith.constant 3.906250e-03 : f32
    %90 = vector.broadcast %cst_40 : f32 to vector<1x64xf32>
    %91 = arith.mulf %87, %90 : vector<1x64xf32>
    %92 = arith.mulf %89, %89 : vector<1x64xf32>
    %93 = arith.subf %91, %92 : vector<1x64xf32>
    %cst_41 = arith.constant 0.000000e+00 : f32
    %94 = vector.broadcast %cst_41 : f32 to vector<1x64xf32>
    %95 = arith.maximumf %93, %94 : vector<1x64xf32>
    %96 = vector.broadcast %89 : vector<1x64xf32> to vector<256x64xf32>
    %97 = arith.subf %82, %96 : vector<256x64xf32>
    %cst_42 = arith.constant 9.99999974E-6 : f32
    %98 = vector.broadcast %cst_42 : f32 to vector<1x64xf32>
    %99 = arith.addf %95, %98 : vector<1x64xf32>
    %100 = math.rsqrt %99 : vector<1x64xf32>
    %101 = vector.broadcast %100 : vector<1x64xf32> to vector<256x64xf32>
    %102 = arith.mulf %97, %101 : vector<256x64xf32>
    %103 = vector.broadcast %74 : vector<1x64xf32> to vector<256x64xf32>
    %104 = arith.mulf %102, %103 : vector<256x64xf32>
    %105 = vector.broadcast %75 : vector<1x64xf32> to vector<256x64xf32>
    %106 = arith.addf %104, %105 : vector<256x64xf32>
    %cst_43 = arith.constant 0.000000e+00 : f32
    %107 = vector.broadcast %cst_43 : f32 to vector<256x64xf32>
    %108 = arith.maximumf %106, %107 : vector<256x64xf32>
    %c0_44 = arith.constant 0 : index
    %c0_45 = arith.constant 0 : index
    %109 = vector.load %arg4[%c0_44, %c0_45] : memref<64x128xf32, #tpu.memory_space<vmem>>, vector<64x128xf32>
    %cst_46 = arith.constant dense<0.000000e+00> : vector<256x128xf32>
    %110 = tpu.matmul %108, %109, %cst_46 {dimension_numbers = #tpu.dot_dimension_numbers<[1], [0], [0], [1], [0, 0, 1, 1], [], []>} : vector<256x64xf32>, vector<64x128xf32>, vector<256x128xf32> -> vector<256x128xf32>
    %c0_47 = arith.constant 0 : index
    %c512 = arith.constant 512 : index
    %111 = vector.load %arg5[%c0_47, %c512] : memref<3x640xf32, #tpu.memory_space<vmem>>, vector<1x128xf32>
    %112 = vector.broadcast %111 : vector<1x128xf32> to vector<256x128xf32>
    %113 = arith.addf %110, %112 : vector<256x128xf32>
    %c0_48 = arith.constant 0 : index
    %c0_49 = arith.constant 0 : index
    %114 = vector.load %arg6[%c0_48, %c0_49] : memref<256x128xf32, #tpu.memory_space<vmem>>, vector<256x128xf32>
    tpu.vector_store %arg6[%c0_48, %c0_49], %113 {strides = array<i32>} : memref<256x128xf32, #tpu.memory_space<vmem>>, vector<256x128xf32>,
    return
  }
}

</mosaic_0001>

<bundles_post_ra>
// kernel: tpu_custom_call.1
= control target key start
LH: loop header
LB: loop body
LE: loop exit
PB: predicated region body
PF: predicated region fallthrough
CT: control target
= control target key end

     0   :  { %v3022_v4 = vmov 0.0   ;;  %vm80_vm0 = vcmask 261120   ;;  %s5718_s0 = inlined_call_operand.vmem [shape: f32[256,32], index: 0, kind: input, shape index: {}]   ;;  %s5719_s1 = inlined_call_operand.vmem [shape: f32[32,256], index: 1, kind: input, shape index: {}]   ;;  %s5720_s2 = inlined_call_operand.vmem [shape: f32[256,128], index: 2, kind: input, shape index: {}]   ;;  %s5721_s3 = inlined_call_operand.vmem [shape: f32[128,64], index: 3, kind: input, shape index: {}]   ;;  %s5722_s4 = inlined_call_operand.vmem [shape: f32[64,128], index: 4, kind: input, shape index: {}]   ;;  %s5723_s5 = inlined_call_operand.vmem [shape: f32[3,640], index: 5, kind: input, shape index: {}]   ;;  %s5724_s6 = inlined_call_operand.hbm [shape: f32[256,128], index: 6, kind: output, shape index: {}]  }
   0x1   :  { %v68_v0 = vld [vmem:[%s5719_s1 + $0x38] sm:$0xff]  ;;  %v67_v1 = vld [vmem:[%s5719_s1 + $0x30] sm:$0xff]  ;;  %v66_v2 = vld [vmem:[%s5719_s1 + $0x28] sm:$0xff]  ;;  %241 = vmatprep.mubr.f32.mxu0 %v3022_v4  ;;  %1113 = vmatprep.subr.mxu1 %v3022_v4 }
   0x2   :  { %201 = vmatprep.subr.mxu0 %v68_v0  ;;  %v65_v3 = vld [vmem:[%s5719_s1 + $0x20] sm:$0xff]  ;;  %v64_v5 = vld [vmem:[%s5719_s1 + $0x18] sm:$0xff]  ;;  %v63_v6 = vld [vmem:[%s5719_s1 + $0x10] sm:$0xff] }
   0x3   :  { %202 = vmatpush1.msra.mxu0 %v67_v1  ;;  %v62_v7 = vld [vmem:[%s5719_s1 + $0x8] sm:$0xff]  ;;  %v61_v8 = vld [vmem:[%s5719_s1] sm:$0xff] }
   0x4   :  { %203 = vmatprep.subr.mxu0 %v66_v2  ;;  %v24_v9 = vld [vmem:[%s5718_s0] sm:$0xff]  ;;  %v25_v10 = vld [vmem:[%s5718_s0 + $0x8] sm:$0xff] }
   0x5   :  { %204 = vmatpush1.msra.mxu0 %v65_v3 }
   0x6   :  { %205 = vmatprep.subr.mxu0 %v64_v5 }
   0x7   :  { %206 = vmatpush1.msra.mxu0 %v63_v6 }
   0x8   :  { %207 = vmatprep.subr.mxu0 %v62_v7 }
   0x9   :  { %208 = vmatpush1.msra.mxu0 %v61_v8 }
   0xa   :  { %2669 = vmatmul.mubr.msk.f32.vlgmr.msra.gmra.mxu0 %vm80_vm0, %v24_v9 }
   0xb   :  { %247 = vmatprep.mubr.f32.mxu0 %v3022_v4 }
   0xe   :  { %2670 = vmatmul.mubr.msk.f32.gmra.mxu0 %vm80_vm0, %v25_v10 }
   0xf   :  { %11 = vsyncpa [#allocation3], 0  ;;  %253 = vmatprep.mubr.f32.mxu0 %v3022_v4  ;;  %v26_v11 = vld [vmem:[%s5718_s0 + $0x10] sm:$0xff]  ;;  %v27_v12 = vld [vmem:[%s5718_s0 + $0x18] sm:$0xff]  ;;  %v70_v3 = vlaneseq  ;;  %vm1939_vm1 = vcmask 523264  }
  0x10   :  { %v28_v13 = vld [vmem:[%s5718_s0 + $0x20] sm:$0xff]  ;;  %v29_v14 = vld [vmem:[%s5718_s0 + $0x28] sm:$0xff]  ;;  %v30_v15 = vld [vmem:[%s5718_s0 + $0x30] sm:$0xff] }
  0x11   :  { %v31_v16 = vld [vmem:[%s5718_s0 + $0x38] sm:$0xff]  ;;  %v32_v17 = vld [vmem:[%s5718_s0 + $0x40] sm:$0xff]  ;;  %v33_v18 = vld [vmem:[%s5718_s0 + $0x48] sm:$0xff]  ;;  %v71_v9 = vshrl.u32 %v70_v3, 7 }
  0x12   :  { %2671 = vmatmul.mubr.msk.f32.gmra.mxu0 %vm80_vm0, %v26_v11  ;;  %v34_v19 = vld [vmem:[%s5718_s0 + $0x50] sm:$0xff]  ;;  %v35_v20 = vld [vmem:[%s5718_s0 + $0x58] sm:$0xff]  ;;  %v36_v21 = vld [vmem:[%s5718_s0 + $0x60] sm:$0xff] }
  0x13   :  { %259 = vmatprep.mubr.f32.mxu0 %v3022_v4  ;;  %v37_v22 = vld [vmem:[%s5718_s0 + $0x68] sm:$0xff]  ;;  %v38_v23 = vld [vmem:[%s5718_s0 + $0x70] sm:$0xff]  ;;  %v39_v24 = vld [vmem:[%s5718_s0 + $0x78] sm:$0xff] }
  0x14   :  { %v40_v25 = vld [vmem:[%s5718_s0 + $0x80] sm:$0xff]  ;;  %v41_v26 = vld [vmem:[%s5718_s0 + $0x88] sm:$0xff]  ;;  %v42_v27 = vld [vmem:[%s5718_s0 + $0x90] sm:$0xff] }
  0x15   :  { %v43_v28 = vld [vmem:[%s5718_s0 + $0x98] sm:$0xff]  ;;  %v44_v29 = vld [vmem:[%s5718_s0 + $0xa0] sm:$0xff]  ;;  %v45_v30 = vld [vmem:[%s5718_s0 + $0xa8] sm:$0xff] }
  0x16   :  { %2672 = vmatmul.mubr.msk.f32.gmra.mxu0 %vm80_vm0, %v27_v12  ;;  %v46_v31 = vld [vmem:[%s5718_s0 + $0xb0] sm:$0xff]  ;;  %v47_v32 = vld [vmem:[%s5718_s0 + $0xb8] sm:$0xff]  ;;  %v48_v33 = vld [vmem:[%s5718_s0 + $0xc0] sm:$0xff] }
  0x17   :  { %265 = vmatprep.mubr.f32.mxu0 %v3022_v4  ;;  %v49_v34 = vld [vmem:[%s5718_s0 + $0xc8] sm:$0xff]  ;;  %v50_v35 = vld [vmem:[%s5718_s0 + $0xd0] sm:$0xff]  ;;  %v51_v36 = vld [vmem:[%s5718_s0 + $0xd8] sm:$0xff] }
  0x18   :  { %v52_v37 = vld [vmem:[%s5718_s0 + $0xe0] sm:$0xff]  ;;  %v53_v38 = vld [vmem:[%s5718_s0 + $0xe8] sm:$0xff]  ;;  %v54_v39 = vld [vmem:[%s5718_s0 + $0xf0] sm:$0xff] }
  0x19   :  { %v55_v40 = vld [vmem:[%s5718_s0 + $0xf8] sm:$0xff]  ;;  %v1091_v42 = vld [vmem:[%s5720_s2 + $0x70] sm:$0xff]  ;;  %v1090_v43 = vld [vmem:[%s5720_s2 + $0x68] sm:$0xff] }
  0x1a   :  { %2673 = vmatmul.mubr.msk.f32.gmra.mxu0 %vm80_vm0, %v28_v13  ;;  %v1092_v41 = vld [vmem:[%s5720_s2 + $0x78] sm:$0xff]  ;;  %v1089_v44 = vld [vmem:[%s5720_s2 + $0x60] sm:$0xff]  ;;  %v1087_v49 = vld [vmem:[%s5720_s2 + $0x50] sm:$0xff] }
  0x1b   :  { %271 = vmatprep.mubr.f32.mxu0 %v3022_v4  ;;  %1114 = vmatpush1.msra.mxu1 %v1092_v41  ;;  %v1088_v45 = vld [vmem:[%s5720_s2 + $0x58] sm:$0xff]  ;;  %v1086_v56 = vld [vmem:[%s5720_s2 + $0x48] sm:$0xff]  ;;  %v1085_v58 = vld [vmem:[%s5720_s2 + $0x40] sm:$0xff] }
  0x1c   :  { %1115 = vmatprep.subr.mxu1 %v3022_v4  ;;  %v1084_v60 = vld [vmem:[%s5720_s2 + $0x38] sm:$0xff]  ;;  %v1083_v62 = vld [vmem:[%s5720_s2 + $0x30] sm:$0xff]  ;;  %v1082_v0 = vld [vmem:[%s5720_s2 + $0x28] sm:$0xff] }
  0x1d   :  { %1116 = vmatpush1.msra.mxu1 %v1091_v42  ;;  %v1081_v2 = vld [vmem:[%s5720_s2 + $0x20] sm:$0xff]  ;;  %v1080_v6 = vld [vmem:[%s5720_s2 + $0x18] sm:$0xff]  ;;  %v1079_v8 = vld [vmem:[%s5720_s2 + $0x10] sm:$0xff] }
  0x1e   :  { %2674 = vmatmul.mubr.msk.f32.gmra.mxu0 %vm80_vm0, %v29_v14  ;;  %1117 = vmatprep.subr.mxu1 %v3022_v4  ;;  %v1078_v11 = vld [vmem:[%s5720_s2 + $0x8] sm:$0xff]  ;;  %v1077_v13 = vld [vmem:[%s5720_s2] sm:$0xff]  ;;  %v3345_v14 = vsub.s32 0, %v71_v9 }
  0x1f   :  { %277 = vmatprep.mubr.f32.mxu0 %v3022_v4  ;;  %1118 = vmatpush1.msra.mxu1 %v1090_v43 }
  0x20   :  { %1119 = vmatprep.subr.mxu1 %v3022_v4  ;;  %5785 = vst [vmem:[#allocation5_spill] sm:$0xff] %v3345_v14 }
  0x21   :  { %1120 = vmatpush1.msra.mxu1 %v1089_v44 }
  0x22   :  { %2675 = vmatmul.mubr.msk.f32.gmra.mxu0 %vm80_vm0, %v30_v15  ;;  %1121 = vmatprep.subr.mxu1 %v3022_v4  ;;  %v56_v15 = vld [vmem:[%s5723_s5] ss:$4 sm:$0x3] }
  0x23   :  { %283 = vmatprep.mubr.f32.mxu0 %v3022_v4  ;;  %1122 = vmatpush1.msra.mxu1 %v1088_v45  ;;  %v1100_v45 = vld [vmem:[%s5720_s2 + $0xb8] sm:$0xff] }
  0x24   :  { %1123 = vmatprep.subr.mxu1 %v3022_v4 }
  0x25   :  { %1124 = vmatpush1.msra.mxu1 %v1087_v49 }
  0x26   :  { %2676 = vmatmul.mubr.msk.f32.gmra.mxu0 %vm80_vm0, %v31_v16  ;;  %1125 = vmatprep.subr.mxu1 %v3022_v4  ;;  %v3350_v16 = vsub.s32 1, %v71_v9 }
  0x27   :  { %289 = vmatprep.mubr.f32.mxu0 %v3022_v4  ;;  %1126 = vmatpush1.msra.mxu1 %v1086_v56 }
  0x28   :  { %1127 = vmatprep.subr.mxu1 %v3022_v4 }
  0x29   :  { %1128 = vmatpush1.msra.mxu1 %v1085_v58 }
  0x2a   :  { %2677 = vmatmul.mubr.msk.f32.gmra.mxu0 %vm80_vm0, %v32_v17  ;;  %1129 = vmatprep.subr.mxu1 %v3022_v4 }
  0x2b   :  { %295 = vmatprep.mubr.f32.mxu0 %v3022_v4  ;;  %1130 = vmatpush1.msra.mxu1 %v1084_v60 }
  0x2c   :  { %1131 = vmatprep.subr.mxu1 %v3022_v4 }
  0x2d   :  { %1132 = vmatpush1.msra.mxu1 %v1083_v62 }
  0x2e   :  { %2678 = vmatmul.mubr.msk.f32.gmra.mxu0 %vm80_vm0, %v33_v18  ;;  %1133 = vmatprep.subr.mxu1 %v3022_v4  ;;  %v1108_v18 = vld [vmem:[%s5720_s2 + $0xf8] sm:$0xff] }
  0x2f   :  { %301 = vmatprep.mubr.f32.mxu0 %v3022_v4  ;;  %1134 = vmatpush1.msra.mxu1 %v1082_v0  ;;  %v1098_v0 = vld [vmem:[%s5720_s2 + $0xa8] sm:$0xff] }
  0x30   :  { %1135 = vmatprep.subr.mxu1 %v3022_v4 }
  0x31   :  { %1136 = vmatpush1.msra.mxu1 %v1081_v2 }
  0x32   :  { %2679 = vmatmul.mubr.msk.f32.gmra.mxu0 %vm80_vm0, %v34_v19  ;;  %1137 = vmatprep.subr.mxu1 %v3022_v4  ;;  %v1107_v19 = vld [vmem:[%s5720_s2 + $0xf0] sm:$0xff] }
  0x33   :  { %307 = vmatprep.mubr.f32.mxu0 %v3022_v4  ;;  %1138 = vmatpush1.msra.mxu1 %v1080_v6 }
  0x34   :  { %1139 = vmatprep.subr.mxu1 %v3022_v4 }
  0x35   :  { %1140 = vmatpush1.msra.mxu1 %v1079_v8 }
  0x36   :  { %2680 = vmatmul.mubr.msk.f32.gmra.mxu0 %vm80_vm0, %v35_v20  ;;  %1141 = vmatprep.subr.mxu1 %v3022_v4 }
  0x37   :  { %313 = vmatprep.mubr.f32.mxu0 %v3022_v4  ;;  %1142 = vmatpush1.msra.mxu1 %v1078_v11 }
  0x38   :  { %1143 = vmatprep.subr.mxu1 %v3022_v4 }
  0x39   :  { %1144 = vmatpush1.msra.mxu1 %v1077_v13 }
  0x3a   :  { %2681 = vmatmul.mubr.msk.f32.gmra.mxu0 %vm80_vm0, %v36_v21  ;;  %1145 = vmatprep.subr.mxu1 %v3022_v4  ;;  %v1106_v21 = vld [vmem:[%s5720_s2 + $0xe8] sm:$0xff] }
  0x3b   :  { %319 = vmatprep.mubr.f32.mxu0 %v3022_v4  ;;  %1146 = vmatpush2.msra.mxu1 %v1108_v18 }
  0x3c   :  { %1147 = vmatprep.subr.mxu1 %v3022_v4 }
  0x3d   :  { %1148 = vmatpush2.msra.mxu1 %v1107_v19 }
  0x3e   :  { %2682 = vmatmul.mubr.msk.f32.gmra.mxu0 %vm80_vm0, %v37_v22  ;;  %v3368_v22 = vrot.slane %v56_v15, %v3345_v14  ;;  %1149 = vmatprep.subr.mxu1 %v3022_v4 }
  0x3f   :  { %325 = vmatprep.mubr.f32.mxu0 %v3022_v4  ;;  %1150 = vmatpush2.msra.mxu1 %v1106_v21 }
  0x40   :  { %1151 = vmatprep.subr.mxu1 %v3022_v4 }
  0x42   :  { %2683 = vmatmul.mubr.msk.f32.gmra.mxu0 %vm80_vm0, %v38_v23  ;;  %v3371_v23 = vrot.slane %v56_v15, %v3350_v16 }
  0x43   :  { %331 = vmatprep.mubr.f32.mxu0 %v3022_v4 }
  0x46   :  { %2684 = vmatmul.mubr.msk.f32.gmra.mxu0 %vm80_vm0, %v39_v24 }
  0x47   :  { %337 = vmatprep.mubr.f32.mxu0 %v3022_v4 }
  0x4a   :  { %2685 = vmatmul.mubr.msk.f32.gmra.mxu0 %vm80_vm0, %v40_v25  ;;  %v1105_v25 = vld [vmem:[%s5720_s2 + $0xe0] sm:$0xff] }
  0x4b   :  { %343 = vmatprep.mubr.f32.mxu0 %v3022_v4  ;;  %1152 = vmatpush2.msra.mxu1 %v1105_v25 }
  0x4c   :  { %1153 = vmatprep.subr.mxu1 %v3022_v4 }
  0x4e   :  { %2686 = vmatmul.mubr.msk.f32.gmra.mxu0 %vm80_vm0, %v41_v26 }
  0x4f   :  { %349 = vmatprep.mubr.f32.mxu0 %v3022_v4 }
  0x52   :  { %2687 = vmatmul.mubr.msk.f32.gmra.mxu0 %vm80_vm0, %v42_v27  ;;  %v1104_v27 = vld [vmem:[%s5720_s2 + $0xd8] sm:$0xff] }
  0x53   :  { %355 = vmatprep.mubr.f32.mxu0 %v3022_v4  ;;  %1154 = vmatpush2.msra.mxu1 %v1104_v27 }
  0x54   :  { %1155 = vmatprep.subr.mxu1 %v3022_v4 }
  0x56   :  { %2688 = vmatmul.mubr.msk.f32.gmra.mxu0 %vm80_vm0, %v43_v28 }
  0x57   :  { %361 = vmatprep.mubr.f32.mxu0 %v3022_v4 }
  0x5a   :  { %2689 = vmatmul.mubr.msk.f32.gmra.mxu0 %vm80_vm0, %v44_v29 }
  0x5b   :  { %367 = vmatprep.mubr.f32.mxu0 %v3022_v4 }
  0x5e   :  { %2690 = vmatmul.mubr.msk.f32.gmra.mxu0 %vm80_vm0, %v45_v30 }
  0x5f   :  { %373 = vmatprep.mubr.f32.mxu0 %v3022_v4 }
  0x62   :  { %2691 = vmatmul.mubr.msk.f32.gmra.mxu0 %vm80_vm0, %v46_v31  ;;  %v1103_v31 = vld [vmem:[%s5720_s2 + $0xd0] sm:$0xff] }
  0x63   :  { %379 = vmatprep.mubr.f32.mxu0 %v3022_v4  ;;  %1156 = vmatpush2.msra.mxu1 %v1103_v31 }
  0x64   :  { %1157 = vmatprep.subr.mxu1 %v3022_v4 }
  0x66   :  { %2692 = vmatmul.mubr.msk.f32.gmra.mxu0 %vm80_vm0, %v47_v32 }
  0x67   :  { %385 = vmatprep.mubr.f32.mxu0 %v3022_v4 }
  0x6a   :  { %2693 = vmatmul.mubr.msk.f32.gmra.mxu0 %vm80_vm0, %v48_v33 }
  0x6b   :  { %391 = vmatprep.mubr.f32.mxu0 %v3022_v4 }
  0x6e   :  { %2694 = vmatmul.mubr.msk.f32.gmra.mxu0 %vm80_vm0, %v49_v34  ;;  %v1102_v34 = vld [vmem:[%s5720_s2 + $0xc8] sm:$0xff] }
  0x6f   :  { %397 = vmatprep.mubr.f32.mxu0 %v3022_v4  ;;  %1158 = vmatpush2.msra.mxu1 %v1102_v34 }
  0x70   :  { %1159 = vmatprep.subr.mxu1 %v3022_v4 }
  0x72   :  { %2695 = vmatmul.mubr.msk.f32.gmra.mxu0 %vm80_vm0, %v50_v35 }
  0x73   :  { %403 = vmatprep.mubr.f32.mxu0 %v3022_v4 }
  0x76   :  { %2696 = vmatmul.mubr.msk.f32.gmra.mxu0 %vm80_vm0, %v51_v36 }
  0x77   :  { %409 = vmatprep.mubr.f32.mxu0 %v3022_v4 }
  0x7a   :  { %2697 = vmatmul.mubr.msk.f32.gmra.mxu0 %vm80_vm0, %v52_v37 }
  0x7b   :  { %415 = vmatprep.mubr.f32.mxu0 %v3022_v4 }
  0x7e   :  { %2698 = vmatmul.mubr.msk.f32.gmra.mxu0 %vm80_vm0, %v53_v38 }
  0x7f   :  { %421 = vmatprep.mubr.f32.mxu0 %v3022_v4 }
  0x82   :  { %2699 = vmatmul.mubr.msk.f32.gmra.mxu0 %vm80_vm0, %v54_v39 }
  0x83   :  { %427 = vmatprep.mubr.f32.mxu0 %v3022_v4 }
  0x86   :  { %2700 = vmatmul.mubr.msk.f32.gmra.mxu0 %vm80_vm0, %v55_v40  ;;  %v1101_v40 = vld [vmem:[%s5720_s2 + $0xc0] sm:$0xff] }
  0x87   :  { %1160 = vmatpush2.msra.mxu1 %v1101_v40 }
  0x88   :  { %1161 = vmatprep.subr.mxu1 %v3022_v4 }
  0x89   :  { %1162 = vmatpush2.msra.mxu1 %v1100_v45  ;;  %v1095_v45 = vld [vmem:[%s5720_s2 + $0x90] sm:$0xff] }
  0x8a   :  { %1163 = vmatprep.subr.mxu1 %v3022_v4 }
  0xca   :  { %v3266_v46 = vpop.f32.mrf.mxu0 }
  0xcb   :  { %v244_v28 = vadd.f32 %v3266_v46, %v3368_v22 }
  0xcc   :  { %v3268_v47 = vpop.f32.mrf.mxu0 }
  0xcd   :  { %v246_v29 = vadd.f32 %v3268_v47, %v3371_v23  ;;  %v3404_v35 = vrot.slane %v244_v28, %v3345_v14 }
  0xce   :  { %v3270_v48 = vpop.f32.mrf.mxu0 }
  0xcf   :  { %v250_v32 = vadd.f32 %v3270_v48, %v3368_v22  ;;  %v3409_v37 = vrot.slane %v246_v29, %v3345_v14  ;;  %v3433_v46 = vsub.f32 %v244_v28, %v3404_v35 }
  0xd0   :  { %v3275_v50 = vpop.f32.mrf.mxu0 }
  0xd1   :  { %v252_v36 = vadd.f32 %v3275_v50, %v3371_v23  ;;  %v3420_v41 = vsub.f32 %v250_v32, %v3404_v35  ;;  %v3439_v48 = vsub.f32 %v246_v29, %v3409_v37  ;;  %v580_v2 = vmul.f32 %v3433_v46, %v3433_v46 }
  0xd2   :  { %v3278_v51 = vpop.f32.mrf.mxu0 }
  0xd3   :  { %v256_v38 = vadd.f32 %v3278_v51, %v3368_v22  ;;  %v3436_v47 = vsub.f32 %v252_v36, %v3409_v37  ;;  %5787 = vst [vmem:[#allocation7_spill] sm:$0xff] %v3439_v48  ;;  %v506_v6 = vadd.f32 %v3420_v41, %v3433_v46 }
  0xd4   :  { %v3280_v52 = vpop.f32.mrf.mxu0 }
  0xd5   :  { %v258_v42 = vadd.f32 %v3280_v52, %v3371_v23  ;;  %5786 = vst [vmem:[#allocation6_spill] sm:$0xff] %v3436_v47  ;;  %v3442_v49 = vsub.f32 %v256_v38, %v3404_v35  ;;  %v1099_v52 = vld [vmem:[%s5720_s2 + $0xb0] sm:$0xff]  ;;  %v543_v21 = vadd.f32 %v3436_v47, %v3439_v48 }
  0xd6   :  { %v3282_v53 = vpop.f32.mrf.mxu0  ;;  %1164 = vmatpush2.msra.mxu1 %v1099_v52 }
  0xd7   :  { %v262_v43 = vadd.f32 %v3282_v53, %v3368_v22  ;;  %v582_v53 = vmul.f32 %v3420_v41, %v3420_v41  ;;  %v3455_v56 = vsub.f32 %v258_v42, %v3409_v37  ;;  %v584_v8 = vmul.f32 %v3442_v49, %v3442_v49  ;;  %1165 = vmatprep.subr.mxu1 %v3022_v4 }
  0xd8   :  { %v3284_v54 = vpop.f32.mrf.mxu0  ;;  %1166 = vmatpush2.msra.mxu1 %v1098_v0  ;;  %v507_v32 = vadd.f32 %v506_v6, %v3442_v49 }
  0xd9   :  { %v264_v50 = vadd.f32 %v3284_v54, %v3371_v23  ;;  %5788 = vst [vmem:[#allocation8_spill] sm:$0xff] %v3455_v56  ;;  %v3460_v54 = vsub.f32 %v262_v43, %v3404_v35  ;;  %v644_v13 = vadd.f32 %v582_v53, %v580_v2  ;;  %v585_v15 = vmul.f32 %v3455_v56, %v3455_v56 }
  0xda   :  { %v3286_v55 = vpop.f32.mrf.mxu0  ;;  %1167 = vmatprep.subr.mxu1 %v3022_v4 }
  0xdb   :  { %v268_v58 = vadd.f32 %v3286_v55, %v3368_v22  ;;  %v583_v55 = vmul.f32 %v3436_v47, %v3436_v47  ;;  %v3483_v9 = vsub.f32 %v264_v50, %v3409_v37  ;;  %v586_v25 = vmul.f32 %v3460_v54, %v3460_v54 }
  0xdc   :  { %v3291_v57 = vpop.f32.mrf.mxu0  ;;  %v645_v38 = vadd.f32 %v644_v13, %v584_v8 }
  0xdd   :  { %v270_v60 = vadd.f32 %v3291_v57, %v3371_v23  ;;  %v581_v57 = vmul.f32 %v3439_v48, %v3439_v48  ;;  %5789 = vst [vmem:[#allocation9_spill] sm:$0xff] %v3483_v9  ;;  %v3494_v18 = vsub.f32 %v268_v58, %v3404_v35  ;;  %v587_v40 = vmul.f32 %v3483_v9, %v3483_v9 }
  0xde   :  { %v3297_v59 = vpop.f32.mrf.mxu0  ;;  %v646_v58 = vadd.f32 %v645_v38, %v586_v25 }
  0xdf   :  { %v274_v3 = vadd.f32 %v3297_v59, %v3368_v22  ;;  %v1097_v59 = vld [vmem:[%s5720_s2 + $0xa0] sm:$0xff]  ;;  %v3503_v27 = vsub.f32 %v270_v60, %v3409_v37  ;;  %v681_v31 = vadd.f32 %v583_v55, %v581_v57  ;;  %v588_v52 = vmul.f32 %v3494_v18, %v3494_v18  ;;  %v1094_v55 = vld [vmem:[%s5720_s2 + $0x88] sm:$0xff] }
  0xe0   :  { %v3303_v61 = vpop.f32.mrf.mxu0  ;;  %1168 = vmatpush2.msra.mxu1 %v1097_v59 }
  0xe1   :  { %v276_v19 = vadd.f32 %v3303_v61, %v3371_v23  ;;  %5790 = vst [vmem:[#allocation10_spill] sm:$0xff] %v3503_v27  ;;  %v1096_v61 = vld [vmem:[%s5720_s2 + $0x98] sm:$0xff]  ;;  %v3515_v34 = vsub.f32 %v274_v3, %v3404_v35  ;;  %1169 = vmatprep.subr.mxu1 %v3022_v4  ;;  %v682_v50 = vadd.f32 %v681_v31, %v585_v15 }
  0xe2   :  { %v3309_v63 = vpop.f32.mrf.mxu0  ;;  %1170 = vmatpush2.msra.mxu1 %v1096_v61  ;;  %v647_v25 = vadd.f32 %v646_v58, %v588_v52 }
  0xe3   :  { %v280_v28 = vadd.f32 %v3309_v63, %v3368_v22  ;;  %v544_v63 = vadd.f32 %v543_v21, %v3455_v56  ;;  %v3534_v53 = vsub.f32 %v276_v19, %v3409_v37  ;;  %1171 = vmatprep.subr.mxu1 %v3022_v4  ;;  %v590_v57 = vmul.f32 %v3515_v34, %v3515_v34  ;;  %v1093_v21 = vld [vmem:[%s5720_s2 + $0x80] sm:$0xff] }
  0xe4   :  { %v3315_v1 = vpop.f32.mrf.mxu0  ;;  %1172 = vmatpush2.msra.mxu1 %v1095_v45 }
  0xe5   :  { %v282_v36 = vadd.f32 %v3315_v1, %v3371_v23  ;;  %v508_v1 = vadd.f32 %v507_v32, %v3460_v54  ;;  %5791 = vst [vmem:[#allocation11_spill] sm:$0xff] %v3534_v53  ;;  %v3539_v60 = vsub.f32 %v280_v28, %v3404_v35  ;;  %v545_v3 = vadd.f32 %v544_v63, %v3483_v9 }
  0xe6   :  { %v3321_v5 = vpop.f32.mrf.mxu0  ;;  %1173 = vmatprep.subr.mxu1 %v3022_v4  ;;  %v591_v28 = vmul.f32 %v3534_v53, %v3534_v53  ;;  %v648_v63 = vadd.f32 %v647_v25, %v590_v57 }
  0xe7   :  { %v286_v42 = vadd.f32 %v3321_v5, %v3368_v22  ;;  %v589_v5 = vmul.f32 %v3503_v27, %v3503_v27  ;;  %v3553_v6 = vsub.f32 %v282_v36, %v3409_v37  ;;  %v509_v59 = vadd.f32 %v508_v1, %v3494_v18  ;;  %1174 = vmatpush2.msra.mxu1 %v1094_v55 }
  0xe8   :  { %v3327_v7 = vpop.f32.mrf.mxu0  ;;  %v592_v32 = vmul.f32 %v3539_v60, %v3539_v60  ;;  %1175 = vmatprep.subr.mxu1 %v3022_v4 }
  0xe9   :  { %v288_v0 = vadd.f32 %v3327_v7, %v3371_v23  ;;  %5792 = vst [vmem:[#allocation12_spill] sm:$0xff] %v3553_v6  ;;  %v683_v7 = vadd.f32 %v682_v50, %v587_v40  ;;  %v3559_v13 = vsub.f32 %v286_v42, %v3404_v35  ;;  %v593_v40 = vmul.f32 %v3553_v6, %v3553_v6 }
  0xea   :  { %v3333_v10 = vpop.f32.mrf.mxu0  ;;  %1176 = vmatpush2.msra.mxu1 %v1093_v21  ;;  %v649_v55 = vadd.f32 %v648_v63, %v592_v32 }
  0xeb   :  { %v292_v8 = vadd.f32 %v3333_v10, %v3368_v22  ;;  %v546_v10 = vadd.f32 %v545_v3, %v3503_v27  ;;  %v684_v31 = vadd.f32 %v683_v7, %v589_v5  ;;  %v3578_v36 = vsub.f32 %v288_v0, %v3409_v37 }
  0xec   :  { %v3339_v12 = vpop.f32.mrf.mxu0  ;;  %v594_v50 = vmul.f32 %v3559_v13, %v3559_v13 }
  0xed   :  { %v294_v15 = vadd.f32 %v3339_v12, %v3371_v23  ;;  %v510_v12 = vadd.f32 %v509_v59, %v3515_v34  ;;  %5793 = vst [vmem:[#allocation13_spill] sm:$0xff] %v3578_v36  ;;  %v547_v45 = vadd.f32 %v546_v10, %v3534_v53  ;;  %v685_v58 = vadd.f32 %v684_v31, %v591_v28 }
  0xee   :  { %v3352_v17 = vpop.f32.mrf.mxu0  ;;  %v595_v57 = vmul.f32 %v3578_v36, %v3578_v36 }
  0xef   :  { %v298_v61 = vadd.f32 %v3352_v17, %v3368_v22  ;;  %v3586_v17 = vsub.f32 %v292_v8, %v3404_v35  ;;  %v3594_v1 = vsub.f32 %v294_v15, %v3409_v37  ;;  %v511_v5 = vadd.f32 %v510_v12, %v3539_v60 }
  0xf0   :  { %v3361_v20 = vpop.f32.mrf.mxu0  ;;  %v548_v3 = vadd.f32 %v547_v45, %v3553_v6  ;;  %v686_v7 = vadd.f32 %v685_v58, %v593_v40 }
  0xf1   :  { %v300_v42 = vadd.f32 %v3361_v20, %v3371_v23  ;;  %5794 = vst [vmem:[#allocation14_spill] sm:$0xff] %v3594_v1  ;;  %v3602_v0 = vsub.f32 %v298_v61, %v3404_v35  ;;  %v512_v59 = vadd.f32 %v511_v5, %v3559_v13  ;;  %v596_v15 = vmul.f32 %v3586_v17, %v3586_v17 }
  0xf2   :  { %v3373_v24 = vpop.f32.mrf.mxu0  ;;  %v597_v25 = vmul.f32 %v3594_v1, %v3594_v1  ;;  %v549_v61 = vadd.f32 %v548_v3, %v3578_v36  ;;  %v687_v63 = vadd.f32 %v686_v7, %v595_v57 }
  0xf3   :  { %v304_v4 = vadd.f32 %v3373_v24, %v3368_v22  ;;  %v3617_v21 = vsub.f32 %v300_v42, %v3409_v37  ;;  %v598_v31 = vmul.f32 %v3602_v0, %v3602_v0  ;;  %v513_v40 = vadd.f32 %v512_v59, %v3586_v17 }
  0xf4   :  { %v3379_v26 = vpop.f32.mrf.mxu0  ;;  %v688_v5 = vadd.f32 %v687_v63, %v597_v25 }
  0xf5   :  { %v306_v20 = vadd.f32 %v3379_v26, %v3371_v23  ;;  %5795 = vst [vmem:[#allocation15_spill] sm:$0xff] %v3617_v21  ;;  %v650_v26 = vadd.f32 %v649_v55, %v594_v50  ;;  %v3622_v10 = vsub.f32 %v304_v4, %v3404_v35  ;;  %v550_v4 = vadd.f32 %v549_v61, %v3594_v1 }
  0xf6   :  { %v3389_v30 = vpop.f32.mrf.mxu0  ;;  %v599_v58 = vmul.f32 %v3617_v21, %v3617_v21 }
  0xf7   :  { %v310_v24 = vadd.f32 %v3389_v30, %v3368_v22  ;;  %v3632_v12 = vsub.f32 %v306_v20, %v3409_v37  ;;  %v651_v50 = vadd.f32 %v650_v26, %v596_v15  ;;  %v514_v20 = vadd.f32 %v513_v40, %v3602_v0 }
  0xf8   :  { %v3397_v33 = vpop.f32.mrf.mxu0  ;;  %v600_v55 = vmul.f32 %v3622_v10, %v3622_v10  ;;  %v551_v59 = vadd.f32 %v550_v4, %v3617_v21  ;;  %v689_v61 = vadd.f32 %v688_v5, %v599_v58 }
  0xf9   :  { %v312_v30 = vadd.f32 %v3397_v33, %v3371_v23  ;;  %5796 = vst [vmem:[#allocation16_spill] sm:$0xff] %v3632_v12  ;;  %v3638_v42 = vsub.f32 %v310_v24, %v3404_v35  ;;  %v652_v57 = vadd.f32 %v651_v50, %v598_v31  ;;  %v601_v24 = vmul.f32 %v3632_v12, %v3632_v12 }
  0xfa   :  { %v3413_v39 = vpop.f32.mrf.mxu0  ;;  %v515_v31 = vadd.f32 %v514_v20, %v3622_v10  ;;  %v552_v40 = vadd.f32 %v551_v59, %v3632_v12 }
  0xfb   :  { %v316_v32 = vadd.f32 %v3413_v39, %v3368_v22  ;;  %v3653_v3 = vsub.f32 %v312_v30, %v3409_v37  ;;  %v602_v15 = vmul.f32 %v3638_v42, %v3638_v42  ;;  %v653_v63 = vadd.f32 %v652_v57, %v600_v55 }
  0xfc   :  { %v3426_v44 = vpop.f32.mrf.mxu0  ;;  %v690_v4 = vadd.f32 %v689_v61, %v601_v24  ;;  %v516_v58 = vadd.f32 %v515_v31, %v3638_v42 }
  0xfd   :  { %v318_v33 = vadd.f32 %v3426_v44, %v3371_v23  ;;  %5797 = vst [vmem:[#allocation17_spill] sm:$0xff] %v3653_v3  ;;  %v3658_v7 = vsub.f32 %v316_v32, %v3404_v35  ;;  %v553_v24 = vadd.f32 %v552_v40, %v3653_v3 }
  0xfe   :  { %v3446_v51 = vpop.f32.mrf.mxu0 }
  0xff   :  { %v322_v39 = vadd.f32 %v3446_v51, %v3368_v22  ;;  %v3666_v26 = vsub.f32 %v318_v33, %v3409_v37  ;;  %v603_v33 = vmul.f32 %v3653_v3, %v3653_v3  ;;  %v517_v31 = vadd.f32 %v516_v58, %v3658_v7 }
 0x100   :  { %v3464_v62 = vpop.f32.mrf.mxu0 }
 0x101   :  { %v324_v51 = vadd.f32 %v3464_v62, %v3371_v23  ;;  %5798 = vst [vmem:[#allocation18_spill] sm:$0xff] %v3666_v26  ;;  %v3672_v32 = vsub.f32 %v322_v39, %v3404_v35  ;;  %v604_v39 = vmul.f32 %v3658_v7, %v3658_v7  ;;  %v605_v20 = vmul.f32 %v3666_v26, %v3666_v26 }
 0x102   :  { %v3485_v11 = vpop.f32.mrf.mxu0  ;;  %v554_v3 = vadd.f32 %v553_v24, %v3666_v26 }
 0x103   :  { %v328_v25 = vadd.f32 %v3485_v11, %v3368_v22  ;;  %v3685_v5 = vsub.f32 %v324_v51, %v3409_v37  ;;  %v606_v59 = vmul.f32 %v3672_v32, %v3672_v32 }
 0x104   :  { %v3507_v29 = vpop.f32.mrf.mxu0 }
 0x105   :  { %v330_v62 = vadd.f32 %v3507_v29, %v3371_v23  ;;  %5799 = vst [vmem:[#allocation19_spill] sm:$0xff] %v3685_v5  ;;  %v654_v29 = vadd.f32 %v653_v63, %v602_v15  ;;  %v3690_v55 = vsub.f32 %v328_v25, %v3404_v35  ;;  %v691_v15 = vadd.f32 %v690_v4, %v603_v33 }
 0x106   :  { %v3524_v43 = vpop.f32.mrf.mxu0  ;;  %v518_v33 = vadd.f32 %v517_v31, %v3672_v32 }
 0x107   :  { %v334_v50 = vadd.f32 %v3524_v43, %v3368_v22  ;;  %v3698_v61 = vsub.f32 %v330_v62, %v3409_v37  ;;  %v655_v40 = vadd.f32 %v654_v29, %v604_v39  ;;  %v607_v62 = vmul.f32 %v3685_v5, %v3685_v5 }
 0x108   :  { %v3543_v2 = vpop.f32.mrf.mxu0 }
 0x109   :  { %v336_v43 = vadd.f32 %v3543_v2, %v3371_v23  ;;  %5800 = vst [vmem:[#allocation20_spill] sm:$0xff] %v3698_v61  ;;  %v3704_v25 = vsub.f32 %v334_v50, %v3404_v35  ;;  %v608_v50 = vmul.f32 %v3690_v55, %v3690_v55  ;;  %v656_v58 = vadd.f32 %v655_v40, %v606_v59 }
 0x10a   :  { %v3563_v19 = vpop.f32.mrf.mxu0  ;;  %v609_v39 = vmul.f32 %v3698_v61, %v3698_v61  ;;  %v519_v40 = vadd.f32 %v518_v33, %v3690_v55 }
 0x10b   :  { %v340_v51 = vadd.f32 %v3563_v19, %v3368_v22  ;;  %v692_v19 = vadd.f32 %v691_v15, %v605_v20  ;;  %v3717_v4 = vsub.f32 %v336_v43, %v3409_v37  ;;  %v555_v20 = vadd.f32 %v554_v3, %v3685_v5 }
 0x10c   :  { %v3580_v38 = vpop.f32.mrf.mxu0  ;;  %v610_v24 = vmul.f32 %v3704_v25, %v3704_v25  ;;  %v657_v3 = vadd.f32 %v656_v58, %v608_v50 }
 0x10d   :  { %v342_v2 = vadd.f32 %v3580_v38, %v3371_v23  ;;  %5801 = vst [vmem:[#allocation21_spill] sm:$0xff] %v3717_v4  ;;  %v3722_v29 = vsub.f32 %v340_v51, %v3404_v35  ;;  %v693_v31 = vadd.f32 %v692_v19, %v607_v62  ;;  %v556_v5 = vadd.f32 %v555_v20, %v3698_v61 }
 0x10e   :  { %v3598_v52 = vpop.f32.mrf.mxu0  ;;  %v658_v33 = vadd.f32 %v657_v3, %v610_v24 }
 0x10f   :  { %v346_v12 = vadd.f32 %v3598_v52, %v3368_v22  ;;  %5802 = vst [vmem:[#allocation22_spill] sm:$0xff] %v3722_v29  ;;  %v3730_v15 = vsub.f32 %v342_v2, %v3409_v37  ;;  %v611_v2 = vmul.f32 %v3717_v4, %v3717_v4  ;;  %v612_v62 = vmul.f32 %v3722_v29, %v3722_v29 }
 0x110   :  { %v3611_v8 = vpop.f32.mrf.mxu0 }
 0x111   :  { %v348_v52 = vadd.f32 %v3611_v8, %v3371_v23  ;;  %5803 = vst [vmem:[#allocation23_spill] sm:$0xff] %v3730_v15  ;;  %v3736_v51 = vsub.f32 %v346_v12, %v3404_v35  ;;  %v613_v50 = vmul.f32 %v3730_v15, %v3730_v15  ;;  %v659_v61 = vadd.f32 %v658_v33, %v612_v62 }
 0x112   :  { %v3626_v28 = vpop.f32.mrf.mxu0 }
 0x113   :  { %v352_v43 = vadd.f32 %v3626_v28, %v3368_v22  ;;  %5804 = vst [vmem:[#allocation24_spill] sm:$0xff] %v3736_v51  ;;  %v694_v28 = vadd.f32 %v693_v31, %v609_v39  ;;  %v3747_v19 = vsub.f32 %v348_v52, %v3409_v37  ;;  %v557_v39 = vadd.f32 %v556_v5, %v3717_v4 }
 0x114   :  { %v3642_v45 = vpop.f32.mrf.mxu0  ;;  %v614_v20 = vmul.f32 %v3736_v51, %v3736_v51 }
 0x115   :  { %v354_v8 = vadd.f32 %v3642_v45, %v3371_v23  ;;  %5805 = vst [vmem:[#allocation25_spill] sm:$0xff] %v3747_v19  ;;  %v520_v45 = vadd.f32 %v519_v40, %v3704_v25  ;;  %v3754_v58 = vsub.f32 %v352_v43, %v3404_v35  ;;  %v695_v31 = vadd.f32 %v694_v28, %v611_v2 }
 0x116   :  { %v357_v44 = vpop.f32.mrf.mxu0  ;;  %v615_v5 = vmul.f32 %v3747_v19, %v3747_v19 }
 0x117   :  { %v358_v26 = vadd.f32 %v357_v44, %v3368_v22  ;;  %5806 = vst [vmem:[#allocation26_spill] sm:$0xff] %v3754_v58  ;;  %v3760_v52 = vsub.f32 %v354_v8, %v3409_v37  ;;  %v521_v24 = vadd.f32 %v520_v45, %v3722_v29  ;;  %v696_v2 = vadd.f32 %v695_v31, %v613_v50 }
 0x118   :  { %v359_v30 = vpop.f32.mrf.mxu0 }
 0x119   :  { %v360_v12 = vadd.f32 %v359_v30, %v3371_v23  ;;  %5807 = vst [vmem:[#allocation27_spill] sm:$0xff] %v3760_v52  ;;  %v3765_v40 = vsub.f32 %v358_v26, %v3404_v35  ;;  %v522_v28 = vadd.f32 %v521_v24, %v3736_v51  ;;  %v616_v26 = vmul.f32 %v3754_v58, %v3754_v58 }
 0x11a   :  { %v363_v11 = vpop.f32.mrf.mxu0  ;;  %v617_v62 = vmul.f32 %v3760_v52, %v3760_v52 }
 0x11b   :  { %v364_v30 = vadd.f32 %v363_v11, %v3368_v22  ;;  %5808 = vst [vmem:[#allocation28_spill] sm:$0xff] %v3765_v40  ;;  %v3771_v4 = vsub.f32 %v360_v12, %v3409_v37  ;;  %v558_v11 = vadd.f32 %v557_v39, %v3730_v15  ;;  %v618_v50 = vmul.f32 %v3765_v40, %v3765_v40 }
 0x11c   :  { %v365_v57 = vpop.f32.mrf.mxu0 }
 0x11d   :  { %v366_v43 = vadd.f32 %v365_v57, %v3371_v23  ;;  %5809 = vst [vmem:[#allocation29_spill] sm:$0xff] %v3771_v4  ;;  %v660_v57 = vadd.f32 %v659_v61, %v614_v20  ;;  %v3781_v33 = vsub.f32 %v364_v30, %v3404_v35  ;;  %v697_v61 = vadd.f32 %v696_v2, %v615_v5 }
 0x11e   :  { %v369_v63 = vpop.f32.mrf.mxu0  ;;  %v523_v20 = vadd.f32 %v522_v28, %v3754_v58  ;;  %v619_v30 = vmul.f32 %v3771_v4, %v3771_v4 }
 0x11f   :  { %v370_v8 = vadd.f32 %v369_v63, %v3368_v22  ;;  %5810 = vst [vmem:[#allocation30_spill] sm:$0xff] %v3781_v33  ;;  %v559_v63 = vadd.f32 %v558_v11, %v3747_v19  ;;  %v3788_v39 = vsub.f32 %v366_v43, %v3409_v37  ;;  %v698_v1 = vadd.f32 %v697_v61, %v617_v62 }
 0x120   :  { %v371_v38 = vpop.f32.mrf.mxu0  ;;  %v620_v5 = vmul.f32 %v3781_v33, %v3781_v33 }
 0x121   :  { %v372_v12 = vadd.f32 %v371_v38, %v3371_v23  ;;  %5811 = vst [vmem:[#allocation31_spill] sm:$0xff] %v3788_v39  ;;  %v3795_v15 = vsub.f32 %v370_v8, %v3404_v35  ;;  %v661_v38 = vadd.f32 %v660_v57, %v616_v26  ;;  %v560_v11 = vadd.f32 %v559_v63, %v3760_v52 }
 0x122   :  { %v375_v59 = vpop.f32.mrf.mxu0  ;;  %v621_v8 = vmul.f32 %v3788_v39, %v3788_v39  ;;  %v699_v62 = vadd.f32 %v698_v1, %v619_v30 }
 0x123   :  { %v376_v31 = vadd.f32 %v375_v59, %v3368_v22  ;;  %v524_v59 = vadd.f32 %v523_v20, %v3765_v40  ;;  %v3804_v2 = vsub.f32 %v372_v12, %v3409_v37  ;;  %v662_v28 = vadd.f32 %v661_v38, %v618_v50 }
 0x124   :  { %v377_v21 = vpop.f32.mrf.mxu0  ;;  %v561_v57 = vadd.f32 %v560_v11, %v3771_v4  ;;  %v622_v63 = vmul.f32 %v3795_v15, %v3795_v15 }
 0x125   :  { %v378_v19 = vadd.f32 %v377_v21, %v3371_v23  ;;  %5812 = vst [vmem:[#allocation32_spill] sm:$0xff] %v3804_v2  ;;  %v3809_v26 = vsub.f32 %v376_v31, %v3404_v35  ;;  %v525_v12 = vadd.f32 %v524_v59, %v3781_v33  ;;  %v663_v38 = vadd.f32 %v662_v28, %v620_v5 }
 0x126   :  { %v381_v44 = vpop.f32.mrf.mxu0  ;;  %v562_v11 = vadd.f32 %v561_v57, %v3788_v39  ;;  %v623_v1 = vmul.f32 %v3804_v2, %v3804_v2 }
 0x127   :  { %v382_v43 = vadd.f32 %v381_v44, %v3368_v22  ;;  %v3818_v50 = vsub.f32 %v378_v19, %v3409_v37  ;;  %v624_v59 = vmul.f32 %v3809_v26, %v3809_v26  ;;  %v664_v5 = vadd.f32 %v663_v38, %v622_v63 }
 0x128   :  { %v383_v3 = vpop.f32.mrf.mxu0 }
 0x129   :  { %v384_v21 = vadd.f32 %v383_v3, %v3371_v23  ;;  %5813 = vst [vmem:[#allocation33_spill] sm:$0xff] %v3818_v50  ;;  %v3821_v20 = vsub.f32 %v382_v43, %v3404_v35  ;;  %v665_v38 = vadd.f32 %v664_v5, %v624_v59 }
 0x12a   :  { %v387_v45 = vpop.f32.mrf.mxu0 }
 0x12b   :  { %v388_v61 = vadd.f32 %v387_v45, %v3368_v22  ;;  %v700_v45 = vadd.f32 %v699_v62, %v621_v8  ;;  %v3831_v19 = vsub.f32 %v384_v21, %v3409_v37  ;;  %v625_v8 = vmul.f32 %v3818_v50, %v3818_v50 }
 0x12c   :  { %v389_v24 = vpop.f32.mrf.mxu0  ;;  %v626_v21 = vmul.f32 %v3821_v20, %v3821_v20 }
 0x12d   :  { %v390_v31 = vadd.f32 %v389_v24, %v3371_v23  ;;  %v526_v24 = vadd.f32 %v525_v12, %v3795_v15  ;;  %v3836_v28 = vsub.f32 %v388_v61, %v3404_v35  ;;  %v701_v39 = vadd.f32 %v700_v45, %v623_v1 }
 0x12e   :  { %v393_v48 = vpop.f32.mrf.mxu0 }
 0x12f   :  { %v394_v30 = vadd.f32 %v393_v48, %v3368_v22  ;;  %v563_v48 = vadd.f32 %v562_v11, %v3804_v2  ;;  %v3845_v62 = vsub.f32 %v390_v31, %v3409_v37  ;;  %v627_v11 = vmul.f32 %v3831_v19, %v3831_v19 }
 0x130   :  { %v395_v44 = vpop.f32.mrf.mxu0  ;;  %v628_v1 = vmul.f32 %v3836_v28, %v3836_v28  ;;  %v702_v45 = vadd.f32 %v701_v39, %v625_v8 }
 0x131   :  { %v396_v43 = vadd.f32 %v395_v44, %v3371_v23  ;;  %v3848_v63 = vsub.f32 %v394_v30, %v3404_v35  ;;  %v564_v52 = vadd.f32 %v563_v48, %v3818_v50  ;;  %v629_v5 = vmul.f32 %v3845_v62, %v3845_v62 }
 0x132   :  { %v399_v3 = vpop.f32.mrf.mxu0 }
 0x133   :  { %v400_v57 = vadd.f32 %v399_v3, %v3368_v22  ;;  %v527_v3 = vadd.f32 %v526_v24, %v3809_v26  ;;  %v3856_v2 = vsub.f32 %v396_v43, %v3409_v37  ;;  %v666_v24 = vadd.f32 %v665_v38, %v626_v21 }
 0x134   :  { %v401_v4 = vpop.f32.mrf.mxu0  ;;  %v630_v48 = vmul.f32 %v3848_v63, %v3848_v63 }
 0x135   :  { %v402_v61 = vadd.f32 %v401_v4, %v3371_v23  ;;  %v3862_v30 = vsub.f32 %v400_v57, %v3404_v35  ;;  %v528_v59 = vadd.f32 %v527_v3, %v3821_v20  ;;  %v631_v8 = vmul.f32 %v3856_v2, %v3856_v2 }
 0x136   :  { %v405_v44 = vpop.f32.mrf.mxu0  ;;  %v667_v38 = vadd.f32 %v666_v24, %v628_v1 }
 0x137   :  { %v406_v12 = vadd.f32 %v405_v44, %v3368_v22  ;;  %v565_v44 = vadd.f32 %v564_v52, %v3831_v19  ;;  %v3872_v50 = vsub.f32 %v402_v61, %v3409_v37  ;;  %v529_v39 = vadd.f32 %v528_v59, %v3836_v28 }
 0x138   :  { %v407_v31 = vpop.f32.mrf.mxu0  ;;  %v632_v52 = vmul.f32 %v3862_v30, %v3862_v30 }
 0x139   :  { %v408_v4 = vadd.f32 %v407_v31, %v3371_v23  ;;  %v3875_v57 = vsub.f32 %v406_v12, %v3404_v35  ;;  %v703_v31 = vadd.f32 %v702_v45, %v627_v11  ;;  %v566_v12 = vadd.f32 %v565_v44, %v3845_v62 }
 0x13a   :  { %v411_v43 = vpop.f32.mrf.mxu0  ;;  %v530_v45 = vadd.f32 %v529_v39, %v3848_v63  ;;  %v633_v1 = vmul.f32 %v3872_v50, %v3872_v50 }
 0x13b   :  { %5814 = vst [vmem:[#allocation34_spill] sm:$0xff] %v3875_v57  ;;  %v412_v21 = vadd.f32 %v411_v43, %v3368_v22  ;;  %v3884_v36 = vsub.f32 %v408_v4, %v3409_v37  ;;  %v704_v11 = vadd.f32 %v703_v31, %v629_v5  ;;  %v668_v43 = vadd.f32 %v667_v38, %v630_v48 }
 0x13c   :  { %v413_v3 = vpop.f32.mrf.mxu0  ;;  %v634_v24 = vmul.f32 %v3875_v57, %v3875_v57  ;;  %v531_v5 = vadd.f32 %v530_v45, %v3862_v30 }
 0x13d   :  { %5815 = vst [vmem:[#allocation35_spill] sm:$0xff] %v3884_v36  ;;  %v414_v61 = vadd.f32 %v413_v3, %v3371_v23  ;;  %v3890_v59 = vsub.f32 %v412_v21, %v3404_v35  ;;  %v567_v3 = vadd.f32 %v566_v12, %v3856_v2  ;;  %v705_v53 = vadd.f32 %v704_v11, %v631_v8 }
 0x13e   :  { %v417_v6 = vpop.f32.mrf.mxu0  ;;  %v669_v39 = vadd.f32 %v668_v43, %v632_v52  ;;  %v635_v48 = vmul.f32 %v3884_v36, %v3884_v36 }
 0x13f   :  { %5816 = vst [vmem:[#allocation36_spill] sm:$0xff] %v3890_v59  ;;  %v418_v4 = vadd.f32 %v417_v6, %v3368_v22  ;;  %v3900_v44 = vsub.f32 %v414_v61, %v3409_v37  ;;  %v568_v6 = vadd.f32 %v567_v3, %v3872_v50  ;;  %v636_v8 = vmul.f32 %v3890_v59, %v3890_v59 }
 0x140   :  { %v419_v31 = vpop.f32.mrf.mxu0  ;;  %v706_v11 = vadd.f32 %v705_v53, %v633_v1  ;;  %v532_v61 = vadd.f32 %v531_v5, %v3875_v57  ;;  %v670_v45 = vadd.f32 %v669_v39, %v634_v24 }
 0x141   :  { %5817 = vst [vmem:[#allocation37_spill] sm:$0xff] %v3900_v44  ;;  %v3905_v21 = vsub.f32 %v418_v4, %v3404_v35  ;;  %v420_v38 = vadd.f32 %v419_v31, %v3371_v23  ;;  %v569_v43 = vadd.f32 %v568_v6, %v3884_v36  ;;  %v637_v4 = vmul.f32 %v3900_v44, %v3900_v44 }
 0x142   :  { %v423_v12 = vpop.f32.mrf.mxu0  ;;  %v707_v9 = vadd.f32 %v706_v11, %v635_v48  ;;  %v533_v53 = vadd.f32 %v532_v61, %v3890_v59  ;;  %v671_v24 = vadd.f32 %v670_v45, %v636_v8  ;;  %v5850_v59 = vld [vmem:[#allocation25_spill] sm:$0xff] }
 0x143   :  { %5818 = vst [vmem:[#allocation38_spill] sm:$0xff] %v3905_v21  ;;  %v3913_v52 = vsub.f32 %v420_v38, %v3409_v37  ;;  %v638_v31 = vmul.f32 %v3905_v21, %v3905_v21  ;;  %v424_v3 = vadd.f32 %v423_v12, %v3368_v22  ;;  %v570_v5 = vadd.f32 %v569_v43, %v3900_v44 }
 0x144   :  { %v425_v27 = vpop.f32.mrf.mxu0  ;;  %v534_v56 = vadd.f32 %v533_v53, %v3905_v21  ;;  %v708_v11 = vadd.f32 %v707_v9, %v637_v4 }
 0x145   :  { %5819 = vst [vmem:[#allocation39_spill] sm:$0xff] %v3913_v52  ;;  %v426_v1 = vadd.f32 %v425_v27, %v3371_v23  ;;  %v639_v39 = vmul.f32 %v3913_v52, %v3913_v52  ;;  %v3927_v38 = vsub.f32 %v424_v3, %v3404_v35  ;;  %v672_v61 = vadd.f32 %v671_v24, %v638_v31 }
 0x146   :  { %v429_v6 = vpop.f32.mrf.mxu0  ;;  %v571_v27 = vadd.f32 %v570_v5, %v3913_v52  ;;  %v5849_v52 = vld [vmem:[#allocation23_spill] sm:$0xff] }
 0x147   :  { %5820 = vst [vmem:[#allocation40_spill] sm:$0xff] %v3927_v38  ;;  %v3931_v12 = vsub.f32 %v426_v1, %v3409_v37  ;;  %v430_v48 = vadd.f32 %v429_v6, %v3368_v22  ;;  %v640_v8 = vmul.f32 %v3927_v38, %v3927_v38  ;;  %v535_v43 = vadd.f32 %v534_v56, %v3927_v38 }
 0x148   :  { %v431_v45 = vpop.f32.mrf.mxu0  ;;  %v709_v47 = vadd.f32 %v708_v11, %v639_v39 }
 0x149   :  { %5821 = vst [vmem:[#allocation41_spill] sm:$0xff] %v3931_v12  ;;  %v641_v3 = vmul.f32 %v3931_v12, %v3931_v12  ;;  %v3941_v53 = vsub.f32 %v430_v48, %v3404_v35  ;;  %v432_v1 = vadd.f32 %v431_v45, %v3371_v23  ;;  %v572_v22 = vadd.f32 %v571_v27, %v3931_v12 }
 0x14a   :  { %v673_v9 = vadd.f32 %v672_v61, %v640_v8 }
 0x14b   :  { %5822 = vst [vmem:[#allocation42_spill] sm:$0xff] %v3941_v53  ;;  %v536_v4 = vadd.f32 %v535_v43, %v3941_v53  ;;  %v642_v31 = vmul.f32 %v3941_v53, %v3941_v53  ;;  %v3949_v24 = vsub.f32 %v432_v1, %v3409_v37  ;;  %v710_v56 = vadd.f32 %v709_v47, %v641_v3 }
 0x14d   :  { %5823 = vst [vmem:[#allocation43_spill] sm:$0xff] %v3949_v24  ;;  %v537_v5 = vrot.slane %v536_v4, 4  ;;  %v674_v6 = vadd.f32 %v673_v9, %v642_v31  ;;  %v573_v35 = vadd.f32 %v572_v22, %v3949_v24  ;;  %v643_v23 = vmul.f32 %v3949_v24, %v3949_v24  ;;  %v5847_v24 = vld [vmem:[#allocation20_spill] sm:$0xff] }
 0x14f   :  { %v538_v39 = vadd.f32 %v537_v5, %v536_v4  ;;  %v675_v48 = vrot.slane %v674_v6, 4  ;;  %v574_v11 = vrot.slane %v573_v35, 4  ;;  %v711_v61 = vadd.f32 %v710_v56, %v643_v23 }
 0x151   :  { %v539_v27 = vrot.slane %v538_v39, 2  ;;  %v676_v8 = vadd.f32 %v675_v48, %v674_v6  ;;  %v575_v45 = vadd.f32 %v574_v11, %v573_v35  ;;  %v712_v43 = vrot.slane %v711_v61, 4  ;;  %v5831_v11 = vld [vmem:[#allocation9_spill] sm:$0xff] }
 0x153   :  { %v540_v33 = vadd.f32 %v539_v27, %v538_v39  ;;  %v677_v40 = vrot.slane %v676_v8, 2  ;;  %v576_v37 = vrot.slane %v575_v45, 2  ;;  %v713_v1 = vadd.f32 %v712_v43, %v711_v61 }
 0x155   :  { %v541_v47 = vrot.slane %v540_v33, 1  ;;  %v678_v3 = vadd.f32 %v677_v40, %v676_v8  ;;  %v577_v22 = vadd.f32 %v576_v37, %v575_v45  ;;  %v714_v58 = vrot.slane %v713_v1, 2  ;;  %v5824_v45 = vld [vmem:[#allocation22_spill] sm:$0xff]  ;;  %v5825_v8 = vld [vmem:[#allocation24_spill] sm:$0xff] }
 0x157   :  { %v542_v9 = vadd.f32 %v541_v47, %v540_v33  ;;  %v679_v31 = vrot.slane %v678_v3, 1  ;;  %v578_v6 = vrot.slane %v577_v22, 1  ;;  %v715_v35 = vadd.f32 %v714_v58, %v713_v1 }
 0x159   :  { %v680_v51 = vadd.f32 %v679_v31, %v678_v3  ;;  %v3954_v29 = vmul.f32 0.00390625, %v542_v9  ;;  %v579_v48 = vadd.f32 %v578_v6, %v577_v22  ;;  %v716_v40 = vrot.slane %v715_v35, 1 }
 0x15b   :  { %v720_v4 = vmul.f32 0.00390625, %v680_v51  ;;  %v722_v56 = vmul.f32 %v3954_v29, %v3954_v29  ;;  %v717_v47 = vadd.f32 %v716_v40, %v715_v35  ;;  %v3980_v3 = vmul.f32 0.00390625, %v579_v48  ;;  %v5832_v48 = vld [vmem:[#allocation10_spill] sm:$0xff]  ;;  %v5833_v40 = vld [vmem:[#allocation11_spill] sm:$0xff] }
 0x15c   :  { %v728_v1 = vsub.f32 %v3433_v46, %v3954_v29  ;;  %v730_v37 = vsub.f32 %v3420_v41, %v3954_v29  ;;  %v738_v43 = vsub.f32 %v3515_v34, %v3954_v29  ;;  %v742_v46 = vsub.f32 %v3559_v13, %v3954_v29  ;;  %v5836_v41 = vld [vmem:[#allocation14_spill] sm:$0xff] }
 0x15d   :  { %v724_v23 = vsub.f32 %v720_v4, %v722_v56  ;;  %v721_v9 = vmul.f32 0.00390625, %v717_v47  ;;  %v723_v31 = vmul.f32 %v3980_v3, %v3980_v3  ;;  %v734_v47 = vsub.f32 %v3460_v54, %v3954_v29  ;;  %v5834_v54 = vld [vmem:[#allocation12_spill] sm:$0xff] }
 0x15e   :  { %v752_v34 = vsub.f32 %v3658_v7, %v3954_v29  ;;  %v756_v13 = vsub.f32 %v3690_v55, %v3954_v29  ;;  %v5827_v7 = vld [vmem:[#allocation28_spill] sm:$0xff]  ;;  %v5829_v55 = vld [vmem:[#allocation6_spill] sm:$0xff]  ;;  %v735_v33 = vsub.f32 %v5831_v11, %v3980_v3  ;;  %v737_v27 = vsub.f32 %v5832_v48, %v3980_v3 }
 0x15f   :  { %v726_v39 = vmax.f32 %v724_v23, 0.0  ;;  %v725_v4 = vsub.f32 %v721_v9, %v723_v31  ;;  %v2667_v9 = vld [vmem:[%s5723_s5 + $0x1] ss:$4 sm:$0x3]  ;;  %v739_v35 = vsub.f32 %v5833_v40, %v3980_v3  ;;  %v741_v61 = vsub.f32 %v5834_v54, %v3980_v3 }
 0x160   :  { %v2668_v31 = vld [vmem:[%s5723_s5 + $0x2] ss:$4 sm:$0x3] }
 0x161   :  { %v792_v58 = vadd.f32 1e-05, %v726_v39  ;;  %v727_v56 = vmax.f32 %v725_v4, 0.0  ;;  %v4015_v5 = vrot.slane %v2668_v31, %v3345_v14  ;;  %v4018_v22 = vrot.slane %v2668_v31, %v3350_v16 }
 0x162   :  { %v732_v4 = vsub.f32 %v3442_v49, %v3954_v29  ;;  %v731_v39 = vsub.f32 %v5829_v55, %v3980_v3  ;;  %v5835_v49 = vld [vmem:[#allocation13_spill] sm:$0xff] }
 0x163   :  { %2992 = vrsqrt.f32 %v792_v58  ;;  %v793_v6 = vadd.f32 1e-05, %v727_v56  ;;  %v4009_v56 = vrot.slane %v2667_v9, %v3345_v14  ;;  %v758_v58 = vsub.f32 %v3704_v25, %v3954_v29  ;;  %v5830_v25 = vld [vmem:[#allocation8_spill] sm:$0xff] }
 0x164   :  { %v733_v51 = vsub.f32 %v5830_v25, %v3980_v3  ;;  %v743_v55 = vsub.f32 %v5835_v49, %v3980_v3  ;;  %v5842_v25 = vld [vmem:[#allocation15_spill] sm:$0xff] }
 0x165   :  { %2994 = vrsqrt.f32 %v793_v6  ;;  %v4012_v6 = vrot.slane %v2667_v9, %v3350_v16  ;;  %v736_v9 = vsub.f32 %v3494_v18, %v3954_v29  ;;  %v740_v16 = vsub.f32 %v3539_v60, %v3954_v29 }
 0x166   :  { %v750_v18 = vsub.f32 %v3638_v42, %v3954_v29  ;;  %v754_v60 = vsub.f32 %v3672_v32, %v3954_v29  ;;  %v5826_v42 = vld [vmem:[#allocation26_spill] sm:$0xff] }
 0x167   :  { %v5828_v32 = vld [vmem:[#allocation30_spill] sm:$0xff] }
 0x170   :  { %v4036_v31 = vpop.eup %2992 }
 0x171   :  { %v796_v23 = vmul.f32 %v4036_v31, %v728_v1  ;;  %v5837_v1 = vld [vmem:[#allocation7_spill] sm:$0xff]  ;;  %v4084_v11 = vmul.f32 %v4036_v31, %v750_v18  ;;  %v4087_v48 = vmul.f32 %v4036_v31, %v752_v34  ;;  %v4090_v40 = vmul.f32 %v4036_v31, %v754_v60  ;;  %v5843_v18 = vld [vmem:[#allocation16_spill] sm:$0xff]  ;;  %v5844_v60 = vld [vmem:[#allocation17_spill] sm:$0xff] }
 0x172   :  { %v729_v14 = vsub.f32 %v5837_v1, %v3980_v3  ;;  %v4093_v54 = vmul.f32 %v4036_v31, %v756_v13  ;;  %v4096_v49 = vmul.f32 %v4036_v31, %v758_v58  ;;  %v4098_v53 = vpop.eup %2994  ;;  %v798_v38 = vmul.f32 %v4036_v31, %v730_v37  ;;  %v5848_v37 = vld [vmem:[#allocation21_spill] sm:$0xff] }
 0x173   :  { %5838 = vst [vmem:[#allocation22_spill] sm:$0xff] %v4087_v48  ;;  %5839 = vst [vmem:[#allocation24_spill] sm:$0xff] %v4090_v40  ;;  %v871_v34 = vmul.f32 %v4009_v56, %v796_v23  ;;  %v799_v58 = vmul.f32 %v4098_v53, %v731_v39  ;;  %v800_v39 = vmul.f32 %v4036_v31, %v732_v4 }
 0x174   :  { %5840 = vst [vmem:[#allocation26_spill] sm:$0xff] %v4093_v54  ;;  %5841 = vst [vmem:[#allocation28_spill] sm:$0xff] %v4096_v49  ;;  %v797_v13 = vmul.f32 %v4098_v53, %v729_v14  ;;  %v801_v49 = vmul.f32 %v4098_v53, %v733_v51  ;;  %v5845_v54 = vld [vmem:[#allocation18_spill] sm:$0xff]  ;;  %v802_v51 = vmul.f32 %v4036_v31, %v734_v47  ;;  %v5851_v47 = vld [vmem:[#allocation27_spill] sm:$0xff] }
 0x175   :  { %v874_v14 = vmul.f32 %v4012_v6, %v799_v58  ;;  %v946_v44 = vadd.f32 %v4015_v5, %v871_v34  ;;  %v873_v23 = vmul.f32 %v4009_v56, %v798_v38  ;;  %v803_v4 = vmul.f32 %v4098_v53, %v735_v33 }
 0x176   :  { %v872_v40 = vmul.f32 %v4012_v6, %v797_v13  ;;  %v876_v58 = vmul.f32 %v4012_v6, %v801_v49  ;;  %v804_v12 = vmul.f32 %v4036_v31, %v736_v9  ;;  %v806_v57 = vmul.f32 %v4036_v31, %v738_v43 }
 0x177   :  { %v949_v13 = vadd.f32 %v4018_v22, %v874_v14  ;;  %v808_v21 = vmul.f32 %v4036_v31, %v740_v16  ;;  %v875_v38 = vmul.f32 %v4009_v56, %v800_v39  ;;  %v810_v14 = vmul.f32 %v4036_v31, %v742_v46  ;;  %v5852_v39 = vld [vmem:[#allocation29_spill] sm:$0xff] }
 0x178   :  { %v947_v48 = vadd.f32 %v4018_v22, %v872_v40  ;;  %v877_v40 = vmul.f32 %v4009_v56, %v802_v51  ;;  %v1010_v36 = vmax.f32 %v946_v44, 0.0  ;;  %v948_v49 = vadd.f32 %v4015_v5, %v873_v23 }
 0x179   :  { %v805_v33 = vmul.f32 %v4098_v53, %v737_v27  ;;  %v807_v1 = vmul.f32 %v4098_v53, %v739_v35  ;;  %v1013_v9 = vmax.f32 %v949_v13, 0.0  ;;  %v951_v43 = vadd.f32 %v4018_v22, %v876_v58  ;;  %v5853_v35 = vld [vmem:[#allocation31_spill] sm:$0xff] }
 0x17a   :  { %v1011_v34 = vmax.f32 %v947_v48, 0.0  ;;  %v878_v16 = vmul.f32 %v4012_v6, %v803_v4  ;;  %v809_v48 = vmul.f32 %v4098_v53, %v741_v61  ;;  %v879_v44 = vmul.f32 %v4009_v56, %v804_v12  ;;  %v5854_v4 = vld [vmem:[#allocation32_spill] sm:$0xff] }
 0x17b   :  { %v881_v46 = vmul.f32 %v4009_v56, %v806_v57  ;;  %v811_v27 = vmul.f32 %v4098_v53, %v743_v55  ;;  %v950_v13 = vadd.f32 %v4015_v5, %v875_v38  ;;  %v883_v58 = vmul.f32 %v4009_v56, %v808_v21  ;;  %v5855_v38 = vld [vmem:[#allocation33_spill] sm:$0xff] }
 0x17c   :  { %1177 = vmatprep.mubr.f32.mxu1 %v1011_v34  ;;  %v885_v61 = vmul.f32 %v4009_v56, %v810_v14  ;;  %v952_v12 = vadd.f32 %v4015_v5, %v877_v40  ;;  %v880_v57 = vmul.f32 %v4012_v6, %v805_v33  ;;  %v1015_v51 = vmax.f32 %v951_v43, 0.0 }
 0x17d   :  { %1178 = vmatmul.mubr.f32.vlgmr.msra.gmra.mxu1 %v1010_v36  ;;  %v1012_v36 = vmax.f32 %v948_v49, 0.0  ;;  %v953_v55 = vadd.f32 %v4018_v22, %v878_v16  ;;  %v882_v23 = vmul.f32 %v4012_v6, %v807_v1  ;;  %v773_v21 = vsub.f32 %v5855_v38, %v3980_v3 }
 0x17e   :  { %1182 = vmatprep.mubr.f32.mxu1 %v1013_v9  ;;  %v884_v9 = vmul.f32 %v4012_v6, %v809_v48  ;;  %v954_v14 = vadd.f32 %v4015_v5, %v879_v44  ;;  %v4168_v34 = vadd.f32 %v4015_v5, %v881_v46  ;;  %v886_v40 = vmul.f32 %v4012_v6, %v811_v27 }
 0x17f   :  { %v1014_v49 = vmax.f32 %v950_v13, 0.0  ;;  %v4172_v33 = vadd.f32 %v4015_v5, %v883_v58  ;;  %v4175_v1 = vadd.f32 %v4015_v5, %v885_v61  ;;  %v5856_v43 = vsub.f32 %v3586_v17, %v3954_v29 }
 0x180   :  { %v1016_v48 = vmax.f32 %v952_v12, 0.0  ;;  %v955_v44 = vadd.f32 %v4018_v22, %v880_v57  ;;  %v5857_v46 = vsub.f32 %v3602_v0, %v3954_v29  ;;  %v5858_v27 = vsub.f32 %v3622_v10, %v3954_v29 }
 0x181   :  { %1183 = vmatmul.mubr.f32.gmra.mxu1 %v1012_v36  ;;  %v812_v16 = vmul.f32 %v4036_v31, %v5856_v43  ;;  %v1017_v58 = vmax.f32 %v953_v55, 0.0  ;;  %v957_v61 = vadd.f32 %v4018_v22, %v882_v23  ;;  %v959_v17 = vadd.f32 %v4018_v22, %v884_v9 }
 0x182   :  { %1187 = vmatprep.mubr.f32.mxu1 %v1015_v51  ;;  %v814_v51 = vmul.f32 %v4036_v31, %v5857_v46  ;;  %v816_v13 = vmul.f32 %v4036_v31, %v5858_v27  ;;  %v5859_v36 = vsub.f32 %v5847_v24, %v3980_v3  ;;  %v1018_v0 = vmax.f32 %v954_v14, 0.0 }
 0x183   :  { %v1020_v57 = vmax.f32 %v4168_v34, 0.0  ;;  %v4200_v43 = vadd.f32 %v4018_v22, %v886_v40  ;;  %v5860_v10 = vsub.f32 %v5848_v37, %v3980_v3  ;;  %v1022_v55 = vmax.f32 %v4172_v33, 0.0 }
 0x184   :  { %v4196_v12 = vmul.f32 %v4098_v53, %v5859_v36  ;;  %v1024_v24 = vmax.f32 %v4175_v1, 0.0  ;;  %v887_v9 = vmul.f32 %v4009_v56, %v812_v16  ;;  %v5861_v14 = vsub.f32 %v5849_v52, %v3980_v3 }
 0x185   :  { %1188 = vmatmul.mubr.f32.gmra.mxu1 %v1014_v49  ;;  %v4206_v23 = vmul.f32 %v4098_v53, %v5860_v10  ;;  %v889_v40 = vmul.f32 %v4009_v56, %v814_v51  ;;  %v891_v37 = vmul.f32 %v4009_v56, %v816_v13  ;;  %v893_v49 = vmul.f32 %v4009_v56, %v4084_v11 }
 0x186   :  { %1192 = vmatprep.mubr.f32.mxu1 %v1017_v58  ;;  %v4215_v34 = vmul.f32 %v4098_v53, %v5861_v14  ;;  %v5862_v46 = vsub.f32 %v5824_v45, %v3954_v29  ;;  %v1019_v58 = vmax.f32 %v955_v44, 0.0  ;;  %v1021_v16 = vmax.f32 %v957_v61, 0.0 }
 0x187   :  { %v1023_v36 = vmax.f32 %v959_v17, 0.0  ;;  %v5863_v52 = vsub.f32 %v5850_v59, %v3980_v3  ;;  %v1025_v51 = vmax.f32 %v4200_v43, 0.0  ;;  %v5864_v13 = vsub.f32 %v5836_v41, %v3980_v3 }
 0x188   :  { %v828_v27 = vmul.f32 %v4036_v31, %v5862_v46  ;;  %v5865_v44 = vsub.f32 %v5825_v8, %v3954_v29  ;;  %v4240_v59 = vadd.f32 %v4015_v5, %v887_v9  ;;  %v5867_v43 = vsub.f32 %v5851_v47, %v3980_v3 }
 0x189   :  { %v831_v10 = vmul.f32 %v4098_v53, %v5863_v52  ;;  %1193 = vmatmul.mubr.f32.gmra.mxu1 %v1016_v48  ;;  %v813_v11 = vmul.f32 %v4098_v53, %v5864_v13  ;;  %v5866_v48 = vsub.f32 %v5842_v25, %v3980_v3  ;;  %v4252_v8 = vadd.f32 %v4015_v5, %v889_v40 }
 0x18a   :  { %v903_v45 = vmul.f32 %v4009_v56, %v828_v27  ;;  %v830_v61 = vmul.f32 %v4036_v31, %v5865_v44  ;;  %1197 = vmatprep.mubr.f32.mxu1 %v1019_v58  ;;  %v833_v14 = vmul.f32 %v4098_v53, %v5867_v43  ;;  %v5868_v25 = vsub.f32 %v5826_v42, %v3954_v29 }
 0x18b   :  { %v815_v17 = vmul.f32 %v4098_v53, %v5866_v48  ;;  %v906_v41 = vmul.f32 %v4012_v6, %v831_v10  ;;  %v5869_v58 = vsub.f32 %v5843_v18, %v3980_v3  ;;  %v5870_v10 = vsub.f32 %v5852_v39, %v3980_v3 }
 0x18c   :  { %v4255_v46 = vadd.f32 %v4015_v5, %v903_v45  ;;  %v905_v9 = vmul.f32 %v4009_v56, %v830_v61  ;;  %v832_v27 = vmul.f32 %v4036_v31, %v5868_v25  ;;  %v908_v40 = vmul.f32 %v4012_v6, %v833_v14 }
 0x18d   :  { %v817_v47 = vmul.f32 %v4098_v53, %v5869_v58  ;;  %v4267_v52 = vadd.f32 %v4018_v22, %v906_v41  ;;  %v835_v13 = vmul.f32 %v4098_v53, %v5870_v10  ;;  %1198 = vmatmul.mubr.f32.gmra.mxu1 %v1018_v0  ;;  %v4275_v42 = vadd.f32 %v4015_v5, %v891_v37 }
 0x18e   :  { %v4278_v45 = vadd.f32 %v4015_v5, %v905_v9  ;;  %v907_v18 = vmul.f32 %v4009_v56, %v832_v27  ;;  %v5871_v44 = vsub.f32 %v5827_v7, %v3954_v29  ;;  %1202 = vmatprep.mubr.f32.mxu1 %v1021_v16  ;;  %v5872_v39 = vsub.f32 %v5844_v60, %v3980_v3 }
 0x18f   :  { %v4290_v0 = vadd.f32 %v4018_v22, %v908_v40  ;;  %v910_v37 = vmul.f32 %v4012_v6, %v835_v13  ;;  %v5873_v41 = vsub.f32 %v5853_v35, %v3980_v3  ;;  %v4298_v7 = vadd.f32 %v4015_v5, %v893_v49 }
 0x190   :  { %v834_v61 = vmul.f32 %v4036_v31, %v5871_v44  ;;  %v819_v48 = vmul.f32 %v4098_v53, %v5872_v39  ;;  %v4301_v16 = vadd.f32 %v4015_v5, %v907_v18  ;;  %v5874_v14 = vsub.f32 %v5828_v32, %v3954_v29 }
 0x191   :  { %v837_v43 = vmul.f32 %v4098_v53, %v5873_v41  ;;  %v888_v25 = vmul.f32 %v4012_v6, %v813_v11  ;;  %v4310_v27 = vadd.f32 %v4018_v22, %v910_v37  ;;  %v5875_v49 = vsub.f32 %v5854_v4, %v3980_v3  ;;  %1203 = vmatmul.mubr.f32.gmra.mxu1 %v1020_v57 }
 0x192   :  { %v909_v60 = vmul.f32 %v4009_v56, %v834_v61  ;;  %v836_v9 = vmul.f32 %v4036_v31, %v5874_v14  ;;  %v1026_v40 = vmax.f32 %v4240_v59, 0.0  ;;  %v5876_v11 = vsub.f32 %v3795_v15, %v3954_v29  ;;  %1207 = vmatprep.mubr.f32.mxu1 %v1023_v36 }
 0x193   :  { %v912_v35 = vmul.f32 %v4012_v6, %v837_v43  ;;  %v839_v58 = vmul.f32 %v4098_v53, %v5875_v49  ;;  %v890_v18 = vmul.f32 %v4012_v6, %v815_v17  ;;  %v841_v59 = vmul.f32 %v4098_v53, %v773_v21 }
 0x194   :  { %v4319_v10 = vadd.f32 %v4015_v5, %v909_v60  ;;  %v911_v32 = vmul.f32 %v4009_v56, %v836_v9  ;;  %v838_v13 = vmul.f32 %v4036_v31, %v5876_v11  ;;  %v1028_v44 = vmax.f32 %v4252_v8, 0.0 }
 0x195   :  { %v4328_v4 = vadd.f32 %v4018_v22, %v912_v35  ;;  %v914_v57 = vmul.f32 %v4012_v6, %v839_v58  ;;  %v5877_v36 = vsub.f32 %v3809_v26, %v3954_v29  ;;  %v963_v39 = vadd.f32 %v4018_v22, %v888_v25  ;;  %1208 = vmatmul.mubr.f32.gmra.mxu1 %v1022_v55 }
 0x196   :  { %v4337_v61 = vadd.f32 %v4015_v5, %v911_v32  ;;  %v913_v15 = vmul.f32 %v4009_v56, %v838_v13  ;;  %v916_v38 = vmul.f32 %v4012_v6, %v841_v59  ;;  %v5878_v21 = vsub.f32 %v3831_v19, %v3980_v3  ;;  %1212 = vmatprep.mubr.f32.mxu1 %v1025_v51 }
 0x197   :  { %v840_v17 = vmul.f32 %v4036_v31, %v5877_v36  ;;  %v4346_v37 = vadd.f32 %v4018_v22, %v914_v57  ;;  %v892_v41 = vmul.f32 %v4012_v6, %v817_v47  ;;  %v5879_v60 = vsub.f32 %v3821_v20, %v3954_v29 }
 0x198   :  { %v843_v8 = vmul.f32 %v4098_v53, %v5878_v21  ;;  %v4357_v26 = vadd.f32 %v4015_v5, %v913_v15  ;;  %v1030_v19 = vmax.f32 %v4275_v42, 0.0  ;;  %v4366_v9 = vadd.f32 %v4018_v22, %v916_v38 }
 0x199   :  { %v915_v43 = vmul.f32 %v4009_v56, %v840_v17  ;;  %v842_v14 = vmul.f32 %v4036_v31, %v5879_v60  ;;  %v5880_v55 = vsub.f32 %v3845_v62, %v3980_v3  ;;  %v965_v25 = vadd.f32 %v4018_v22, %v890_v18  ;;  %1213 = vmatmul.mubr.f32.gmra.mxu1 %v1024_v24  ;;  %v5887_v60 = vld [vmem:[#allocation35_spill] sm:$0xff] }
 0x19a   :  { %v918_v33 = vmul.f32 %v4012_v6, %v843_v8  ;;  %v5881_v51 = vsub.f32 %v3836_v28, %v3954_v29  ;;  %v1027_v58 = vmax.f32 %v963_v39, 0.0  ;;  %v5882_v11 = vsub.f32 %v3856_v2, %v3980_v3 }
 0x19b   :  { %v845_v47 = vmul.f32 %v4098_v53, %v5880_v55  ;;  %v4375_v35 = vadd.f32 %v4015_v5, %v915_v43  ;;  %v917_v20 = vmul.f32 %v4009_v56, %v842_v14  ;;  %v894_v18 = vmul.f32 %v4012_v6, %v819_v48 }
 0x19c   :  { %v844_v49 = vmul.f32 %v4036_v31, %v5881_v51  ;;  %v4383_v32 = vadd.f32 %v4018_v22, %v918_v33  ;;  %v847_v13 = vmul.f32 %v4098_v53, %v5882_v11  ;;  %v5883_v59 = vsub.f32 %v3848_v63, %v3954_v29  ;;  %1217 = vmatprep.mubr.f32.mxu1 %v1027_v58  ;;  %v5891_v51 = vld [vmem:[#allocation19_spill] sm:$0xff]  ;;  %v5893_v11 = vld [vmem:[#allocation37_spill] sm:$0xff] }
 0x19d   :  { %v920_v62 = vmul.f32 %v4012_v6, %v845_v47  ;;  %v4394_v28 = vadd.f32 %v4015_v5, %v917_v20  ;;  %v5884_v2 = vsub.f32 %v5845_v54, %v3980_v3  ;;  %v5885_v48 = vsub.f32 %v3872_v50, %v3980_v3  ;;  %1218 = vmatmul.mubr.f32.gmra.mxu1 %v1026_v40  ;;  %v5889_v47 = vld [vmem:[#allocation34_spill] sm:$0xff] }
 0x19e   :  { %v919_v57 = vmul.f32 %v4009_v56, %v844_v49  ;;  %v846_v15 = vmul.f32 %v4036_v31, %v5883_v59  ;;  %v922_v24 = vmul.f32 %v4012_v6, %v847_v13  ;;  %v967_v63 = vadd.f32 %v4018_v22, %v892_v41 }
 0x19f   :  { %v821_v36 = vmul.f32 %v4098_v53, %v5884_v2  ;;  %v4406_v1 = vadd.f32 %v4018_v22, %v920_v62  ;;  %v849_v17 = vmul.f32 %v4098_v53, %v5885_v48  ;;  %v5886_v54 = vsub.f32 %v3862_v30, %v3954_v29  ;;  %v5895_v2 = vld [vmem:[#allocation36_spill] sm:$0xff] }
 0x1a0   :  { %v4415_v39 = vadd.f32 %v4015_v5, %v919_v57  ;;  %v921_v38 = vmul.f32 %v4009_v56, %v846_v15  ;;  %v1029_v8 = vmax.f32 %v965_v25, 0.0  ;;  %v4423_v43 = vadd.f32 %v4018_v22, %v922_v24 }
 0x1a1   :  { %v848_v21 = vmul.f32 %v4036_v31, %v5886_v54  ;;  %v924_v50 = vmul.f32 %v4012_v6, %v849_v17  ;;  %v5888_v14 = vsub.f32 %v5887_v60, %v3980_v3  ;;  %v969_v33 = vadd.f32 %v4018_v22, %v894_v18 }
 0x1a2   :  { %v4432_v55 = vadd.f32 %v4015_v5, %v921_v38  ;;  %v5890_v25 = vsub.f32 %v5889_v47, %v3954_v29  ;;  %1222 = vmatprep.mubr.f32.mxu1 %v1029_v8  ;;  %v5892_v49 = vsub.f32 %v5891_v51, %v3980_v3  ;;  %v5894_v13 = vsub.f32 %v5893_v11, %v3980_v3  ;;  %v5902_v51 = vld [vmem:[#allocation41_spill] sm:$0xff] }
 0x1a3   :  { %v851_v41 = vmul.f32 %v4098_v53, %v5888_v14  ;;  %v923_v30 = vmul.f32 %v4009_v56, %v848_v21  ;;  %v4444_v40 = vadd.f32 %v4018_v22, %v924_v50  ;;  %v896_v57 = vmul.f32 %v4012_v6, %v821_v36  ;;  %v5897_v21 = vld [vmem:[#allocation39_spill] sm:$0xff]  ;;  %1223 = vmatmul.mubr.f32.gmra.mxu1 %v1028_v44  ;;  %v5899_v50 = vld [vmem:[#allocation22_spill] sm:$0xff] }
 0x1a4   :  { %v850_v20 = vmul.f32 %v4036_v31, %v5890_v25  ;;  %v823_v58 = vmul.f32 %v4098_v53, %v5892_v49  ;;  %v853_v18 = vmul.f32 %v4098_v53, %v5894_v13  ;;  %v5896_v24 = vsub.f32 %v5895_v2, %v3954_v29 }
 0x1a5   :  { %v926_v62 = vmul.f32 %v4012_v6, %v851_v41  ;;  %v4453_v59 = vadd.f32 %v4015_v5, %v923_v30  ;;  %v1031_v17 = vmax.f32 %v967_v63, 0.0  ;;  %v5898_v8 = vsub.f32 %v5897_v21, %v3980_v3  ;;  %v5900_v63 = vld [vmem:[#allocation38_spill] sm:$0xff] }
 0x1a6   :  { %v925_v15 = vmul.f32 %v4009_v56, %v850_v20  ;;  %v852_v48 = vmul.f32 %v4036_v31, %v5896_v24  ;;  %v928_v54 = vmul.f32 %v4012_v6, %v853_v18  ;;  %v895_v60 = vmul.f32 %v4009_v56, %v5899_v50  ;;  %v5908_v50 = vld [vmem:[#allocation42_spill] sm:$0xff] }
 0x1a7   :  { %v4461_v38 = vadd.f32 %v4018_v22, %v926_v62  ;;  %v855_v36 = vmul.f32 %v4098_v53, %v5898_v8  ;;  %v5901_v30 = vsub.f32 %v5900_v63, %v3954_v29  ;;  %1227 = vmatprep.mubr.f32.mxu1 %v1031_v17  ;;  %v1033_v25 = vmax.f32 %v969_v33, 0.0 }
 0x1a8   :  { %v4471_v14 = vadd.f32 %v4015_v5, %v925_v15  ;;  %v927_v41 = vmul.f32 %v4009_v56, %v852_v48  ;;  %v4479_v20 = vadd.f32 %v4018_v22, %v928_v54  ;;  %v5903_v49 = vsub.f32 %v5902_v51, %v3980_v3  ;;  %v5904_v15 = vld [vmem:[#allocation40_spill] sm:$0xff]  ;;  %v5906_v54 = vld [vmem:[#allocation43_spill] sm:$0xff]  ;;  %1228 = vmatmul.mubr.f32.gmra.mxu1 %v1030_v19 }
 0x1a9   :  { %v854_v47 = vmul.f32 %v4036_v31, %v5901_v30  ;;  %v930_v44 = vmul.f32 %v4012_v6, %v855_v36  ;;  %v898_v11 = vmul.f32 %v4012_v6, %v823_v58  ;;  %v5905_v33 = vsub.f32 %v5904_v15, %v3954_v29  ;;  %1232 = vmatprep.mubr.f32.mxu1 %v1033_v25  ;;  %v5910_v19 = vld [vmem:[#allocation24_spill] sm:$0xff] }
 0x1aa   :  { %v857_v62 = vmul.f32 %v4098_v53, %v5903_v49  ;;  %v4488_v13 = vadd.f32 %v4015_v5, %v927_v41  ;;  %v971_v24 = vadd.f32 %v4018_v22, %v896_v57  ;;  %v5907_v58 = vsub.f32 %v5906_v54, %v3980_v3 }
 0x1ab   :  { %v929_v18 = vmul.f32 %v4009_v56, %v854_v47  ;;  %v856_v2 = vmul.f32 %v4036_v31, %v5905_v33  ;;  %v4497_v48 = vadd.f32 %v4018_v22, %v930_v44  ;;  %v5909_v57 = vsub.f32 %v5908_v50, %v3954_v29 }
 0x1ac   :  { %v932_v17 = vmul.f32 %v4012_v6, %v857_v62  ;;  %v859_v21 = vmul.f32 %v4098_v53, %v5907_v58  ;;  %v1032_v63 = vmax.f32 %v4298_v7, 0.0  ;;  %v970_v42 = vadd.f32 %v4015_v5, %v895_v60  ;;  %v5911_v62 = vld [vmem:[#allocation26_spill] sm:$0xff] }
 0x1ad   :  { %v4507_v8 = vadd.f32 %v4015_v5, %v929_v18  ;;  %v931_v36 = vmul.f32 %v4009_v56, %v856_v2  ;;  %v858_v41 = vmul.f32 %v4036_v31, %v5909_v57  ;;  %v897_v30 = vmul.f32 %v4009_v56, %v5910_v19  ;;  %v1669_v19 = vld [vmem:[%s5721_s3 + $0x58] sm:$0xff] }
 0x1ae   :  { %v4516_v3 = vadd.f32 %v4018_v22, %v932_v17  ;;  %v934_v53 = vmul.f32 %v4012_v6, %v859_v21  ;;  %v1035_v44 = vmax.f32 %v971_v24, 0.0  ;;  %v973_v31 = vadd.f32 %v4018_v22, %v898_v11  ;;  %1233 = vmatmul.mubr.f32.gmra.mxu1 %v1032_v63  ;;  %v5912_v24 = vld [vmem:[#allocation28_spill] sm:$0xff] }
 0x1af   :  { %v4523_v47 = vadd.f32 %v4015_v5, %v931_v36  ;;  %v933_v29 = vmul.f32 %v4009_v56, %v858_v41  ;;  %v900_v7 = vmul.f32 %v4012_v6, %v4196_v12  ;;  %v1034_v51 = vmax.f32 %v970_v42, 0.0 }
 0x1b0   :  { %v4530_v25 = vadd.f32 %v4018_v22, %v934_v53  ;;  %1237 = vmatprep.mubr.f32.mxu1 %v1035_v44  ;;  %v972_v49 = vadd.f32 %v4015_v5, %v897_v30  ;;  %v899_v18 = vmul.f32 %v4009_v56, %v5911_v62  ;;  %v1037_v15 = vmax.f32 %v973_v31, 0.0  ;;  %v1668_v30 = vld [vmem:[%s5721_s3 + $0x50] sm:$0xff]  ;;  %v1665_v44 = vld [vmem:[%s5721_s3 + $0x38] sm:$0xff] }
 0x1b1   :  { %v4533_v60 = vadd.f32 %v4015_v5, %v933_v29  ;;  %v975_v11 = vadd.f32 %v4018_v22, %v900_v7  ;;  %v902_v12 = vmul.f32 %v4012_v6, %v4206_v23  ;;  %v901_v17 = vmul.f32 %v4009_v56, %v5912_v24  ;;  %v1666_v29 = vld [vmem:[%s5721_s3 + $0x40] sm:$0xff]  ;;  %v1664_v31 = vld [vmem:[%s5721_s3 + $0x30] sm:$0xff] }
 0x1b2   :  { %1238 = vmatmul.mubr.f32.gmra.mxu1 %v1034_v51  ;;  %v1036_v33 = vmax.f32 %v972_v49, 0.0  ;;  %v974_v2 = vadd.f32 %v4015_v5, %v899_v18  ;;  %v904_v21 = vmul.f32 %v4012_v6, %v4215_v34  ;;  %v1042_v56 = vmax.f32 %v4255_v46, 0.0 }
 0x1b3   :  { %1242 = vmatprep.mubr.f32.mxu1 %v1037_v15  ;;  %v1039_v54 = vmax.f32 %v975_v11, 0.0  ;;  %v977_v58 = vadd.f32 %v4018_v22, %v902_v12  ;;  %v976_v50 = vadd.f32 %v4015_v5, %v901_v17  ;;  %v1045_v53 = vmax.f32 %v4267_v52, 0.0 }
 0x1b4   :  { %v1038_v36 = vmax.f32 %v974_v2, 0.0  ;;  %v979_v57 = vadd.f32 %v4018_v22, %v904_v21  ;;  %v1044_v6 = vmax.f32 %v4278_v45, 0.0  ;;  %v1047_v34 = vmax.f32 %v4290_v0, 0.0 }
 0x1b5   :  { %v1041_v23 = vmax.f32 %v977_v58, 0.0  ;;  %v1040_v41 = vmax.f32 %v976_v50, 0.0  ;;  %v1046_v5 = vmax.f32 %v4301_v16, 0.0  ;;  %v1049_v22 = vmax.f32 %v4310_v27, 0.0 }
 0x1b6   :  { %1243 = vmatmul.mubr.f32.gmra.mxu1 %v1036_v33  ;;  %v1043_v63 = vmax.f32 %v979_v57, 0.0  ;;  %v1048_v42 = vmax.f32 %v4319_v10, 0.0  ;;  %v1051_v46 = vmax.f32 %v4328_v4, 0.0  ;;  %v1050_v52 = vmax.f32 %v4337_v61, 0.0 }
 0x1b7   :  { %1247 = vmatprep.mubr.f32.mxu1 %v1039_v54  ;;  %v1053_v45 = vmax.f32 %v4346_v37, 0.0  ;;  %v1052_v0 = vmax.f32 %v4357_v26, 0.0  ;;  %v1055_v16 = vmax.f32 %v4366_v9, 0.0  ;;  %v1054_v27 = vmax.f32 %v4375_v35, 0.0 }
 0x1b8   :  { %v1057_v10 = vmax.f32 %v4383_v32, 0.0  ;;  %v1056_v4 = vmax.f32 %v4394_v28, 0.0  ;;  %v1059_v61 = vmax.f32 %v4406_v1, 0.0  ;;  %v1058_v37 = vmax.f32 %v4415_v39, 0.0 }
 0x1b9   :  { %v1061_v26 = vmax.f32 %v4423_v43, 0.0  ;;  %v1060_v9 = vmax.f32 %v4432_v55, 0.0  ;;  %v1063_v35 = vmax.f32 %v4444_v40, 0.0  ;;  %v1062_v32 = vmax.f32 %v4453_v59, 0.0 }
 0x1ba   :  { %1248 = vmatmul.mubr.f32.gmra.mxu1 %v1038_v36  ;;  %v1065_v28 = vmax.f32 %v4461_v38, 0.0  ;;  %v1064_v1 = vmax.f32 %v4471_v14, 0.0  ;;  %v1067_v39 = vmax.f32 %v4479_v20, 0.0  ;;  %v1066_v43 = vmax.f32 %v4488_v13, 0.0  ;;  %v1673_v38 = vld [vmem:[%s5721_s3 + $0x78] sm:$0xff] }
 0x1bb   :  { %1252 = vmatprep.mubr.f32.mxu1 %v1041_v23  ;;  %v1069_v55 = vmax.f32 %v4497_v48, 0.0  ;;  %v1068_v40 = vmax.f32 %v4507_v8, 0.0  ;;  %v1071_v59 = vmax.f32 %v4516_v3, 0.0  ;;  %2828 = vmatprep.subr.mxu0 %v1673_v38  ;;  %v1070_v14 = vmax.f32 %v4523_v47, 0.0  ;;  %v1672_v48 = vld [vmem:[%s5721_s3 + $0x70] sm:$0xff]  ;;  %v1671_v8 = vld [vmem:[%s5721_s3 + $0x68] sm:$0xff] }
 0x1bc   :  { %2829 = vmatpush3.msra.mxu0 %v1673_v38  ;;  %v1073_v20 = vmax.f32 %v4530_v25, 0.0  ;;  %v1072_v13 = vmax.f32 %v4533_v60, 0.0  ;;  %v1670_v3 = vld [vmem:[%s5721_s3 + $0x60] sm:$0xff]  ;;  %v1667_v47 = vld [vmem:[%s5721_s3 + $0x48] sm:$0xff] }
 0x1bd   :  { %2830 = vmatprep.subr.mxu0 %v1672_v48 }
 0x1be   :  { %1253 = vmatmul.mubr.f32.gmra.mxu1 %v1040_v41  ;;  %2831 = vmatpush3.msra.mxu0 %v1672_v48  ;;  %v1663_v41 = vld [vmem:[%s5721_s3 + $0x28] sm:$0xff] }
 0x1bf   :  { %1257 = vmatprep.mubr.f32.mxu1 %v1043_v63  ;;  %2832 = vmatprep.subr.mxu0 %v1671_v8  ;;  %v1662_v63 = vld [vmem:[%s5721_s3 + $0x20] sm:$0xff] }
 0x1c0   :  { %2833 = vmatpush3.msra.mxu0 %v1671_v8 }
 0x1c1   :  { %2834 = vmatprep.subr.mxu0 %v1670_v3 }
 0x1c2   :  { %1258 = vmatmul.mubr.f32.gmra.mxu1 %v1042_v56  ;;  %2835 = vmatpush3.msra.mxu0 %v1670_v3 }
 0x1c3   :  { %1262 = vmatprep.mubr.f32.mxu1 %v1045_v53  ;;  %2836 = vmatprep.subr.mxu0 %v1669_v19  ;;  %v1661_v53 = vld [vmem:[%s5721_s3 + $0x18] sm:$0xff] }
 0x1c4   :  { %2837 = vmatpush3.msra.mxu0 %v1669_v19 }
 0x1c5   :  { %2838 = vmatprep.subr.mxu0 %v1668_v30 }
 0x1c6   :  { %1263 = vmatmul.mubr.f32.gmra.mxu1 %v1044_v6  ;;  %2839 = vmatpush3.msra.mxu0 %v1668_v30 }
 0x1c7   :  { %1267 = vmatprep.mubr.f32.mxu1 %v1047_v34  ;;  %2840 = vmatprep.subr.mxu0 %v1667_v47  ;;  %v1660_v34 = vld [vmem:[%s5721_s3 + $0x10] sm:$0xff] }
 0x1c8   :  { %2841 = vmatpush3.msra.mxu0 %v1667_v47 }
 0x1c9   :  { %2842 = vmatprep.subr.mxu0 %v1666_v29 }
 0x1ca   :  { %1268 = vmatmul.mubr.f32.gmra.mxu1 %v1046_v5  ;;  %2843 = vmatpush3.msra.mxu0 %v1666_v29 }
 0x1cb   :  { %1272 = vmatprep.mubr.f32.mxu1 %v1049_v22  ;;  %2844 = vmatprep.subr.mxu0 %v1665_v44  ;;  %v1659_v22 = vld [vmem:[%s5721_s3 + $0x8] sm:$0xff] }
 0x1cc   :  { %2845 = vmatpush3.msra.mxu0 %v1665_v44 }
 0x1cd   :  { %2846 = vmatprep.subr.mxu0 %v1664_v31 }
 0x1ce   :  { %1273 = vmatmul.mubr.f32.gmra.mxu1 %v1048_v42  ;;  %2847 = vmatpush3.msra.mxu0 %v1664_v31 }
 0x1cf   :  { %1277 = vmatprep.mubr.f32.mxu1 %v1051_v46  ;;  %2848 = vmatprep.subr.mxu0 %v1663_v41  ;;  %v1658_v46 = vld [vmem:[%s5721_s3] sm:$0xff] }
 0x1d0   :  { %2849 = vmatpush3.msra.mxu0 %v1663_v41 }
 0x1d1   :  { %2850 = vmatprep.subr.mxu0 %v1662_v63 }
 0x1d2   :  { %1278 = vmatmul.mubr.f32.gmra.mxu1 %v1050_v52  ;;  %2851 = vmatpush3.msra.mxu0 %v1662_v63 }
 0x1d3   :  { %1282 = vmatprep.mubr.f32.mxu1 %v1053_v45  ;;  %2852 = vmatprep.subr.mxu0 %v1661_v53 }
 0x1d4   :  { %2853 = vmatpush3.msra.mxu0 %v1661_v53 }
 0x1d5   :  { %2854 = vmatprep.subr.mxu0 %v1660_v34 }
 0x1d6   :  { %1283 = vmatmul.mubr.f32.gmra.mxu1 %v1052_v0  ;;  %2855 = vmatpush3.msra.mxu0 %v1660_v34  ;;  %v4643_v0 = vld [vmem:[%s5723_s5 + $0x8] ss:$0 sm:$0xff] }
 0x1d7   :  { %1287 = vmatprep.mubr.f32.mxu1 %v1055_v16  ;;  %2856 = vmatprep.subr.mxu0 %v1659_v22 }
 0x1d8   :  { %2857 = vmatpush3.msra.mxu0 %v1659_v22 }
 0x1d9   :  { %2858 = vmatprep.subr.mxu0 %v1658_v46 }
 0x1da   :  { %1288 = vmatmul.mubr.f32.gmra.mxu1 %v1054_v27  ;;  %2859 = vmatpush3.msra.mxu0 %v1658_v46 }
 0x1db   :  { %1292 = vmatprep.mubr.f32.mxu1 %v1057_v10 }
 0x1de   :  { %1293 = vmatmul.mubr.f32.gmra.mxu1 %v1056_v4 }
 0x1df   :  { %1297 = vmatprep.mubr.f32.mxu1 %v1059_v61 }
 0x1e2   :  { %1298 = vmatmul.mubr.f32.gmra.mxu1 %v1058_v37  ;;  %v5913_v37 = vld [vmem:[#allocation5_spill] sm:$0xff] }
 0x1e3   :  { %1302 = vmatprep.mubr.f32.mxu1 %v1061_v26 }
 0x1e6   :  { %1303 = vmatmul.mubr.f32.gmra.mxu1 %v1060_v9 }
 0x1e7   :  { %1307 = vmatprep.mubr.f32.mxu1 %v1063_v35 }
 0x1ea   :  { %1308 = vmatmul.mubr.f32.gmra.mxu1 %v1062_v32 }
 0x1eb   :  { %1312 = vmatprep.mubr.f32.mxu1 %v1065_v28 }
 0x1ee   :  { %1313 = vmatmul.mubr.f32.gmra.mxu1 %v1064_v1 }
 0x1ef   :  { %1317 = vmatprep.mubr.f32.mxu1 %v1067_v39 }
 0x1f2   :  { %1318 = vmatmul.mubr.f32.gmra.mxu1 %v1066_v43 }
 0x1f3   :  { %1322 = vmatprep.mubr.f32.mxu1 %v1069_v55 }
 0x1f6   :  { %1323 = vmatmul.mubr.f32.gmra.mxu1 %v1068_v40 }
 0x1f7   :  { %1327 = vmatprep.mubr.f32.mxu1 %v1071_v59 }
 0x1fa   :  { %1328 = vmatmul.mubr.f32.gmra.mxu1 %v1070_v14 }
 0x1fb   :  { %1332 = vmatprep.mubr.f32.mxu1 %v1073_v20 }
 0x1fe   :  { %1333 = vmatmul.mubr.f32.gmra.mxu1 %v1072_v13 }
 0x23d   :  { %v1179_v7 = vpop.f32.mrf.mxu1 }
 0x23e   :  { %v1180_v27 = vadd.f32 %v4643_v0, %v1179_v7 }
 0x23f   :  { %v1181_v25 = vpop.f32.mrf.mxu1 }
 0x240   :  { %v4650_v26 = vrot.slane %v1180_v27, %v5913_v37 }
 0x241   :  { %v1184_v60 = vpop.f32.mrf.mxu1 }
 0x242   :  { %v1185_v4 = vadd.f32 %v4643_v0, %v1184_v60  ;;  %v4660_v39 = vsub.f32 %v1180_v27, %v4650_v26 }
 0x243   :  { %v1186_v51 = vpop.f32.mrf.mxu1 }
 0x244   :  { %v4656_v32 = vsub.f32 %v1185_v4, %v4650_v26  ;;  %v1411_v13 = vmul.f32 %v4660_v39, %v4660_v39 }
 0x245   :  { %v1189_v49 = vpop.f32.mrf.mxu1 }
 0x246   :  { %v1190_v9 = vadd.f32 %v4643_v0, %v1189_v49  ;;  %v1412_v59 = vmul.f32 %v4656_v32, %v4656_v32  ;;  %v1374_v30 = vadd.f32 %v4656_v32, %v4660_v39 }
 0x247   :  { %v1191_v62 = vpop.f32.mrf.mxu1 }
 0x248   :  { %v4663_v43 = vsub.f32 %v1190_v9, %v4650_v26  ;;  %v1443_v47 = vadd.f32 %v1412_v59, %v1411_v13 }
 0x249   :  { %v1194_v18 = vpop.f32.mrf.mxu1 }
 0x24a   :  { %v1195_v28 = vadd.f32 %v4643_v0, %v1194_v18  ;;  %v1413_v48 = vmul.f32 %v4663_v43, %v4663_v43  ;;  %v1375_v25 = vadd.f32 %v1374_v30, %v4663_v43 }
 0x24b   :  { %v1196_v15 = vpop.f32.mrf.mxu1 }
 0x24c   :  { %v4671_v38 = vsub.f32 %v1195_v28, %v4650_v26  ;;  %v1444_v60 = vadd.f32 %v1443_v47, %v1413_v48 }
 0x24d   :  { %v1199_v11 = vpop.f32.mrf.mxu1 }
 0x24e   :  { %v1200_v55 = vadd.f32 %v4643_v0, %v1199_v11  ;;  %v1414_v29 = vmul.f32 %v4671_v38, %v4671_v38  ;;  %v1376_v15 = vadd.f32 %v1375_v25, %v4671_v38 }
 0x24f   :  { %v1201_v12 = vpop.f32.mrf.mxu1 }
 0x250   :  { %v4679_v8 = vsub.f32 %v1200_v55, %v4650_v26  ;;  %v1445_v11 = vadd.f32 %v1444_v60, %v1414_v29 }
 0x251   :  { %v1204_v33 = vpop.f32.mrf.mxu1 }
 0x252   :  { %v1205_v14 = vadd.f32 %v4643_v0, %v1204_v33  ;;  %v1415_v51 = vmul.f32 %v4679_v8, %v4679_v8 }
 0x253   :  { %v1206_v2 = vpop.f32.mrf.mxu1 }
 0x254   :  { %v4689_v44 = vsub.f32 %v1205_v14, %v4650_v26 }
 0x255   :  { %v1209_v24 = vpop.f32.mrf.mxu1 }
 0x256   :  { %v1210_v3 = vadd.f32 %v4643_v0, %v1209_v24  ;;  %v1416_v12 = vmul.f32 %v4689_v44, %v4689_v44 }
 0x257   :  { %v1211_v17 = vpop.f32.mrf.mxu1 }
 0x258   :  { %v4696_v49 = vsub.f32 %v1210_v3, %v4650_v26  ;;  %v1377_v17 = vadd.f32 %v1376_v15, %v4679_v8 }
 0x259   :  { %v1214_v54 = vpop.f32.mrf.mxu1 }
 0x25a   :  { %v1215_v31 = vadd.f32 %v4643_v0, %v1214_v54  ;;  %v1446_v54 = vadd.f32 %v1445_v11, %v1415_v51  ;;  %v1378_v41 = vadd.f32 %v1377_v17, %v4689_v44 }
 0x25b   :  { %v1216_v58 = vpop.f32.mrf.mxu1 }
 0x25c   :  { %v4704_v33 = vsub.f32 %v1215_v31, %v4650_v26  ;;  %v1417_v58 = vmul.f32 %v4696_v49, %v4696_v49  ;;  %v1447_v63 = vadd.f32 %v1446_v54, %v1416_v12 }
 0x25d   :  { %v4610_v21 = vpop.f32.mrf.mxu1 }
 0x25e   :  { %v1220_v62 = vadd.f32 %v4643_v0, %v4610_v21  ;;  %v1448_v22 = vadd.f32 %v1447_v63, %v1417_v58 }
 0x25f   :  { %v1221_v36 = vpop.f32.mrf.mxu1 }
 0x260   :  { %v4712_v21 = vsub.f32 %v1220_v62, %v4650_v26 }
 0x263   :  { %v4612_v50 = vpop.f32.mrf.mxu1 }
 0x264   :  { %v1225_v2 = vadd.f32 %v4643_v0, %v4612_v50  ;;  %v1418_v50 = vmul.f32 %v4704_v33, %v4704_v33 }
 0x265   :  { %v1226_v23 = vpop.f32.mrf.mxu1 }
 0x266   :  { %v1449_v4 = vadd.f32 %v1448_v22, %v1418_v50 }
 0x268   :  { %v4614_v57 = vpop.f32.mrf.mxu1 }
 0x269   :  { %v1230_v36 = vadd.f32 %v4643_v0, %v4614_v57  ;;  %v1419_v57 = vmul.f32 %v4712_v21, %v4712_v21 }
 0x26a   :  { %v1231_v56 = vpop.f32.mrf.mxu1 }
 0x26b   :  { %v4720_v56 = vsub.f32 %v1225_v2, %v4650_v26  ;;  %v4728_v46 = vsub.f32 %v1230_v36, %v4650_v26  ;;  %v1450_v55 = vadd.f32 %v1449_v4, %v1419_v57 }
 0x26e   :  { %v4625_v6 = vpop.f32.mrf.mxu1 }
 0x26f   :  { %v1235_v53 = vadd.f32 %v4643_v0, %v4625_v6  ;;  %v1420_v6 = vmul.f32 %v4720_v56, %v4720_v56 }
 0x270   :  { %v1236_v5 = vpop.f32.mrf.mxu1 }
 0x271   :  { %v1379_v5 = vadd.f32 %v1378_v41, %v4696_v49  ;;  %v1451_v48 = vadd.f32 %v1450_v55, %v1420_v6 }
 0x272   :  { %v4633_v42 = vpop.f32.mrf.mxu1 }
 0x273   :  { %v1380_v27 = vadd.f32 %v1379_v5, %v4704_v33 }
 0x274   :  { %v1241_v52 = vpop.f32.mrf.mxu1 }
 0x275   :  { %v1240_v52 = vadd.f32 %v4643_v0, %v4633_v42  ;;  %v1421_v42 = vmul.f32 %v4728_v46, %v4728_v46 }
 0x276   :  { %v4638_v45 = vpop.f32.mrf.mxu1 }
 0x277   :  { %v1245_v9 = vadd.f32 %v4643_v0, %v4638_v45  ;;  %v4744_v59 = vsub.f32 %v1240_v52, %v4650_v26  ;;  %v1452_v31 = vadd.f32 %v1451_v48, %v1421_v42 }
 0x278   :  { %v1246_v16 = vpop.f32.mrf.mxu1 }
 0x279   :  { %v4752_v3 = vsub.f32 %v1245_v9, %v4650_v26 }
 0x27a   :  { %v4646_v10 = vpop.f32.mrf.mxu1 }
 0x27b   :  { %v1250_v14 = vadd.f32 %v4643_v0, %v4646_v10  ;;  %v1423_v10 = vmul.f32 %v4744_v59, %v4744_v59 }
 0x27c   :  { %v1251_v61 = vpop.f32.mrf.mxu1 }
 0x27d   :  { %v4736_v61 = vsub.f32 %v1235_v53, %v4650_v26 }
 0x27e   :  { %v4653_v35 = vpop.f32.mrf.mxu1 }
 0x27f   :  { %v1422_v45 = vmul.f32 %v4736_v61, %v4736_v61  ;;  %v1255_v30 = vadd.f32 %v4643_v0, %v4653_v35  ;;  %v1424_v35 = vmul.f32 %v4752_v3, %v4752_v3 }
 0x280   :  { %v1256_v1 = vpop.f32.mrf.mxu1 }
 0x281   :  { %v1381_v1 = vadd.f32 %v1380_v27, %v4712_v21  ;;  %v1453_v62 = vadd.f32 %v1452_v31, %v1422_v45  ;;  %v4768_v15 = vsub.f32 %v1255_v30, %v4650_v26 }
 0x282   :  { %v4666_v40 = vpop.f32.mrf.mxu1 }
 0x283   :  { %v1382_v13 = vadd.f32 %v1381_v1, %v4720_v56  ;;  %v1260_v25 = vadd.f32 %v4643_v0, %v4666_v40  ;;  %v1426_v63 = vmul.f32 %v4768_v15, %v4768_v15 }
 0x284   :  { %v1261_v20 = vpop.f32.mrf.mxu1 }
 0x285   :  { %v1383_v29 = vadd.f32 %v1382_v13, %v4728_v46  ;;  %v4776_v17 = vsub.f32 %v1260_v25, %v4650_v26 }
 0x286   :  { %v4682_v19 = vpop.f32.mrf.mxu1 }
 0x287   :  { %v1384_v51 = vadd.f32 %v1383_v29, %v4736_v61  ;;  %v1265_v11 = vadd.f32 %v4643_v0, %v4682_v19  ;;  %v1427_v22 = vmul.f32 %v4776_v17, %v4776_v17 }
 0x288   :  { %v1266_v7 = vpop.f32.mrf.mxu1 }
 0x289   :  { %v4760_v7 = vsub.f32 %v1250_v14, %v4650_v26  ;;  %v1385_v2 = vadd.f32 %v1384_v51, %v4744_v59  ;;  %v4783_v19 = vsub.f32 %v1265_v11, %v4650_v26 }
 0x28a   :  { %v1269_v18 = vpop.f32.mrf.mxu1 }
 0x28b   :  { %v1425_v40 = vmul.f32 %v4760_v7, %v4760_v7  ;;  %v1270_v54 = vadd.f32 %v4643_v0, %v1269_v18  ;;  %v1386_v36 = vadd.f32 %v1385_v2, %v4752_v3  ;;  %v1428_v6 = vmul.f32 %v4783_v19, %v4783_v19 }
 0x28c   :  { %v1271_v24 = vpop.f32.mrf.mxu1 }
 0x28d   :  { %v1454_v24 = vadd.f32 %v1453_v62, %v1423_v10  ;;  %v4790_v18 = vsub.f32 %v1270_v54, %v4650_v26 }
 0x28e   :  { %v1274_v23 = vpop.f32.mrf.mxu1 }
 0x28f   :  { %v1455_v41 = vadd.f32 %v1454_v24, %v1424_v35  ;;  %v1275_v50 = vadd.f32 %v4643_v0, %v1274_v23  ;;  %v1429_v42 = vmul.f32 %v4790_v18, %v4790_v18 }
 0x290   :  { %v1276_v34 = vpop.f32.mrf.mxu1 }
 0x291   :  { %v1387_v34 = vadd.f32 %v1386_v36, %v4760_v7  ;;  %v1456_v5 = vadd.f32 %v1455_v41, %v1425_v40  ;;  %v4797_v23 = vsub.f32 %v1275_v50, %v4650_v26  ;;  %v4837_v50 = vld [vmem:[%s5722_s4 + $0x38] sm:$0xff] }
 0x292   :  { %v1279_v16 = vpop.f32.mrf.mxu1  ;;  %2972 = vmatprep.subr.mxu1 %v4837_v50  ;;  %2908 = vmatprep.subr.mxu0 %v4837_v50 }
 0x293   :  { %v1280_v57 = vadd.f32 %v4643_v0, %v1279_v16  ;;  %v1388_v27 = vadd.f32 %v1387_v34, %v4768_v15  ;;  %v1457_v4 = vadd.f32 %v1456_v5, %v1426_v63  ;;  %v1430_v30 = vmul.f32 %v4797_v23, %v4797_v23  ;;  %2980 = vmatpush3.msra.mxu1 %v4837_v50 }
 0x294   :  { %v1281_v28 = vpop.f32.mrf.mxu1 }
 0x295   :  { %v1389_v1 = vadd.f32 %v1388_v27, %v4776_v17  ;;  %v1458_v55 = vadd.f32 %v1457_v4, %v1427_v22  ;;  %v4804_v16 = vsub.f32 %v1280_v57, %v4650_v26 }
 0x296   :  { %v1284_v20 = vpop.f32.mrf.mxu1 }
 0x297   :  { %v1285_v9 = vadd.f32 %v4643_v0, %v1284_v20  ;;  %v1390_v48 = vadd.f32 %v1389_v1, %v4783_v19  ;;  %v1459_v45 = vadd.f32 %v1458_v55, %v1428_v6  ;;  %v1431_v25 = vmul.f32 %v4804_v16, %v4804_v16 }
 0x298   :  { %v1286_v47 = vpop.f32.mrf.mxu1 }
 0x299   :  { %v4811_v20 = vsub.f32 %v1285_v9, %v4650_v26  ;;  %v1391_v31 = vadd.f32 %v1390_v48, %v4790_v18  ;;  %v1460_v10 = vadd.f32 %v1459_v45, %v1429_v42 }
 0x29a   :  { %v1289_v60 = vpop.f32.mrf.mxu1 }
 0x29b   :  { %v1290_v14 = vadd.f32 %v4643_v0, %v1289_v60  ;;  %v1392_v35 = vadd.f32 %v1391_v31, %v4797_v23  ;;  %v1461_v11 = vadd.f32 %v1460_v10, %v1430_v30 }
 0x29c   :  { %v1291_v12 = vpop.f32.mrf.mxu1 }
 0x29d   :  { %v4818_v60 = vsub.f32 %v1290_v14, %v4650_v26  ;;  %v1432_v12 = vmul.f32 %v4811_v20, %v4811_v20  ;;  %v1393_v40 = vadd.f32 %v1392_v35, %v4804_v16 }
 0x29e   :  { %v1294_v58 = vpop.f32.mrf.mxu1 }
 0x29f   :  { %v1295_v47 = vadd.f32 %v4643_v0, %v1294_v58  ;;  %v1462_v58 = vadd.f32 %v1461_v11, %v1431_v25  ;;  %v1433_v36 = vmul.f32 %v4818_v60, %v4818_v60 }
 0x2a0   :  { %v1296_v53 = vpop.f32.mrf.mxu1 }
 0x2a1   :  { %v4825_v2 = vsub.f32 %v1295_v47, %v4650_v26  ;;  %v1394_v53 = vadd.f32 %v1393_v40, %v4811_v20  ;;  %v1463_v5 = vadd.f32 %v1462_v58, %v1432_v12 }
 0x2a2   :  { %v1299_v52 = vpop.f32.mrf.mxu1 }
 0x2a3   :  { %v1300_v51 = vadd.f32 %v4643_v0, %v1299_v52  ;;  %v1434_v22 = vmul.f32 %v4825_v2, %v4825_v2  ;;  %v1395_v52 = vadd.f32 %v1394_v53, %v4818_v60  ;;  %v1464_v6 = vadd.f32 %v1463_v5, %v1433_v36 }
 0x2a4   :  { %v1301_v28 = vpop.f32.mrf.mxu1 }
 0x2a5   :  { %v4832_v41 = vsub.f32 %v1300_v51, %v4650_v26  ;;  %v1396_v1 = vadd.f32 %v1395_v52, %v4825_v2  ;;  %v1465_v14 = vadd.f32 %v1464_v6, %v1434_v22 }
 0x2a6   :  { %v1304_v13 = vpop.f32.mrf.mxu1 }
 0x2a7   :  { %v1305_v54 = vadd.f32 %v4643_v0, %v1304_v13  ;;  %v1435_v9 = vmul.f32 %v4832_v41, %v4832_v41  ;;  %v1397_v48 = vadd.f32 %v1396_v1, %v4832_v41 }
 0x2a8   :  { %v1306_v29 = vpop.f32.mrf.mxu1 }
 0x2a9   :  { %v4848_v27 = vsub.f32 %v1305_v54, %v4650_v26  ;;  %v1466_v47 = vadd.f32 %v1465_v14, %v1435_v9 }
 0x2aa   :  { %v1309_v62 = vpop.f32.mrf.mxu1 }
 0x2ab   :  { %v1310_v34 = vadd.f32 %v4643_v0, %v1309_v62  ;;  %v1436_v45 = vmul.f32 %v4848_v27, %v4848_v27  ;;  %v1398_v31 = vadd.f32 %v1397_v48, %v4848_v27 }
 0x2ac   :  { %v1311_v24 = vpop.f32.mrf.mxu1 }
 0x2ad   :  { %v4855_v55 = vsub.f32 %v1310_v34, %v4650_v26  ;;  %v1467_v35 = vadd.f32 %v1466_v47, %v1436_v45 }
 0x2ae   :  { %v1314_v63 = vpop.f32.mrf.mxu1 }
 0x2af   :  { %v1315_v4 = vadd.f32 %v4643_v0, %v1314_v63  ;;  %v1437_v10 = vmul.f32 %v4855_v55, %v4855_v55  ;;  %v1399_v11 = vadd.f32 %v1398_v31, %v4855_v55 }
 0x2b0   :  { %v1316_v57 = vpop.f32.mrf.mxu1 }
 0x2b1   :  { %v4862_v30 = vsub.f32 %v1315_v4, %v4650_v26  ;;  %v1468_v54 = vadd.f32 %v1467_v35, %v1437_v10 }
 0x2b2   :  { %v1319_v28 = vpop.f32.mrf.mxu1 }
 0x2b3   :  { %v1320_v42 = vadd.f32 %v4643_v0, %v1319_v28  ;;  %v1438_v12 = vmul.f32 %v4862_v30, %v4862_v30  ;;  %v1400_v58 = vadd.f32 %v1399_v11, %v4862_v30 }
 0x2b4   :  { %v1321_v13 = vpop.f32.mrf.mxu1 }
 0x2b5   :  { %v4868_v25 = vsub.f32 %v1320_v42, %v4650_v26  ;;  %v1469_v34 = vadd.f32 %v1468_v54, %v1438_v12 }
 0x2b6   :  { %v1324_v29 = vpop.f32.mrf.mxu1 }
 0x2b7   :  { %v1325_v51 = vadd.f32 %v4643_v0, %v1324_v29  ;;  %v1439_v36 = vmul.f32 %v4868_v25, %v4868_v25  ;;  %v1401_v5 = vadd.f32 %v1400_v58, %v4868_v25 }
 0x2b8   :  { %v1326_v62 = vpop.f32.mrf.mxu1 }
 0x2b9   :  { %v4875_v24 = vsub.f32 %v1325_v51, %v4650_v26  ;;  %v1470_v4 = vadd.f32 %v1469_v34, %v1439_v36 }
 0x2ba   :  { %v1329_v40 = vpop.f32.mrf.mxu1 }
 0x2bb   :  { %v1330_v63 = vadd.f32 %v4643_v0, %v1329_v40  ;;  %v1440_v22 = vmul.f32 %v4875_v24, %v4875_v24  ;;  %v1402_v6 = vadd.f32 %v1401_v5, %v4875_v24 }
 0x2bc   :  { %v1331_v53 = vpop.f32.mrf.mxu1 }
 0x2bd   :  { %v4885_v57 = vsub.f32 %v1330_v63, %v4650_v26  ;;  %v1471_v42 = vadd.f32 %v1470_v4, %v1440_v22 }
 0x2be   :  { %v1334_v52 = vpop.f32.mrf.mxu1 }
 0x2bf   :  { %v1441_v9 = vmul.f32 %v4885_v57, %v4885_v57  ;;  %v1335_v28 = vadd.f32 %v4643_v0, %v1334_v52  ;;  %v1403_v14 = vadd.f32 %v1402_v6, %v4885_v57 }
 0x2c0   :  { %v1336_v1 = vpop.f32.mrf.mxu1 }
 0x2c1   :  { %v4893_v13 = vsub.f32 %v1335_v28, %v4650_v26  ;;  %v1472_v48 = vadd.f32 %v1471_v42, %v1441_v9 }
 0x2c3   :  { %v1404_v45 = vadd.f32 %v1403_v14, %v4893_v13  ;;  %v1442_v47 = vmul.f32 %v4893_v13, %v4893_v13 }
 0x2c5   :  { %v1405_v29 = vrot.slane %v1404_v45, 4  ;;  %v1473_v31 = vadd.f32 %v1472_v48, %v1442_v47 }
 0x2c7   :  { %v1406_v10 = vadd.f32 %v1405_v29, %v1404_v45  ;;  %v1474_v51 = vrot.slane %v1473_v31, 4 }
 0x2c9   :  { %v1407_v62 = vrot.slane %v1406_v10, 2  ;;  %v1475_v35 = vadd.f32 %v1474_v51, %v1473_v31  ;;  %v4933_v51 = vld [vmem:[%s5723_s5 + $0x9] ss:$0 sm:$0xff] }
 0x2cb   :  { %v1408_v0 = vadd.f32 %v1407_v62, %v1406_v10  ;;  %v1476_v11 = vrot.slane %v1475_v35, 2 }
 0x2cd   :  { %v1409_v12 = vrot.slane %v1408_v0, 1  ;;  %v1477_v40 = vadd.f32 %v1476_v11, %v1475_v35  ;;  %v4948_v11 = vld [vmem:[%s5723_s5 + $0xa] ss:$0 sm:$0xff] }
 0x2cf   :  { %v1410_v54 = vadd.f32 %v1409_v12, %v1408_v0  ;;  %v1478_v58 = vrot.slane %v1477_v40, 1 }
 0x2d1   :  { %v1479_v26 = vadd.f32 %v1478_v58, %v1477_v40  ;;  %v4898_v36 = vmul.f32 0.00390625, %v1410_v54 }
 0x2d3   :  { %v1481_v63 = vmul.f32 0.00390625, %v1479_v26  ;;  %v1482_v53 = vmul.f32 %v4898_v36, %v4898_v36  ;;  %v1516_v34 = vsub.f32 %v4893_v13, %v4898_v36  ;;  %v1508_v4 = vsub.f32 %v4825_v2, %v4898_v36 }
 0x2d4   :  { %v1509_v6 = vsub.f32 %v4832_v41, %v4898_v36  ;;  %v1510_v9 = vsub.f32 %v4848_v27, %v4898_v36  ;;  %v1511_v28 = vsub.f32 %v4855_v55, %v4898_v36  ;;  %v1512_v1 = vsub.f32 %v4862_v30, %v4898_v36 }
 0x2d5   :  { %v1483_v5 = vsub.f32 %v1481_v63, %v1482_v53  ;;  %v1513_v42 = vsub.f32 %v4868_v25, %v4898_v36  ;;  %v1514_v14 = vsub.f32 %v4875_v24, %v4898_v36  ;;  %v1515_v48 = vsub.f32 %v4885_v57, %v4898_v36 }
 0x2d6   :  { %v1485_v45 = vsub.f32 %v4660_v39, %v4898_v36  ;;  %v1486_v47 = vsub.f32 %v4656_v32, %v4898_v36  ;;  %v1487_v29 = vsub.f32 %v4663_v43, %v4898_v36  ;;  %v1488_v31 = vsub.f32 %v4671_v38, %v4898_v36 }
 0x2d7   :  { %v1484_v22 = vmax.f32 %v1483_v5, 0.0  ;;  %v1489_v62 = vsub.f32 %v4679_v8, %v4898_v36  ;;  %v1490_v38 = vsub.f32 %v4689_v44, %v4898_v36  ;;  %v1491_v0 = vsub.f32 %v4696_v49, %v4898_v36 }
 0x2d8   :  { %v1492_v58 = vsub.f32 %v4704_v33, %v4898_v36 }
 0x2d9   :  { %v1517_v52 = vadd.f32 1e-05, %v1484_v22 }
 0x2db   :  { %2996 = vrsqrt.f32 %v1517_v52  ;;  %v1493_v52 = vsub.f32 %v4712_v21, %v4898_v36  ;;  %v1495_v21 = vsub.f32 %v4728_v46, %v4898_v36  ;;  %v1496_v46 = vsub.f32 %v4736_v61, %v4898_v36 }
 0x2dc   :  { %v1498_v61 = vsub.f32 %v4752_v3, %v4898_v36 }
 0x2e8   :  { %v4928_v10 = vpop.eup %2996 }
 0x2e9   :  { %v1520_v39 = vmul.f32 %v4928_v10, %v1486_v47  ;;  %v1519_v32 = vmul.f32 %v4928_v10, %v1485_v45  ;;  %v1521_v35 = vmul.f32 %v4928_v10, %v1487_v29  ;;  %v1522_v43 = vmul.f32 %v4928_v10, %v1488_v31 }
 0x2ea   :  { %v1523_v8 = vmul.f32 %v4928_v10, %v1489_v62  ;;  %v1524_v49 = vmul.f32 %v4928_v10, %v1490_v38  ;;  %v1525_v26 = vmul.f32 %v4928_v10, %v1491_v0  ;;  %v1526_v33 = vmul.f32 %v4928_v10, %v1492_v58 }
 0x2eb   :  { %v1556_v12 = vmul.f32 %v4933_v51, %v1520_v39  ;;  %v1555_v40 = vmul.f32 %v4933_v51, %v1519_v32  ;;  %v1557_v54 = vmul.f32 %v4933_v51, %v1521_v35  ;;  %v1558_v44 = vmul.f32 %v4933_v51, %v1522_v43 }
 0x2ec   :  { %v1559_v22 = vmul.f32 %v4933_v51, %v1523_v8  ;;  %v1560_v31 = vmul.f32 %v4933_v51, %v1524_v49  ;;  %v1561_v32 = vmul.f32 %v4933_v51, %v1525_v26  ;;  %v1527_v35 = vmul.f32 %v4928_v10, %v1493_v52 }
 0x2ed   :  { %v1591_v63 = vadd.f32 %v4948_v11, %v1555_v40  ;;  %v1592_v53 = vadd.f32 %v4948_v11, %v1556_v12  ;;  %v1593_v5 = vadd.f32 %v4948_v11, %v1557_v54  ;;  %v1594_v29 = vadd.f32 %v4948_v11, %v1558_v44 }
 0x2ee   :  { %v1595_v39 = vadd.f32 %v4948_v11, %v1559_v22  ;;  %v1494_v43 = vsub.f32 %v4720_v56, %v4898_v36  ;;  %v1562_v38 = vmul.f32 %v4933_v51, %v1526_v33  ;;  %v1596_v8 = vadd.f32 %v4948_v11, %v1560_v31 }
 0x2ef   :  { %v1623_v45 = vmax.f32 %v1591_v63, 0.0  ;;  %v1624_v47 = vmax.f32 %v1592_v53, 0.0  ;;  %v1625_v62 = vmax.f32 %v1593_v5, 0.0  ;;  %v1626_v0 = vmax.f32 %v1594_v29, 0.0 }
 0x2f0   :  { %v1528_v12 = vmul.f32 %v4928_v10, %v1494_v43  ;;  %v1627_v40 = vmax.f32 %v1595_v39, 0.0  ;;  %v1597_v54 = vadd.f32 %v4948_v11, %v1561_v32  ;;  %v1563_v58 = vmul.f32 %v4933_v51, %v1527_v35 }
 0x2f1   :  { %2860 = vmatprep.mubr.f32.mxu0 %v1623_v45  ;;  %v1529_v56 = vmul.f32 %v4928_v10, %v1495_v21  ;;  %v1497_v44 = vsub.f32 %v4744_v59, %v4898_v36  ;;  %v1598_v49 = vadd.f32 %v4948_v11, %v1562_v38  ;;  %v1628_v26 = vmax.f32 %v1596_v8, 0.0 }
 0x2f2   :  { %2861 = vmatmul.mubr.f32.vlgmr.msra.gmra.mxu0 %v1624_v47  ;;  %v1530_v63 = vmul.f32 %v4928_v10, %v1496_v46  ;;  %v1629_v53 = vmax.f32 %v1597_v54, 0.0  ;;  %v1599_v5 = vadd.f32 %v4948_v11, %v1563_v58  ;;  %v1499_v59 = vsub.f32 %v4760_v7, %v4898_v36 }
 0x2f3   :  { %2863 = vmatprep.mubr.f32.mxu0 %v1625_v62  ;;  %2909 = vmatpush3.msra.mxu0 %v4837_v50  ;;  %v1564_v50 = vmul.f32 %v4933_v51, %v1528_v12  ;;  %v1565_v22 = vmul.f32 %v4933_v51, %v1529_v56  ;;  %v1531_v52 = vmul.f32 %v4928_v10, %v1497_v44  ;;  %v1630_v45 = vmax.f32 %v1598_v49, 0.0 }
 0x2f4   :  { %v1566_v33 = vmul.f32 %v4933_v51, %v1530_v63  ;;  %v1532_v29 = vmul.f32 %v4928_v10, %v1498_v61  ;;  %v1533_v31 = vmul.f32 %v4928_v10, %v1499_v59  ;;  %v1500_v62 = vsub.f32 %v4768_v15, %v4898_v36 }
 0x2f5   :  { %v1600_v47 = vadd.f32 %v4948_v11, %v1564_v50  ;;  %v1631_v39 = vmax.f32 %v1599_v5, 0.0  ;;  %v1601_v3 = vadd.f32 %v4948_v11, %v1565_v22  ;;  %v1567_v32 = vmul.f32 %v4933_v51, %v1531_v52 }
 0x2f6   :  { %2864 = vmatmul.mubr.f32.gmra.mxu0 %v1626_v0  ;;  %v1501_v7 = vsub.f32 %v4776_v17, %v4898_v36  ;;  %v1502_v35 = vsub.f32 %v4783_v19, %v4898_v36  ;;  %v1534_v43 = vmul.f32 %v4928_v10, %v1500_v62  ;;  %v1602_v38 = vadd.f32 %v4948_v11, %v1566_v33 }
 0x2f7   :  { %2866 = vmatprep.mubr.f32.mxu0 %v1627_v40  ;;  %v1632_v21 = vmax.f32 %v1600_v47, 0.0  ;;  %v1568_v15 = vmul.f32 %v4933_v51, %v1532_v29  ;;  %v1569_v0 = vmul.f32 %v4933_v51, %v1533_v31  ;;  %v1633_v8 = vmax.f32 %v1601_v3, 0.0 }
 0x2f8   :  { %v1603_v12 = vadd.f32 %v4948_v11, %v1567_v32  ;;  %v1535_v40 = vmul.f32 %v4928_v10, %v1501_v7  ;;  %v5018_v17 = vmul.f32 %v4928_v10, %v1512_v1  ;;  %v5024_v19 = vmul.f32 %v4928_v10, %v1513_v42 }
 0x2f9   :  { %v5030_v54 = vmul.f32 %v4928_v10, %v1514_v14  ;;  %v5036_v30 = vmul.f32 %v4928_v10, %v1515_v48  ;;  %v5042_v25 = vmul.f32 %v4928_v10, %v1516_v34  ;;  %v1503_v1 = vsub.f32 %v4790_v18, %v4898_v36 }
 0x2fa   :  { %2867 = vmatmul.mubr.f32.gmra.mxu0 %v1628_v26  ;;  %v1634_v24 = vmax.f32 %v1602_v38, 0.0  ;;  %v1604_v42 = vadd.f32 %v4948_v11, %v1568_v15  ;;  %v1570_v14 = vmul.f32 %v4933_v51, %v1534_v43  ;;  %v1536_v57 = vmul.f32 %v4928_v10, %v1502_v35 }
 0x2fb   :  { %2869 = vmatprep.mubr.f32.mxu0 %v1629_v53  ;;  %v1635_v58 = vmax.f32 %v1603_v12, 0.0  ;;  %v1605_v48 = vadd.f32 %v4948_v11, %v1569_v0  ;;  %v1571_v56 = vmul.f32 %v4933_v51, %v1535_v40  ;;  %v1537_v13 = vmul.f32 %v4928_v10, %v1503_v1 }
 0x2fc   :  { %v1504_v34 = vsub.f32 %v4797_v23, %v4898_v36  ;;  %v1505_v18 = vsub.f32 %v4804_v16, %v4898_v36  ;;  %v1636_v46 = vmax.f32 %v1604_v42, 0.0  ;;  %v1606_v44 = vadd.f32 %v4948_v11, %v1570_v14 }
 0x2fd   :  { %v1572_v49 = vmul.f32 %v4933_v51, %v1536_v57  ;;  %v1637_v50 = vmax.f32 %v1605_v48, 0.0  ;;  %v1607_v63 = vadd.f32 %v4948_v11, %v1571_v56  ;;  %v1573_v53 = vmul.f32 %v4933_v51, %v1537_v13 }
 0x2fe   :  { %2870 = vmatmul.mubr.f32.gmra.mxu0 %v1630_v45  ;;  %v1538_v26 = vmul.f32 %v4928_v10, %v1504_v34  ;;  %v1539_v5 = vmul.f32 %v4928_v10, %v1505_v18  ;;  %v1506_v23 = vsub.f32 %v4811_v20, %v4898_v36  ;;  %v1507_v16 = vsub.f32 %v4818_v60, %v4898_v36 }
 0x2ff   :  { %2872 = vmatprep.mubr.f32.mxu0 %v1631_v39  ;;  %v1638_v22 = vmax.f32 %v1606_v44, 0.0  ;;  %v1608_v52 = vadd.f32 %v4948_v11, %v1572_v49  ;;  %v1639_v45 = vmax.f32 %v1607_v63, 0.0  ;;  %v1609_v47 = vadd.f32 %v4948_v11, %v1573_v53  ;;  %v2291_v44 = vld [vmem:[%s5722_s4 + $0x30] sm:$0xff]  ;;  %v5141_v53 = vld [vmem:[%s5723_s5 + $0xc] ss:$0 sm:$0xff] }
 0x300   :  { %v1574_v61 = vmul.f32 %v4933_v51, %v1538_v26  ;;  %v1540_v59 = vmul.f32 %v4928_v10, %v1506_v23  ;;  %v1575_v33 = vmul.f32 %v4933_v51, %v1539_v5  ;;  %v1541_v29 = vmul.f32 %v4928_v10, %v1507_v16  ;;  %2973 = vmatprep.subr.mxu1 %v2291_v44  ;;  %v2287_v49 = vld [vmem:[%s5722_s4 + $0x10] sm:$0xff]  ;;  %v2286_v26 = vld [vmem:[%s5722_s4 + $0x8] sm:$0xff] }
 0x301   :  { %v1640_v20 = vmax.f32 %v1608_v52, 0.0  ;;  %v1542_v62 = vmul.f32 %v4928_v10, %v1508_v4  ;;  %v1641_v39 = vmax.f32 %v1609_v47, 0.0  ;;  %v1543_v7 = vmul.f32 %v4928_v10, %v1509_v6  ;;  %2910 = vmatprep.subr.mxu0 %v2291_v44  ;;  %2981 = vmatpush3.msra.mxu1 %v2291_v44 }
 0x302   :  { %2873 = vmatmul.mubr.f32.gmra.mxu0 %v1632_v21  ;;  %v1610_v60 = vadd.f32 %v4948_v11, %v1574_v61  ;;  %v1576_v31 = vmul.f32 %v4933_v51, %v1540_v59  ;;  %v1611_v3 = vadd.f32 %v4948_v11, %v1575_v33  ;;  %v1577_v32 = vmul.f32 %v4933_v51, %v1541_v29 }
 0x303   :  { %2875 = vmatprep.mubr.f32.mxu0 %v1633_v8  ;;  %v1578_v21 = vmul.f32 %v4933_v51, %v1542_v62  ;;  %v1544_v2 = vmul.f32 %v4928_v10, %v1510_v9  ;;  %v1579_v15 = vmul.f32 %v4933_v51, %v1543_v7  ;;  %v1545_v41 = vmul.f32 %v4928_v10, %v1511_v28 }
 0x304   :  { %v1642_v35 = vmax.f32 %v1610_v60, 0.0  ;;  %v1612_v43 = vadd.f32 %v4948_v11, %v1576_v31  ;;  %v1643_v4 = vmax.f32 %v1611_v3, 0.0  ;;  %v1613_v38 = vadd.f32 %v4948_v11, %v1577_v32  ;;  %2911 = vmatpush3.msra.mxu0 %v2291_v44 }
 0x305   :  { %v1614_v0 = vadd.f32 %v4948_v11, %v1578_v21  ;;  %v1580_v8 = vmul.f32 %v4933_v51, %v1544_v2  ;;  %v1615_v9 = vadd.f32 %v4948_v11, %v1579_v15  ;;  %v1581_v12 = vmul.f32 %v4933_v51, %v1545_v41 }
 0x306   :  { %2876 = vmatmul.mubr.f32.gmra.mxu0 %v1634_v24  ;;  %v1644_v6 = vmax.f32 %v1612_v43, 0.0  ;;  %v1645_v27 = vmax.f32 %v1613_v38, 0.0  ;;  %v1582_v55 = vmul.f32 %v4933_v51, %v5018_v17  ;;  %v1583_v10 = vmul.f32 %v4933_v51, %v5024_v19 }
 0x307   :  { %2878 = vmatprep.mubr.f32.mxu0 %v1635_v58  ;;  %v1646_v40 = vmax.f32 %v1614_v0, 0.0  ;;  %v1616_v1 = vadd.f32 %v4948_v11, %v1580_v8  ;;  %v1647_v36 = vmax.f32 %v1615_v9, 0.0  ;;  %v1617_v28 = vadd.f32 %v4948_v11, %v1581_v12 }
 0x308   :  { %v1618_v42 = vadd.f32 %v4948_v11, %v1582_v55  ;;  %v1584_v14 = vmul.f32 %v4933_v51, %v5030_v54  ;;  %v1619_v58 = vadd.f32 %v4948_v11, %v1583_v10  ;;  %v1585_v17 = vmul.f32 %v4933_v51, %v5036_v30 }
 0x309   :  { %v1648_v24 = vmax.f32 %v1616_v1, 0.0  ;;  %v1649_v57 = vmax.f32 %v1617_v28, 0.0  ;;  %v1586_v19 = vmul.f32 %v4933_v51, %v5042_v25  ;;  %v2290_v51 = vld [vmem:[%s5722_s4 + $0x28] sm:$0xff]  ;;  %v2288_v25 = vld [vmem:[%s5722_s4 + $0x18] sm:$0xff] }
 0x30a   :  { %2879 = vmatmul.mubr.f32.gmra.mxu0 %v1636_v46  ;;  %v1650_v48 = vmax.f32 %v1618_v42, 0.0  ;;  %v1620_v56 = vadd.f32 %v4948_v11, %v1584_v14  ;;  %v1651_v13 = vmax.f32 %v1619_v58, 0.0  ;;  %v1621_v34 = vadd.f32 %v4948_v11, %v1585_v17  ;;  %2974 = vmatprep.subr.mxu1 %v2290_v51 }
 0x30b   :  { %2881 = vmatprep.mubr.f32.mxu0 %v1637_v50  ;;  %v1622_v18 = vadd.f32 %v4948_v11, %v1586_v19  ;;  %2912 = vmatprep.subr.mxu0 %v2290_v51  ;;  %v2289_v11 = vld [vmem:[%s5722_s4 + $0x20] sm:$0xff] }
 0x30c   :  { %v1652_v54 = vmax.f32 %v1620_v56, 0.0  ;;  %v1653_v46 = vmax.f32 %v1621_v34, 0.0  ;;  %2982 = vmatpush3.msra.mxu1 %v2290_v51  ;;  %2913 = vmatpush3.msra.mxu0 %v2290_v51  ;;  %v2285_v50 = vld [vmem:[%s5722_s4] sm:$0xff] }
 0x30d   :  { %v1654_v30 = vmax.f32 %v1622_v18, 0.0  ;;  %2975 = vmatprep.subr.mxu1 %v2289_v11  ;;  %2914 = vmatprep.subr.mxu0 %v2289_v11 }
 0x30e   :  { %2882 = vmatmul.mubr.f32.gmra.mxu0 %v1638_v22  ;;  %2983 = vmatpush3.msra.mxu1 %v2289_v11 }
 0x30f   :  { %2884 = vmatprep.mubr.f32.mxu0 %v1639_v45  ;;  %2915 = vmatpush3.msra.mxu0 %v2289_v11 }
 0x310   :  { %2976 = vmatprep.subr.mxu1 %v2288_v25  ;;  %2916 = vmatprep.subr.mxu0 %v2288_v25 }
 0x311   :  { %2984 = vmatpush3.msra.mxu1 %v2288_v25  ;;  %2917 = vmatpush3.msra.mxu0 %v2288_v25 }
 0x312   :  { %2885 = vmatmul.mubr.f32.gmra.mxu0 %v1640_v20  ;;  %2977 = vmatprep.subr.mxu1 %v2287_v49 }
 0x313   :  { %2887 = vmatprep.mubr.f32.mxu0 %v1641_v39  ;;  %2918 = vmatprep.subr.mxu0 %v2287_v49 }
 0x314   :  { %2985 = vmatpush3.msra.mxu1 %v2287_v49  ;;  %2919 = vmatpush3.msra.mxu0 %v2287_v49 }
 0x315   :  { %2978 = vmatprep.subr.mxu1 %v2286_v26  ;;  %2920 = vmatprep.subr.mxu0 %v2286_v26 }
 0x316   :  { %2888 = vmatmul.mubr.f32.gmra.mxu0 %v1642_v35  ;;  %2986 = vmatpush3.msra.mxu1 %v2286_v26 }
 0x317   :  { %2890 = vmatprep.mubr.f32.mxu0 %v1643_v4  ;;  %2921 = vmatpush3.msra.mxu0 %v2286_v26 }
 0x318   :  { %2979 = vmatprep.subr.mxu1 %v2285_v50  ;;  %2922 = vmatprep.subr.mxu0 %v2285_v50 }
 0x319   :  { %2987 = vmatpush3.msra.mxu1 %v2285_v50  ;;  %2923 = vmatpush3.msra.mxu0 %v2285_v50 }
 0x31a   :  { %2891 = vmatmul.mubr.f32.gmra.mxu0 %v1644_v6 }
 0x31b   :  { %2893 = vmatprep.mubr.f32.mxu0 %v1645_v27 }
 0x31e   :  { %2894 = vmatmul.mubr.f32.gmra.mxu0 %v1646_v40 }
 0x31f   :  { %2896 = vmatprep.mubr.f32.mxu0 %v1647_v36 }
 0x322   :  { %2897 = vmatmul.mubr.f32.gmra.mxu0 %v1648_v24 }
 0x323   :  { %2899 = vmatprep.mubr.f32.mxu0 %v1649_v57 }
 0x326   :  { %2900 = vmatmul.mubr.f32.gmra.mxu0 %v1650_v48 }
 0x327   :  { %2902 = vmatprep.mubr.f32.mxu0 %v1651_v13 }
 0x32a   :  { %2903 = vmatmul.mubr.f32.gmra.mxu0 %v1652_v54 }
 0x32b   :  { %2905 = vmatprep.mubr.f32.mxu0 %v1653_v46 }
 0x32e   :  { %2906 = vmatmul.mubr.f32.gmra.mxu0 %v1654_v30 }
 0x3b2   :  { %v2862_v63 = vpop.f32.mrf.mxu0 }
 0x3b3   :  { %v1750_v22 = vadd.f32 %v2862_v63, %v5141_v53 }
 0x3b4   :  { %v1744_v5 = vpop.f32.mrf.mxu0 }
 0x3b5   :  { %v1745_v23 = vadd.f32 %v5141_v53, %v1744_v5 }
 0x3b6   :  { %v2865_v16 = vpop.f32.mrf.mxu0 }
 0x3b7   :  { %v5146_v52 = vrot.slane %v1745_v23, %v5913_v37  ;;  %v1760_v61 = vadd.f32 %v2865_v16, %v5141_v53 }
 0x3b8   :  { %v1754_v59 = vpop.f32.mrf.mxu0 }
 0x3b9   :  { %v5150_v45 = vsub.f32 %v1745_v23, %v5146_v52  ;;  %v5153_v47 = vsub.f32 %v1750_v22, %v5146_v52  ;;  %v5156_v33 = vsub.f32 %v1760_v61, %v5146_v52  ;;  %v1755_v29 = vadd.f32 %v5141_v53, %v1754_v59 }
 0x3ba   :  { %v2868_v20 = vpop.f32.mrf.mxu0 }
 0x3bb   :  { %v1940_v37 = vsel %vm1939_vm1, %v5150_v45, 0.0  ;;  %v1941_v60 = vsel %vm1939_vm1, %v5153_v47, 0.0  ;;  %v2009_v31 = vmul.f32 %v5150_v45, %v5150_v45  ;;  %v2010_v62 = vmul.f32 %v5153_v47, %v5153_v47 }
 0x3bc   :  { %v1942_v39 = vadd.f32 %v1941_v60, %v1940_v37  ;;  %v2012_v3 = vmul.f32 %v5156_v33, %v5156_v33  ;;  %v5170_v32 = vsub.f32 %v1755_v29, %v5146_v52  ;;  %v1764_v7 = vpop.f32.mrf.mxu0  ;;  %v1770_v21 = vadd.f32 %v2868_v20, %v5141_v53 }
 0x3bd   :  { %v2041_v35 = vsel %vm1939_vm1, %v2009_v31, 0.0  ;;  %v2042_v43 = vsel %vm1939_vm1, %v2010_v62, 0.0  ;;  %v1765_v2 = vadd.f32 %v5141_v53, %v1764_v7  ;;  %v1945_v9 = vsel %vm1939_vm1, %v5156_v33, 0.0 }
 0x3be   :  { %v2043_v4 = vadd.f32 %v2042_v43, %v2041_v35  ;;  %v1943_v38 = vsel %vm1939_vm1, %v5170_v32, 0.0  ;;  %v2011_v15 = vmul.f32 %v5170_v32, %v5170_v32  ;;  %v2871_v41 = vpop.f32.mrf.mxu0  ;;  %v5181_v0 = vsub.f32 %v1770_v21, %v5146_v52 }
 0x3bf   :  { %v1944_v6 = vadd.f32 %v1943_v38, %v1942_v39  ;;  %v5184_v8 = vsub.f32 %v1765_v2, %v5146_v52  ;;  %v1780_v27 = vadd.f32 %v2871_v41, %v5141_v53  ;;  %v2046_v1 = vsel %vm1939_vm1, %v2012_v3, 0.0 }
 0x3c0   :  { %v2044_v12 = vsel %vm1939_vm1, %v2011_v15, 0.0  ;;  %v1774_v40 = vpop.f32.mrf.mxu0  ;;  %v2014_v36 = vmul.f32 %v5181_v0, %v5181_v0  ;;  %v1949_v56 = vsel %vm1939_vm1, %v5181_v0, 0.0 }
 0x3c1   :  { %v2045_v55 = vadd.f32 %v2044_v12, %v2043_v4  ;;  %v1946_v28 = vadd.f32 %v1945_v9, %v1944_v6  ;;  %v1947_v10 = vsel %vm1939_vm1, %v5184_v8, 0.0  ;;  %v2013_v24 = vmul.f32 %v5184_v8, %v5184_v8 }
 0x3c2   :  { %v5198_v42 = vsub.f32 %v1780_v27, %v5146_v52  ;;  %v1775_v14 = vadd.f32 %v5141_v53, %v1774_v40  ;;  %v2874_v57 = vpop.f32.mrf.mxu0  ;;  %v2050_v44 = vsel %vm1939_vm1, %v2014_v36, 0.0 }
 0x3c3   :  { %v1948_v58 = vadd.f32 %v1947_v10, %v1946_v28  ;;  %v2047_v17 = vadd.f32 %v2046_v1, %v2045_v55  ;;  %v1790_v48 = vadd.f32 %v2874_v57, %v5141_v53  ;;  %v2048_v19 = vsel %vm1939_vm1, %v2013_v24, 0.0 }
 0x3c4   :  { %v5206_v13 = vsub.f32 %v1775_v14, %v5146_v52  ;;  %v1784_v34 = vpop.f32.mrf.mxu0  ;;  %v2016_v18 = vmul.f32 %v5198_v42, %v5198_v42  ;;  %v1953_v63 = vsel %vm1939_vm1, %v5198_v42, 0.0 }
 0x3c5   :  { %v2049_v54 = vadd.f32 %v2048_v19, %v2047_v17  ;;  %v1950_v46 = vadd.f32 %v1949_v56, %v1948_v58  ;;  %v1785_v30 = vadd.f32 %v5141_v53, %v1784_v34  ;;  %v5217_v25 = vsub.f32 %v1790_v48, %v5146_v52 }
 0x3c6   :  { %v1951_v51 = vsel %vm1939_vm1, %v5206_v13, 0.0  ;;  %v2015_v11 = vmul.f32 %v5206_v13, %v5206_v13  ;;  %v2877_v49 = vpop.f32.mrf.mxu0  ;;  %v2054_v61 = vsel %vm1939_vm1, %v2016_v18, 0.0 }
 0x3c7   :  { %v1952_v26 = vadd.f32 %v1951_v51, %v1950_v46  ;;  %v2051_v50 = vadd.f32 %v2050_v44, %v2049_v54  ;;  %v5223_v23 = vsub.f32 %v1785_v30, %v5146_v52  ;;  %v1800_v16 = vadd.f32 %v2877_v49, %v5141_v53 }
 0x3c8   :  { %v2052_v5 = vsel %vm1939_vm1, %v2015_v11, 0.0  ;;  %v1794_v22 = vpop.f32.mrf.mxu0  ;;  %v2018_v37 = vmul.f32 %v5217_v25, %v5217_v25  ;;  %v1957_v21 = vsel %vm1939_vm1, %v5217_v25, 0.0 }
 0x3c9   :  { %v2053_v59 = vadd.f32 %v2052_v5, %v2051_v50  ;;  %v1954_v29 = vadd.f32 %v1953_v63, %v1952_v26  ;;  %v1795_v20 = vadd.f32 %v5141_v53, %v1794_v22  ;;  %v1955_v60 = vsel %vm1939_vm1, %v5223_v23, 0.0 }
 0x3ca   :  { %v2017_v31 = vmul.f32 %v5223_v23, %v5223_v23  ;;  %v5235_v62 = vsub.f32 %v1800_v16, %v5146_v52  ;;  %v2880_v39 = vpop.f32.mrf.mxu0  ;;  %v2058_v27 = vsel %vm1939_vm1, %v2018_v37, 0.0 }
 0x3cb   :  { %v1956_v3 = vadd.f32 %v1955_v60, %v1954_v29  ;;  %v2055_v7 = vadd.f32 %v2054_v61, %v2053_v59  ;;  %v5238_v35 = vsub.f32 %v1795_v20, %v5146_v52  ;;  %v1810_v43 = vadd.f32 %v2880_v39, %v5141_v53 }
 0x3cc   :  { %v2056_v2 = vsel %vm1939_vm1, %v2017_v31, 0.0  ;;  %v1804_v4 = vpop.f32.mrf.mxu0  ;;  %v2020_v9 = vmul.f32 %v5235_v62, %v5235_v62  ;;  %v1961_v24 = vsel %vm1939_vm1, %v5235_v62, 0.0 }
 0x3cd   :  { %v2057_v38 = vadd.f32 %v2056_v2, %v2055_v7  ;;  %v1958_v15 = vadd.f32 %v1957_v21, %v1956_v3  ;;  %v1959_v41 = vsel %vm1939_vm1, %v5238_v35, 0.0  ;;  %v2019_v6 = vmul.f32 %v5238_v35, %v5238_v35 }
 0x3ce   :  { %v5252_v12 = vsub.f32 %v1810_v43, %v5146_v52  ;;  %v1805_v40 = vadd.f32 %v5141_v53, %v1804_v4  ;;  %v2883_v1 = vpop.f32.mrf.mxu0  ;;  %v2062_v19 = vsel %vm1939_vm1, %v2020_v9, 0.0 }
 0x3cf   :  { %v1960_v55 = vadd.f32 %v1959_v41, %v1958_v15  ;;  %v2059_v36 = vadd.f32 %v2058_v27, %v2057_v38  ;;  %v2060_v28 = vsel %vm1939_vm1, %v2019_v6, 0.0  ;;  %v1820_v10 = vadd.f32 %v2883_v1, %v5141_v53 }
 0x3d0   :  { %v5260_v14 = vsub.f32 %v1805_v40, %v5146_v52  ;;  %v1814_v57 = vpop.f32.mrf.mxu0  ;;  %v2022_v17 = vmul.f32 %v5252_v12, %v5252_v12  ;;  %v1965_v51 = vsel %vm1939_vm1, %v5252_v12, 0.0 }
 0x3d1   :  { %v2061_v58 = vadd.f32 %v2060_v28, %v2059_v36  ;;  %v1962_v48 = vadd.f32 %v1961_v24, %v1960_v55  ;;  %v1815_v56 = vadd.f32 %v5141_v53, %v1814_v57  ;;  %v5271_v18 = vsub.f32 %v1820_v10, %v5146_v52 }
 0x3d2   :  { %v1963_v34 = vsel %vm1939_vm1, %v5260_v14, 0.0  ;;  %v2021_v54 = vmul.f32 %v5260_v14, %v5260_v14  ;;  %v2886_v46 = vpop.f32.mrf.mxu0  ;;  %v2066_v63 = vsel %vm1939_vm1, %v2022_v17, 0.0 }
 0x3d3   :  { %v1964_v30 = vadd.f32 %v1963_v34, %v1962_v48  ;;  %v2063_v44 = vadd.f32 %v2062_v19, %v2061_v58  ;;  %v5277_v49 = vsub.f32 %v1815_v56, %v5146_v52  ;;  %v1830_v26 = vadd.f32 %v2886_v46, %v5141_v53 }
 0x3d4   :  { %v2064_v11 = vsel %vm1939_vm1, %v2021_v54, 0.0  ;;  %v1824_v50 = vpop.f32.mrf.mxu0  ;;  %v2024_v61 = vmul.f32 %v5271_v18, %v5271_v18  ;;  %v1969_v7 = vsel %vm1939_vm1, %v5271_v18, 0.0 }
 0x3d5   :  { %v2065_v5 = vadd.f32 %v2064_v11, %v2063_v44  ;;  %v1966_v16 = vadd.f32 %v1965_v51, %v1964_v30  ;;  %v1825_v22 = vadd.f32 %v5141_v53, %v1824_v50  ;;  %v1967_v59 = vsel %vm1939_vm1, %v5277_v49, 0.0 }
 0x3d6   :  { %v2023_v29 = vmul.f32 %v5277_v49, %v5277_v49  ;;  %v5289_v20 = vsub.f32 %v1830_v26, %v5146_v52  ;;  %v2889_v37 = vpop.f32.mrf.mxu0  ;;  %v2070_v41 = vsel %vm1939_vm1, %v2024_v61, 0.0 }
 0x3d7   :  { %v1968_v60 = vadd.f32 %v1967_v59, %v1966_v16  ;;  %v2067_v31 = vadd.f32 %v2066_v63, %v2065_v5  ;;  %v5292_v39 = vsub.f32 %v1825_v22, %v5146_v52  ;;  %v1840_v3 = vadd.f32 %v2889_v37, %v5141_v53 }
 0x3d8   :  { %v2068_v43 = vsel %vm1939_vm1, %v2023_v29, 0.0  ;;  %v1834_v21 = vpop.f32.mrf.mxu0  ;;  %v2026_v6 = vmul.f32 %v5289_v20, %v5289_v20  ;;  %v1973_v10 = vsel %vm1939_vm1, %v5289_v20, 0.0 }
 0x3d9   :  { %v2069_v2 = vadd.f32 %v2068_v43, %v2067_v31  ;;  %v1970_v4 = vadd.f32 %v1969_v7, %v1968_v60  ;;  %v1971_v38 = vsel %vm1939_vm1, %v5292_v39, 0.0  ;;  %v2025_v15 = vmul.f32 %v5292_v39, %v5292_v39 }
 0x3da   :  { %v5306_v27 = vsub.f32 %v1840_v3, %v5146_v52  ;;  %v1835_v9 = vadd.f32 %v5141_v53, %v1834_v21  ;;  %v2892_v40 = vpop.f32.mrf.mxu0  ;;  %v2074_v19 = vsel %vm1939_vm1, %v2026_v6, 0.0 }
 0x3db   :  { %v1972_v1 = vadd.f32 %v1971_v38, %v1970_v4  ;;  %v2071_v55 = vadd.f32 %v2070_v41, %v2069_v2  ;;  %v2072_v36 = vsel %vm1939_vm1, %v2025_v15, 0.0  ;;  %v1850_v28 = vadd.f32 %v2892_v40, %v5141_v53 }
 0x3dc   :  { %v5314_v24 = vsub.f32 %v1835_v9, %v5146_v52  ;;  %v1844_v57 = vpop.f32.mrf.mxu0  ;;  %v2028_v17 = vmul.f32 %v5306_v27, %v5306_v27  ;;  %v1977_v11 = vsel %vm1939_vm1, %v5306_v27, 0.0 }
 0x3dd   :  { %v2073_v58 = vadd.f32 %v2072_v36, %v2071_v55  ;;  %v1974_v48 = vadd.f32 %v1973_v10, %v1972_v1  ;;  %v1845_v56 = vadd.f32 %v5141_v53, %v1844_v57  ;;  %v5325_v46 = vsub.f32 %v1850_v28, %v5146_v52 }
 0x3de   :  { %v1975_v34 = vsel %vm1939_vm1, %v5314_v24, 0.0  ;;  %v2027_v54 = vmul.f32 %v5314_v24, %v5314_v24  ;;  %v2895_v30 = vpop.f32.mrf.mxu0  ;;  %v2078_v16 = vsel %vm1939_vm1, %v2028_v17, 0.0 }
 0x3df   :  { %v1976_v44 = vadd.f32 %v1975_v34, %v1974_v48  ;;  %v2075_v51 = vadd.f32 %v2074_v19, %v2073_v58  ;;  %v5331_v50 = vsub.f32 %v1845_v56, %v5146_v52  ;;  %v1860_v63 = vadd.f32 %v2895_v30, %v5141_v53 }
 0x3e0   :  { %v2076_v26 = vsel %vm1939_vm1, %v2027_v54, 0.0  ;;  %v1854_v5 = vpop.f32.mrf.mxu0  ;;  %v2030_v29 = vmul.f32 %v5325_v46, %v5325_v46  ;;  %v1981_v4 = vsel %vm1939_vm1, %v5325_v46, 0.0 }
 0x3e1   :  { %v2077_v22 = vadd.f32 %v2076_v26, %v2075_v51  ;;  %v1978_v61 = vadd.f32 %v1977_v11, %v1976_v44  ;;  %v1855_v59 = vadd.f32 %v5141_v53, %v1854_v5  ;;  %v1979_v37 = vsel %vm1939_vm1, %v5331_v50, 0.0 }
 0x3e2   :  { %v2029_v60 = vmul.f32 %v5331_v50, %v5331_v50  ;;  %v5343_v31 = vsub.f32 %v1860_v63, %v5146_v52  ;;  %v2898_v3 = vpop.f32.mrf.mxu0  ;;  %v2082_v1 = vsel %vm1939_vm1, %v2030_v29, 0.0 }
 0x3e3   :  { %v1980_v7 = vadd.f32 %v1979_v37, %v1978_v61  ;;  %v2079_v43 = vadd.f32 %v2078_v16, %v2077_v22  ;;  %v5346_v21 = vsub.f32 %v1855_v59, %v5146_v52  ;;  %v1870_v2 = vadd.f32 %v2898_v3, %v5141_v53 }
 0x3e4   :  { %v2080_v38 = vsel %vm1939_vm1, %v2029_v60, 0.0  ;;  %v1864_v15 = vpop.f32.mrf.mxu0  ;;  %v2032_v55 = vmul.f32 %v5343_v31, %v5343_v31  ;;  %v1985_v56 = vsel %vm1939_vm1, %v5343_v31, 0.0 }
 0x3e5   :  { %v2081_v41 = vadd.f32 %v2080_v38, %v2079_v43  ;;  %v1982_v6 = vadd.f32 %v1981_v4, %v1980_v7  ;;  %v1983_v9 = vsel %vm1939_vm1, %v5346_v21, 0.0  ;;  %v2031_v40 = vmul.f32 %v5346_v21, %v5346_v21 }
 0x3e6   :  { %v5360_v36 = vsub.f32 %v1870_v2, %v5146_v52  ;;  %v1865_v28 = vadd.f32 %v5141_v53, %v1864_v15  ;;  %v2901_v10 = vpop.f32.mrf.mxu0  ;;  %v2086_v11 = vsel %vm1939_vm1, %v2032_v55, 0.0 }
 0x3e7   :  { %v1984_v57 = vadd.f32 %v1983_v9, %v1982_v6  ;;  %v2083_v58 = vadd.f32 %v2082_v1, %v2081_v41  ;;  %v2084_v17 = vsel %vm1939_vm1, %v2031_v40, 0.0  ;;  %v1880_v48 = vadd.f32 %v2901_v10, %v5141_v53 }
 0x3e8   :  { %v5368_v19 = vsub.f32 %v1865_v28, %v5146_v52  ;;  %v1874_v34 = vpop.f32.mrf.mxu0  ;;  %v2034_v30 = vmul.f32 %v5360_v36, %v5360_v36  ;;  %v1989_v59 = vsel %vm1939_vm1, %v5360_v36, 0.0 }
 0x3e9   :  { %v2085_v54 = vadd.f32 %v2084_v17, %v2083_v58  ;;  %v1986_v44 = vadd.f32 %v1985_v56, %v1984_v57  ;;  %v1875_v51 = vadd.f32 %v5141_v53, %v1874_v34  ;;  %v5379_v5 = vsub.f32 %v1880_v48, %v5146_v52 }
 0x3ea   :  { %v1987_v26 = vsel %vm1939_vm1, %v5368_v19, 0.0  ;;  %v2033_v63 = vmul.f32 %v5368_v19, %v5368_v19  ;;  %v2904_v16 = vpop.f32.mrf.mxu0  ;;  %v2090_v7 = vsel %vm1939_vm1, %v2034_v30, 0.0 }
 0x3eb   :  { %v1988_v22 = vadd.f32 %v1987_v26, %v1986_v44  ;;  %v2087_v61 = vadd.f32 %v2086_v11, %v2085_v54  ;;  %v5385_v37 = vsub.f32 %v1875_v51, %v5146_v52  ;;  %v1890_v60 = vadd.f32 %v2904_v16, %v5141_v53 }
 0x3ec   :  { %v2088_v29 = vsel %vm1939_vm1, %v2033_v63, 0.0  ;;  %v1884_v3 = vpop.f32.mrf.mxu0  ;;  %v2036_v38 = vmul.f32 %v5379_v5, %v5379_v5  ;;  %v1993_v10 = vsel %vm1939_vm1, %v5379_v5, 0.0 }
 0x3ed   :  { %v2089_v43 = vadd.f32 %v2088_v29, %v2087_v61  ;;  %v1990_v2 = vadd.f32 %v1989_v59, %v1988_v22  ;;  %v1885_v4 = vadd.f32 %v5141_v53, %v1884_v3  ;;  %v1991_v15 = vsel %vm1939_vm1, %v5385_v37, 0.0 }
 0x3ee   :  { %v2035_v41 = vmul.f32 %v5385_v37, %v5385_v37  ;;  %v5397_v6 = vsub.f32 %v1890_v60, %v5146_v52  ;;  %v2907_v9 = vpop.f32.mrf.mxu0  ;;  %v2094_v54 = vsel %vm1939_vm1, %v2036_v38, 0.0 }
 0x3ef   :  { %v1992_v40 = vadd.f32 %v1991_v15, %v1990_v2  ;;  %v2091_v1 = vadd.f32 %v2090_v7, %v2089_v43  ;;  %v5400_v55 = vsub.f32 %v1885_v4, %v5146_v52  ;;  %v1900_v28 = vadd.f32 %v2907_v9, %v5141_v53 }
 0x3f0   :  { %v2092_v57 = vsel %vm1939_vm1, %v2035_v41, 0.0  ;;  %v1894_v58 = vpop.f32.mrf.mxu0  ;;  %v2038_v30 = vmul.f32 %v5397_v6, %v5397_v6  ;;  %v1997_v16 = vsel %vm1939_vm1, %v5397_v6, 0.0 }
 0x3f1   :  { %v2093_v17 = vadd.f32 %v2092_v57, %v2091_v1  ;;  %v1994_v48 = vadd.f32 %v1993_v10, %v1992_v40  ;;  %v1995_v56 = vsel %vm1939_vm1, %v5400_v55, 0.0  ;;  %v2037_v34 = vmul.f32 %v5400_v55, %v5400_v55 }
 0x3f2   :  { %v5414_v44 = vsub.f32 %v1900_v28, %v5146_v52  ;;  %v1895_v51 = vadd.f32 %v5141_v53, %v1894_v58  ;;  %v2098_v29 = vsel %vm1939_vm1, %v2038_v30, 0.0 }
 0x3f3   :  { %v1996_v11 = vadd.f32 %v1995_v56, %v1994_v48  ;;  %v2095_v26 = vadd.f32 %v2094_v54, %v2093_v17  ;;  %v2096_v63 = vsel %vm1939_vm1, %v2037_v34, 0.0 }
 0x3f4   :  { %v5421_v22 = vsub.f32 %v1895_v51, %v5146_v52  ;;  %v2040_v60 = vmul.f32 %v5414_v44, %v5414_v44  ;;  %v2001_v2 = vsel %vm1939_vm1, %v5414_v44, 0.0 }
 0x3f5   :  { %v2097_v61 = vadd.f32 %v2096_v63, %v2095_v26  ;;  %v1998_v59 = vadd.f32 %v1997_v16, %v1996_v11 }
 0x3f6   :  { %v1999_v53 = vsel %vm1939_vm1, %v5421_v22, 0.0  ;;  %v2039_v3 = vmul.f32 %v5421_v22, %v5421_v22  ;;  %v2102_v15 = vsel %vm1939_vm1, %v2040_v60, 0.0 }
 0x3f7   :  { %v2000_v7 = vadd.f32 %v1999_v53, %v1998_v59  ;;  %v2099_v43 = vadd.f32 %v2098_v29, %v2097_v61 }
 0x3f8   :  { %v2100_v52 = vsel %vm1939_vm1, %v2039_v3, 0.0 }
 0x3f9   :  { %v2002_v4 = vadd.f32 %v2001_v2, %v2000_v7  ;;  %v2101_v38 = vadd.f32 %v2100_v52, %v2099_v43 }
 0x3fb   :  { %v2003_v41 = vrot.slane %v2002_v4, 4  ;;  %v2103_v9 = vadd.f32 %v2102_v15, %v2101_v38 }
 0x3fd   :  { %v2004_v40 = vadd.f32 %v2003_v41, %v2002_v4  ;;  %v2104_v1 = vrot.slane %v2103_v9, 4 }
 0x3ff   :  { %v2005_v28 = vrot.slane %v2004_v40, 2  ;;  %v2105_v10 = vadd.f32 %v2104_v1, %v2103_v9 }
 0x401   :  { %v2006_v57 = vadd.f32 %v2005_v28, %v2004_v40  ;;  %v2106_v58 = vrot.slane %v2105_v10, 2  ;;  %v5514_v28 = vld [vmem:[%s5723_s5 + $0xd] ss:$0 sm:$0xff] }
 0x403   :  { %v2007_v17 = vrot.slane %v2006_v57, 1  ;;  %v2107_v48 = vadd.f32 %v2106_v58, %v2105_v10 }
 0x405   :  { %v2008_v56 = vadd.f32 %v2007_v17, %v2006_v57  ;;  %v2108_v34 = vrot.slane %v2107_v48, 1 }
 0x407   :  { %v2109_v54 = vadd.f32 %v2108_v34, %v2107_v48  ;;  %v5434_v30 = vmul.f32 0.00390625, %v2008_v56 }
 0x409   :  { %v2111_v51 = vmul.f32 0.00390625, %v2109_v54  ;;  %v2112_v11 = vmul.f32 %v5434_v30, %v5434_v30  ;;  %v2145_v61 = vsub.f32 %v5421_v22, %v5434_v30  ;;  %v2115_v59 = vsub.f32 %v5150_v45, %v5434_v30 }
 0x40a   :  { %v2116_v29 = vsub.f32 %v5153_v47, %v5434_v30  ;;  %v2117_v60 = vsub.f32 %v5170_v32, %v5434_v30  ;;  %v2118_v53 = vsub.f32 %v5156_v33, %v5434_v30  ;;  %v2119_v3 = vsub.f32 %v5184_v8, %v5434_v30 }
 0x40b   :  { %v2113_v26 = vsub.f32 %v2111_v51, %v2112_v11  ;;  %v2120_v7 = vsub.f32 %v5181_v0, %v5434_v30  ;;  %v2121_v43 = vsub.f32 %v5206_v13, %v5434_v30  ;;  %v2122_v45 = vsub.f32 %v5198_v42, %v5434_v30  ;;  %v5537_v51 = vld [vmem:[%s5723_s5 + $0xe] ss:$0 sm:$0xff] }
 0x40c   :  { %v2123_v47 = vsub.f32 %v5223_v23, %v5434_v30  ;;  %v2124_v32 = vsub.f32 %v5217_v25, %v5434_v30  ;;  %v2125_v33 = vsub.f32 %v5238_v35, %v5434_v30  ;;  %v2126_v8 = vsub.f32 %v5235_v62, %v5434_v30 }
 0x40d   :  { %v2114_v63 = vmax.f32 %v2113_v26, 0.0  ;;  %v2127_v0 = vsub.f32 %v5260_v14, %v5434_v30  ;;  %v2128_v13 = vsub.f32 %v5252_v12, %v5434_v30  ;;  %v2129_v42 = vsub.f32 %v5277_v49, %v5434_v30 }
 0x40e   :  { %v2130_v25 = vsub.f32 %v5271_v18, %v5434_v30  ;;  %v2131_v23 = vsub.f32 %v5292_v39, %v5434_v30  ;;  %v2132_v62 = vsub.f32 %v5289_v20, %v5434_v30  ;;  %v2133_v35 = vsub.f32 %v5314_v24, %v5434_v30 }
 0x40f   :  { %v2147_v16 = vadd.f32 1e-05, %v2114_v63  ;;  %v2134_v14 = vsub.f32 %v5306_v27, %v5434_v30  ;;  %v2135_v49 = vsub.f32 %v5331_v50, %v5434_v30  ;;  %v2136_v52 = vsub.f32 %v5325_v46, %v5434_v30 }
 0x410   :  { %v2137_v18 = vsub.f32 %v5346_v21, %v5434_v30  ;;  %v2138_v39 = vsub.f32 %v5343_v31, %v5434_v30  ;;  %v2139_v20 = vsub.f32 %v5368_v19, %v5434_v30  ;;  %v2140_v24 = vsub.f32 %v5360_v36, %v5434_v30 }
 0x411   :  { %2998 = vrsqrt.f32 %v2147_v16  ;;  %v2141_v27 = vsub.f32 %v5385_v37, %v5434_v30  ;;  %v2142_v50 = vsub.f32 %v5379_v5, %v5434_v30  ;;  %v2143_v46 = vsub.f32 %v5400_v55, %v5434_v30 }
 0x412   :  { %v2144_v21 = vsub.f32 %v5397_v6, %v5434_v30 }
 0x41e   :  { %v5470_v2 = vpop.eup %2998 }
 0x41f   :  { %v2149_v31 = vmul.f32 %v5470_v2, %v2115_v59  ;;  %v2150_v4 = vmul.f32 %v5470_v2, %v2116_v29  ;;  %v2151_v19 = vmul.f32 %v5470_v2, %v2117_v60  ;;  %v2152_v38 = vmul.f32 %v5470_v2, %v2118_v53 }
 0x420   :  { %v2153_v15 = vmul.f32 %v5470_v2, %v2119_v3  ;;  %v2154_v41 = vmul.f32 %v5470_v2, %v2120_v7  ;;  %v2155_v9 = vmul.f32 %v5470_v2, %v2121_v43  ;;  %v2163_v40 = vmul.f32 %v5470_v2, %v2129_v42 }
 0x421   :  { %v2164_v1 = vmul.f32 %v5470_v2, %v2130_v25  ;;  %v2156_v10 = vmul.f32 %v5470_v2, %v2122_v45  ;;  %v5518_v57 = vmul.f32 %v5470_v2, %v2123_v47  ;;  %v2165_v58 = vmul.f32 %v5470_v2, %v2131_v23 }
 0x422   :  { %v2166_v17 = vmul.f32 %v5470_v2, %v2132_v62  ;;  %v5523_v48 = vmul.f32 %v5470_v2, %v2124_v32  ;;  %v5526_v56 = vmul.f32 %v5470_v2, %v2125_v33  ;;  %v5529_v34 = vmul.f32 %v5470_v2, %v2126_v8 }
 0x423   :  { %v5532_v54 = vmul.f32 %v5470_v2, %v2127_v0  ;;  %v2167_v11 = vmul.f32 %v5470_v2, %v2133_v35  ;;  %v2168_v26 = vmul.f32 %v5470_v2, %v2134_v14  ;;  %v2169_v63 = vmul.f32 %v5470_v2, %v2135_v49 }
 0x424   :  { %v2170_v16 = vmul.f32 %v5470_v2, %v2136_v52  ;;  %v2186_v59 = vmul.f32 %v5514_v28, %v2150_v4  ;;  %v2200_v29 = vmul.f32 %v5514_v28, %v2164_v1  ;;  %v2185_v60 = vmul.f32 %v5514_v28, %v2149_v31 }
 0x425   :  { %v2199_v53 = vmul.f32 %v5514_v28, %v2163_v40  ;;  %v2187_v3 = vmul.f32 %v5514_v28, %v2151_v19  ;;  %v2201_v7 = vmul.f32 %v5514_v28, %v2165_v58  ;;  %v2188_v43 = vmul.f32 %v5514_v28, %v2152_v38 }
 0x426   :  { %v2202_v45 = vmul.f32 %v5514_v28, %v2166_v17  ;;  %v2222_v47 = vadd.f32 %v5537_v51, %v2186_v59  ;;  %v2236_v32 = vadd.f32 %v5537_v51, %v2200_v29  ;;  %v2221_v33 = vadd.f32 %v5537_v51, %v2185_v60 }
 0x427   :  { %v2235_v8 = vadd.f32 %v5537_v51, %v2199_v53  ;;  %v2171_v0 = vmul.f32 %v5470_v2, %v2137_v18  ;;  %v2223_v42 = vadd.f32 %v5537_v51, %v2187_v3  ;;  %v2237_v25 = vadd.f32 %v5537_v51, %v2201_v7 }
 0x428   :  { %v2224_v23 = vadd.f32 %v5537_v51, %v2188_v43  ;;  %v2254_v62 = vmax.f32 %v2222_v47, 0.0  ;;  %v2268_v35 = vmax.f32 %v2236_v32, 0.0  ;;  %v2253_v14 = vmax.f32 %v2221_v33, 0.0 }
 0x429   :  { %v2267_v49 = vmax.f32 %v2235_v8, 0.0  ;;  %v2172_v52 = vmul.f32 %v5470_v2, %v2138_v39  ;;  %v2173_v31 = vmul.f32 %v5470_v2, %v2139_v20  ;;  %v2255_v4 = vmax.f32 %v2223_v42, 0.0 }
 0x42a   :  { %v2238_v19 = vadd.f32 %v5537_v51, %v2202_v45  ;;  %2924 = vmatprep.mubr.msk.f32.mxu0 %vm1939_vm1, %v2253_v14  ;;  %v2269_v18 = vmax.f32 %v2237_v25, 0.0  ;;  %v2189_v38 = vmul.f32 %v5514_v28, %v2153_v15  ;;  %v2203_v40 = vmul.f32 %v5514_v28, %v2167_v11 }
 0x42b   :  { %2945 = vmatprep.mubr.msk.f32.mxu1 %vm1939_vm1, %v2267_v49  ;;  %v2190_v1 = vmul.f32 %v5514_v28, %v2154_v41  ;;  %2925 = vmatmul.mubr.msk.f32.vlgmr.msra.gmra.mxu0 %vm1939_vm1, %v2254_v62  ;;  %v2204_v39 = vmul.f32 %v5514_v28, %v2168_v26  ;;  %v2191_v20 = vmul.f32 %v5514_v28, %v2155_v9  ;;  %v2256_v17 = vmax.f32 %v2224_v23, 0.0 }
 0x42c   :  { %2946 = vmatmul.mubr.msk.f32.vlgmr.msra.gmra.mxu1 %vm1939_vm1, %v2268_v35  ;;  %v2205_v58 = vmul.f32 %v5514_v28, %v2169_v63  ;;  %2927 = vmatprep.mubr.msk.f32.mxu0 %vm1939_vm1, %v2255_v4  ;;  %v2225_v15 = vadd.f32 %v5537_v51, %v2189_v38  ;;  %v2239_v11 = vadd.f32 %v5537_v51, %v2203_v40  ;;  %v2270_v59 = vmax.f32 %v2238_v19, 0.0 }
 0x42d   :  { %2948 = vmatprep.mubr.msk.f32.mxu1 %vm1939_vm1, %v2269_v18  ;;  %v2226_v41 = vadd.f32 %v5537_v51, %v2190_v1  ;;  %v2240_v29 = vadd.f32 %v5537_v51, %v2204_v39  ;;  %v2227_v26 = vadd.f32 %v5537_v51, %v2191_v20  ;;  %v2192_v9 = vmul.f32 %v5514_v28, %v2156_v10 }
 0x42e   :  { %v2257_v60 = vmax.f32 %v2225_v15, 0.0  ;;  %v2271_v63 = vmax.f32 %v2239_v11, 0.0  ;;  %v2241_v53 = vadd.f32 %v5537_v51, %v2205_v58  ;;  %v2206_v3 = vmul.f32 %v5514_v28, %v2170_v16 }
 0x42f   :  { %v2174_v7 = vmul.f32 %v5470_v2, %v2140_v24  ;;  %v2175_v43 = vmul.f32 %v5470_v2, %v2141_v27  ;;  %2928 = vmatmul.mubr.msk.f32.gmra.mxu0 %vm1939_vm1, %v2256_v17  ;;  %v2258_v10 = vmax.f32 %v2226_v41, 0.0  ;;  %v2272_v45 = vmax.f32 %v2240_v29, 0.0 }
 0x430   :  { %2949 = vmatmul.mubr.msk.f32.gmra.mxu1 %vm1939_vm1, %v2270_v59  ;;  %2930 = vmatprep.mubr.msk.f32.mxu0 %vm1939_vm1, %v2257_v60  ;;  %v2259_v16 = vmax.f32 %v2227_v26, 0.0  ;;  %v2228_v36 = vadd.f32 %v5537_v51, %v2192_v9  ;;  %v2193_v24 = vmul.f32 %v5514_v28, %v5518_v57  ;;  %v2207_v37 = vmul.f32 %v5514_v28, %v2171_v0 }
 0x431   :  { %2951 = vmatprep.mubr.msk.f32.mxu1 %vm1939_vm1, %v2271_v63  ;;  %v2242_v27 = vadd.f32 %v5537_v51, %v2206_v3  ;;  %v2194_v47 = vmul.f32 %v5514_v28, %v5523_v48  ;;  %v2208_v32 = vmul.f32 %v5514_v28, %v2172_v52  ;;  %v2195_v33 = vmul.f32 %v5514_v28, %v5526_v56 }
 0x432   :  { %v2273_v8 = vmax.f32 %v2241_v53, 0.0  ;;  %v2229_v42 = vadd.f32 %v5537_v51, %v2193_v24  ;;  %v2243_v25 = vadd.f32 %v5537_v51, %v2207_v37  ;;  %v2209_v23 = vmul.f32 %v5514_v28, %v2173_v31 }
 0x433   :  { %v2162_v57 = vmul.f32 %v5470_v2, %v2128_v13  ;;  %v2176_v48 = vmul.f32 %v5470_v2, %v2142_v50  ;;  %v2177_v56 = vmul.f32 %v5470_v2, %v2143_v46  ;;  %2931 = vmatmul.mubr.msk.f32.gmra.mxu0 %vm1939_vm1, %v2258_v10  ;;  %v2260_v12 = vmax.f32 %v2228_v36, 0.0 }
 0x434   :  { %2952 = vmatmul.mubr.msk.f32.gmra.mxu1 %vm1939_vm1, %v2272_v45  ;;  %2933 = vmatprep.mubr.msk.f32.mxu0 %vm1939_vm1, %v2259_v16  ;;  %v2230_v13 = vadd.f32 %v5537_v51, %v2194_v47  ;;  %v2244_v5 = vadd.f32 %v5537_v51, %v2208_v32  ;;  %v2196_v50 = vmul.f32 %v5514_v28, %v5529_v34  ;;  %v2274_v0 = vmax.f32 %v2242_v27, 0.0 }
 0x435   :  { %2954 = vmatprep.mubr.msk.f32.mxu1 %vm1939_vm1, %v2273_v8  ;;  %v2261_v55 = vmax.f32 %v2229_v42, 0.0  ;;  %v2231_v46 = vadd.f32 %v5537_v51, %v2195_v33  ;;  %v2210_v62 = vmul.f32 %v5514_v28, %v2174_v7  ;;  %v2275_v35 = vmax.f32 %v2243_v25, 0.0 }
 0x436   :  { %v2245_v14 = vadd.f32 %v5537_v51, %v2209_v23  ;;  %v2197_v49 = vmul.f32 %v5514_v28, %v5532_v54  ;;  %v2211_v52 = vmul.f32 %v5514_v28, %v2175_v43  ;;  %v2179_v31 = vmul.f32 %v5470_v2, %v2145_v61 }
 0x437   :  { %v2146_v34 = vsub.f32 %v5414_v44, %v5434_v30  ;;  %2934 = vmatmul.mubr.msk.f32.gmra.mxu0 %vm1939_vm1, %v2260_v12  ;;  %v2178_v4 = vmul.f32 %v5470_v2, %v2144_v21  ;;  %v2262_v54 = vmax.f32 %v2230_v13, 0.0  ;;  %v2276_v22 = vmax.f32 %v2244_v5, 0.0 }
 0x438   :  { %2955 = vmatmul.mubr.msk.f32.gmra.mxu1 %vm1939_vm1, %v2274_v0  ;;  %2936 = vmatprep.mubr.msk.f32.mxu0 %vm1939_vm1, %v2261_v55  ;;  %v2232_v61 = vadd.f32 %v5537_v51, %v2196_v50  ;;  %v2263_v19 = vmax.f32 %v2231_v46, 0.0  ;;  %v2246_v44 = vadd.f32 %v5537_v51, %v2210_v62  ;;  %v2198_v18 = vmul.f32 %v5514_v28, %v2162_v57 }
 0x439   :  { %2957 = vmatprep.mubr.msk.f32.mxu1 %vm1939_vm1, %v2275_v35  ;;  %v2212_v38 = vmul.f32 %v5514_v28, %v2176_v48  ;;  %v2277_v40 = vmax.f32 %v2245_v14, 0.0  ;;  %v2233_v6 = vadd.f32 %v5537_v51, %v2197_v49  ;;  %v2247_v30 = vadd.f32 %v5537_v51, %v2211_v52 }
 0x43a   :  { %v2213_v21 = vmul.f32 %v5514_v28, %v2177_v56  ;;  %v2180_v1 = vmul.f32 %v5470_v2, %v2146_v34  ;;  %v2264_v39 = vmax.f32 %v2232_v61, 0.0  ;;  %v2278_v20 = vmax.f32 %v2246_v44, 0.0 }
 0x43b   :  { %2937 = vmatmul.mubr.msk.f32.gmra.mxu0 %vm1939_vm1, %v2262_v54  ;;  %v2234_v58 = vadd.f32 %v5537_v51, %v2198_v18  ;;  %v2248_v17 = vadd.f32 %v5537_v51, %v2212_v38  ;;  %v2214_v15 = vmul.f32 %v5514_v28, %v2178_v4  ;;  %v2265_v11 = vmax.f32 %v2233_v6, 0.0 }
 0x43c   :  { %2958 = vmatmul.mubr.msk.f32.gmra.mxu1 %vm1939_vm1, %v2276_v22  ;;  %2939 = vmatprep.mubr.msk.f32.mxu0 %vm1939_vm1, %v2263_v19  ;;  %v2279_v41 = vmax.f32 %v2247_v30, 0.0  ;;  %v2249_v59 = vadd.f32 %v5537_v51, %v2213_v21  ;;  %v2215_v29 = vmul.f32 %v5514_v28, %v2179_v31  ;;  %v2216_v60 = vmul.f32 %v5514_v28, %v2180_v1  ;;  %v5681_v28 = vld [vmem:[%s5723_s5 + $0x10] ss:$0 sm:$0xff]  ;;  %s3023_s5 = smov [#allocation2]  }
 0x43d   :  { %2960 = vmatprep.mubr.msk.f32.mxu1 %vm1939_vm1, %v2277_v40  ;;  %v2266_v2 = vmax.f32 %v2234_v58, 0.0  ;;  %v2280_v26 = vmax.f32 %v2248_v17, 0.0  ;;  %v2250_v9 = vadd.f32 %v5537_v51, %v2214_v15  ;;  %s2656_s23 = sshll.u32 %s3023_s5, 4  ;;  %s2657_s23 = int_to_ptr.vmem [resolvable:$true] %s2656_s23 }
 0x43e   :  { %v2281_v63 = vmax.f32 %v2249_v59, 0.0  ;;  %v2251_v53 = vadd.f32 %v5537_v51, %v2215_v29  ;;  %v2252_v7 = vadd.f32 %v5537_v51, %v2216_v60  ;;  %s3000_s3 = scalar_lea.vmem %s2657_s23, 4096  ;;  %p3005_p1 = scmp.lt.s32.totalorder %s2657_s23, %s2657_s23 }
 0x43f   :  { %2940 = vmatmul.mubr.msk.f32.gmra.mxu0 %vm1939_vm1, %v2264_v39  ;;  %v2282_v3 = vmax.f32 %v2250_v9, 0.0  ;;  %p3001_p0 = scmp.ne.s32.totalorder %s2657_s23, %s3000_s3  ;;  %p3006_p2 = scmp.lt.s32.totalorder %s3000_s3, %s3000_s3 }
 0x440   :  { %2961 = vmatmul.mubr.msk.f32.gmra.mxu1 %vm1939_vm1, %v2278_v20  ;;  %2942 = vmatprep.mubr.msk.f32.mxu0 %vm1939_vm1, %v2265_v11  ;;  %v2283_v43 = vmax.f32 %v2251_v53, 0.0  ;;  %v2284_v10 = vmax.f32 %v2252_v7, 0.0 }
 0x441   :  { %2963 = vmatprep.mubr.msk.f32.mxu1 %vm1939_vm1, %v2279_v41  ;;  %p3007_p3 = por %p3006_p2, %p3005_p1 }
 0x443   :  { %2943 = vmatmul.mubr.msk.f32.gmra.mxu0 %vm1939_vm1, %v2266_v2  ;;  %p3008_p4 = pnand %p3007_p3, %p3001_p0 }
 0x444   :  { %2964 = vmatmul.mubr.msk.f32.gmra.mxu1 %vm1939_vm1, %v2280_v26 }
 0x445   :  { %2966 = vmatprep.mubr.msk.f32.mxu1 %vm1939_vm1, %v2281_v63 }
 0x448   :  { %2967 = vmatmul.mubr.msk.f32.gmra.mxu1 %vm1939_vm1, %v2282_v3 }
 0x449   :  { %2969 = vmatprep.mubr.msk.f32.mxu1 %vm1939_vm1, %v2283_v43 }
 0x44c   :  { %2970 = vmatmul.mubr.msk.f32.gmra.mxu1 %vm1939_vm1, %v2284_v10 }
 0x4eb   :  { %v2926_v45 = vpop.f32.mrf.mxu0 }
 0x4ec   :  { %v2947_v16 = vpop.f32.mrf.mxu1  ;;  %v2466_v36 = vadd.f32 %v2926_v45, %v5681_v28 }
 0x4ed   :  { %v2536_v24 = vadd.f32 %v2947_v16, %v5681_v28  ;;  %v2460_v51 = vpop.f32.mrf.mxu0 }
 0x4ee   :  { %v2530_v37 = vpop.f32.mrf.mxu1  ;;  %2620 = vst [vmem:[#allocation2 + $0x8] sm:$0xff] %v2466_v36  ;;  %v2461_v27 = vadd.f32 %v5681_v28, %v2460_v51 }
 0x4ef   :  { %2634 = vst [vmem:[#allocation2 + $0x78] sm:$0xff] %v2536_v24  ;;  %v2531_v47 = vadd.f32 %v5681_v28, %v2530_v37  ;;  %v2929_v32 = vpop.f32.mrf.mxu0 }
 0x4f0   :  { %v2950_v33 = vpop.f32.mrf.mxu1  ;;  %2619 = vst [vmem:[#allocation2] sm:$0xff] %v2461_v27  ;;  %v2476_v8 = vadd.f32 %v2929_v32, %v5681_v28 }
 0x4f1   :  { %2633 = vst [vmem:[#allocation2 + $0x70] sm:$0xff] %v2531_v47  ;;  %v2546_v42 = vadd.f32 %v2950_v33, %v5681_v28  ;;  %v2470_v25 = vpop.f32.mrf.mxu0 }
 0x4f2   :  { %v2540_v23 = vpop.f32.mrf.mxu1  ;;  %2622 = vst [vmem:[#allocation2 + $0x18] sm:$0xff] %v2476_v8  ;;  %v2471_v57 = vadd.f32 %v5681_v28, %v2470_v25 }
 0x4f3   :  { %2636 = vst [vmem:[#allocation2 + $0x88] sm:$0xff] %v2546_v42  ;;  %v2541_v48 = vadd.f32 %v5681_v28, %v2540_v23  ;;  %v2932_v56 = vpop.f32.mrf.mxu0 }
 0x4f4   :  { %v2953_v12 = vpop.f32.mrf.mxu1  ;;  %2621 = vst [vmem:[#allocation2 + $0x10] sm:$0xff] %v2471_v57  ;;  %v2486_v13 = vadd.f32 %v2932_v56, %v5681_v28 }
 0x4f5   :  { %2635 = vst [vmem:[#allocation2 + $0x80] sm:$0xff] %v2541_v48  ;;  %v2556_v5 = vadd.f32 %v2953_v12, %v5681_v28  ;;  %v2480_v50 = vpop.f32.mrf.mxu0 }
 0x4f6   :  { %v2550_v0 = vpop.f32.mrf.mxu1  ;;  %2624 = vst [vmem:[#allocation2 + $0x28] sm:$0xff] %v2486_v13  ;;  %v2481_v55 = vadd.f32 %v5681_v28, %v2480_v50 }
 0x4f7   :  { %2638 = vst [vmem:[#allocation2 + $0x98] sm:$0xff] %v2556_v5  ;;  %v2551_v46 = vadd.f32 %v5681_v28, %v2550_v0  ;;  %v2935_v62 = vpop.f32.mrf.mxu0 }
 0x4f8   :  { %v2956_v35 = vpop.f32.mrf.mxu1  ;;  %2623 = vst [vmem:[#allocation2 + $0x20] sm:$0xff] %v2481_v55  ;;  %v2496_v14 = vadd.f32 %v2935_v62, %v5681_v28 }
 0x4f9   :  { %2637 = vst [vmem:[#allocation2 + $0x90] sm:$0xff] %v2551_v46  ;;  %v2566_v49 = vadd.f32 %v2956_v35, %v5681_v28  ;;  %v2490_v52 = vpop.f32.mrf.mxu0 }
 0x4fa   :  { %v2560_v31 = vpop.f32.mrf.mxu1  ;;  %2626 = vst [vmem:[#allocation2 + $0x38] sm:$0xff] %v2496_v14  ;;  %v2491_v34 = vadd.f32 %v5681_v28, %v2490_v52 }
 0x4fb   :  { %2640 = vst [vmem:[#allocation2 + $0xa8] sm:$0xff] %v2566_v49  ;;  %v2561_v4 = vadd.f32 %v5681_v28, %v2560_v31  ;;  %v2938_v54 = vpop.f32.mrf.mxu0 }
 0x4fc   :  { %v2959_v22 = vpop.f32.mrf.mxu1  ;;  %2625 = vst [vmem:[#allocation2 + $0x30] sm:$0xff] %v2491_v34  ;;  %v2506_v61 = vadd.f32 %v2938_v54, %v5681_v28 }
 0x4fd   :  { %2639 = vst [vmem:[#allocation2 + $0xa0] sm:$0xff] %v2561_v4  ;;  %v2576_v19 = vadd.f32 %v2959_v22, %v5681_v28  ;;  %v2500_v44 = vpop.f32.mrf.mxu0 }
 0x4fe   :  { %v2570_v18 = vpop.f32.mrf.mxu1  ;;  %2628 = vst [vmem:[#allocation2 + $0x48] sm:$0xff] %v2506_v61  ;;  %v2501_v38 = vadd.f32 %v5681_v28, %v2500_v44 }
 0x4ff   :  { %2642 = vst [vmem:[#allocation2 + $0xb8] sm:$0xff] %v2576_v19  ;;  %v2571_v40 = vadd.f32 %v5681_v28, %v2570_v18  ;;  %v2941_v6 = vpop.f32.mrf.mxu0 }
 0x500   :  { %v2962_v30 = vpop.f32.mrf.mxu1  ;;  %2627 = vst [vmem:[#allocation2 + $0x40] sm:$0xff] %v2501_v38  ;;  %v2516_v21 = vadd.f32 %v2941_v6, %v5681_v28 }
 0x501   :  { %2641 = vst [vmem:[#allocation2 + $0xb0] sm:$0xff] %v2571_v40  ;;  %v2586_v1 = vadd.f32 %v2962_v30, %v5681_v28  ;;  %v2510_v39 = vpop.f32.mrf.mxu0 }
 0x502   :  { %v2580_v20 = vpop.f32.mrf.mxu1  ;;  %2630 = vst [vmem:[#allocation2 + $0x58] sm:$0xff] %v2516_v21  ;;  %v2511_v58 = vadd.f32 %v5681_v28, %v2510_v39 }
 0x503   :  { %2644 = vst [vmem:[#allocation2 + $0xc8] sm:$0xff] %v2586_v1  ;;  %v2581_v17 = vadd.f32 %v5681_v28, %v2580_v20  ;;  %v2944_v15 = vpop.f32.mrf.mxu0 }
 0x504   :  { %v2965_v11 = vpop.f32.mrf.mxu1  ;;  %2629 = vst [vmem:[#allocation2 + $0x50] sm:$0xff] %v2511_v58  ;;  %v2526_v41 = vadd.f32 %v2944_v15, %v5681_v28 }
 0x505   :  { %2643 = vst [vmem:[#allocation2 + $0xc0] sm:$0xff] %v2581_v17  ;;  %v2596_v59 = vadd.f32 %v2965_v11, %v5681_v28  ;;  %v2520_v29 = vpop.f32.mrf.mxu0 }
 0x506   :  { %v2590_v2 = vpop.f32.mrf.mxu1  ;;  %2632 = vst [vmem:[#allocation2 + $0x68] sm:$0xff] %v2526_v41  ;;  %v2521_v26 = vadd.f32 %v5681_v28, %v2520_v29 }
 0x507   :  { %2646 = vst [vmem:[#allocation2 + $0xd8] sm:$0xff] %v2596_v59  ;;  %v2591_v9 = vadd.f32 %v5681_v28, %v2590_v2 }
 0x508   :  { %v2968_v60 = vpop.f32.mrf.mxu1  ;;  %2631 = vst [vmem:[#allocation2 + $0x60] sm:$0xff] %v2521_v26 }
 0x509   :  { %2645 = vst [vmem:[#allocation2 + $0xd0] sm:$0xff] %v2591_v9  ;;  %v2606_v63 = vadd.f32 %v2968_v60, %v5681_v28 }
 0x50a   :  { %v2600_v53 = vpop.f32.mrf.mxu1 }
 0x50b   :  { %2648 = vst [vmem:[#allocation2 + $0xe8] sm:$0xff] %v2606_v63  ;;  %v2601_v3 = vadd.f32 %v5681_v28, %v2600_v53 }
 0x50c   :  { %v2971_v7 = vpop.f32.mrf.mxu1 }
 0x50d   :  { %2647 = vst [vmem:[#allocation2 + $0xe0] sm:$0xff] %v2601_v3  ;;  %v2616_v43 = vadd.f32 %v2971_v7, %v5681_v28 }
 0x50e   :  { %v2610_v10 = vpop.f32.mrf.mxu1 }
 0x50f   :  { %2650 = vst [vmem:[#allocation2 + $0xf8] sm:$0xff] %v2616_v43  ;;  %v2611_v45 = vadd.f32 %v5681_v28, %v2610_v10 }
 0x511   :  { %2649 = vst [vmem:[#allocation2 + $0xf0] sm:$0xff] %v2611_v45 }
 0x512   :  { %3011 = shalt.err (!%p3008_p4)
}
 0x513   :  { %s3024_s24 = smov 128   ;;  %s3025_s25 = smov 8  }
 0x514   :  { %2662 = dma.vmem_to_hbm [thread:$0]  %s2657_s23, 4096, %s5724_s6, [#allocation3], %s3024_s24, %s3024_s24, %s3025_s25  }
 0x515   :  { %3020 = dma.done.wait [#allocation3], 4096  }
 0x516   :  { %3021 = vsyncadd [#allocation3], 4294963200 }
 0x517   :  { %2666 = vsyncpa [#allocation3], 1 }

</bundles_post_ra>
